<compile_context>
chip_gen: v5e
topology: v5e:2x2
jax: 0.10.0
libtpu: 0.0.40
codegen_flags: <defaults>
</compile_context>

<pallas_src>
import jax
import jax.numpy as jnp
from jax.experimental import pallas as pl
from jax.experimental.pallas import tpu as pltpu


_VMEM = pl.BlockSpec(memory_space=pltpu.MemorySpace.VMEM)


def _make_fused_kernel(T, B, E, H, L, num_layers):
    """Build the fused kernel for static (T, padded-B, E, H, L, num_layers).

    Ref order: x, [wih_cat, whh_cat, bias_cat] * num_layers, head_w, head_b, out,
    then scratch: gin, act_f0, act_b0, act_f1, act_b1.
    All activations are kept 2-D as (T*B, feat) so time-step access is a plain
    static, sublane-aligned slice.
    """
    H4, H8 = 4 * H, 8 * H

    def kernel(*refs):
        x_ref = refs[0]
        layer_refs = [refs[1 + 3 * k: 1 + 3 * (k + 1)] for k in range(num_layers)]
        hw_ref = refs[1 + 3 * num_layers]
        hb_ref = refs[2 + 3 * num_layers]
        out_ref = refs[3 + 3 * num_layers]
        gin, af0, ab0, af1, ab1 = refs[4 + 3 * num_layers: 9 + 3 * num_layers]
        acts = [(af0, ab0), (af1, ab1)]                 # ping-pong per-layer buffers

        # TODO(synk): on v7x the two directions could run on the two TensorCores
        # (pl.core_map over pltpu.create_tensorcore_mesh); kept single-core here for
        # portability across v5e/v6e/v7x.
        for layer in range(num_layers):
            wih_ref, whh_ref, b_ref = layer_refs[layer]
            act_f, act_b = acts[layer % 2]

            # --- Hoisted input projection: one fused-N (Din, 8H) matmul per layer.
            if layer == 0:
                gin[...] = jnp.dot(x_ref[...], wih_ref[...],
                                   preferred_element_type=jnp.float32) + b_ref[...]
            else:
                prev_f, prev_b = acts[(layer - 1) % 2]
                wih = wih_ref[...]                      # (2H, 8H) bf16
                gin[...] = (jnp.dot(prev_f[...].astype(jnp.bfloat16), wih[:H, :],
                                    preferred_element_type=jnp.float32)
                            + jnp.dot(prev_b[...].astype(jnp.bfloat16), wih[H:, :],
                                      preferred_element_type=jnp.float32)
                            + b_ref[...])

            # --- Interleaved fwd/bwd recurrence: one fused h@Whh per step.
            whh = whh_ref[...]                          # (H, 8H) bf16, hoisted load
            h = jnp.zeros((2 * B, H), jnp.float32)      # [h_fwd ; h_bwd]
            c = jnp.zeros((2 * B, H), jnp.float32)      # zero init == init_hidden()
            # Fully unrolled over small static T: static slices; LLO can overlap the
            # next step's MXU push with this step's sigmoid/tanh on the EUP.
            # TODO(synk): for large T switch to lax.fori_loop(..., unroll=2..4).
            for i in range(T):
                tf = i
                tb = T - 1 - i
                g_mat = jnp.dot(h.astype(jnp.bfloat16), whh,
                                preferred_element_type=jnp.float32)   # (2B, 8H)
                g_f = gin[tf * B:(tf + 1) * B, 0:H4] + g_mat[0:B, 0:H4]
                g_b = gin[tb * B:(tb + 1) * B, H4:H8] + g_mat[B:2 * B, H4:H8]
                g = jnp.concatenate([g_f, g_b], axis=0)               # (2B, 4H)
                i_g = jax.nn.sigmoid(g[:, 0 * H:1 * H])
                f_g = jax.nn.sigmoid(g[:, 1 * H:2 * H])
                g_g = jnp.tanh(g[:, 2 * H:3 * H])
                o_g = jax.nn.sigmoid(g[:, 3 * H:4 * H])
                c = f_g * c + i_g * g_g
                h = o_g * jnp.tanh(c)
                act_f[tf * B:(tf + 1) * B, :] = h[0:B, :]
                act_b[tb * B:(tb + 1) * B, :] = h[B:2 * B, :]
            # TODO(synk): inter-layer dropout (p) is train-time only; eval forward omits it.

        # --- Head: temp = lstm_out[-1]; y = temp @ W + b; log_softmax(dim=1).
        act_f, act_b = acts[(num_layers - 1) % 2]
        hf_last = act_f[(T - 1) * B:T * B, :]           # (B, H)
        hb_last = act_b[(T - 1) * B:T * B, :]           # (B, H)
        hw = hw_ref[...]                                # (2H, L) f32
        y = (jnp.dot(hf_last, hw[:H, :], preferred_element_type=jnp.float32)
             + jnp.dot(hb_last, hw[H:, :], preferred_element_type=jnp.float32)
             + hb_ref[...])
        m = jnp.max(y, axis=1, keepdims=True)
        s = y - m
        lse = jnp.log(jnp.sum(jnp.exp(s), axis=1, keepdims=True))
        out_ref[...] = (s - lse).astype(out_ref.dtype)

    return kernel


def lstm_classifier_forward(sentence, params):
    """sentence: int32 (T, B). Returns log-probs (B, label_size)."""
    T, B = sentence.shape
    emb = params["embedding"]
    E = emb.shape[1]
    H = params["lstm"][0][0][1].shape[0]          # whh_f has shape (H, 4H)
    L = params["head_b"].shape[-1]
    num_layers = len(params["lstm"])

    # Pad batch to a full 8-sublane vreg (B=2 -> 8); padded rows dropped at the end.
    B_pad = max(8, ((B + 7) // 8) * 8)

    x = emb[sentence]                              # (T, B, E) embedding gather (JAX glue)
    if B_pad != B:
        x = jnp.pad(x, ((0, 0), (0, B_pad - B), (0, 0)))
    x = x.reshape(T * B_pad, E).astype(jnp.bfloat16)   # bf16 MXU operand

    # Per layer: concatenate fwd/bwd weights along N so each phase is ONE MXU pass
    # (N = 8H = 256 exactly fills the 256-wide v6e/v7x MXU when H = 32).
    flat_w = []
    for (wih_f, whh_f, b_f), (wih_b, whh_b, b_b) in params["lstm"]:
        wih_cat = jnp.concatenate([wih_f, wih_b], axis=1).astype(jnp.bfloat16)  # (Din, 8H)
        whh_cat = jnp.concatenate([whh_f, whh_b], axis=1).astype(jnp.bfloat16)  # (H, 8H)
        b_cat = jnp.concatenate([b_f, b_b], axis=1)                             # (1, 8H) f32
        flat_w += [wih_cat, whh_cat, b_cat]

    # TODO(synk): for large T, stream x / activations over T-chunks with a manual
    # double buffer (pltpu.make_async_copy) instead of whole-sequence VMEM residency
    # (v7x's 64 MiB physical VMEM forces this ~2x earlier than v5e/v6e's 128 MiB).
    kernel = _make_fused_kernel(T, B_pad, E, H, L, num_layers)
    n_inputs = 1 + len(flat_w) + 2
    out = pl.pallas_call(
        kernel,
        out_shape=jax.ShapeDtypeStruct((B_pad, L), jnp.float32),
        in_specs=[_VMEM] * n_inputs,
        out_specs=_VMEM,
        scratch_shapes=[
            pltpu.VMEM((T * B_pad, 8 * H), jnp.float32),   # fused gates-in (fwd|bwd)
            pltpu.VMEM((T * B_pad, H), jnp.float32),       # layer acts fwd (ping)
            pltpu.VMEM((T * B_pad, H), jnp.float32),       # layer acts bwd (ping)
            pltpu.VMEM((T * B_pad, H), jnp.float32),       # layer acts fwd (pong)
            pltpu.VMEM((T * B_pad, H), jnp.float32),       # layer acts bwd (pong)
        ],
        compiler_params=pltpu.CompilerParams(
            vmem_limit_bytes=48 * 1024 * 1024),            # < v7x's 64 MiB physical
    )(x, *flat_w, params["head_w"], params["head_b"])
    return out[:B]


def init_params(key, embedding_dim, hidden_dim, vocab_size, label_size, num_layers):
    """Deterministic synthetic init matching the PyTorch module's shapes."""
    H, E = hidden_dim, embedding_dim
    k_emb, k_lstm, k_lin = jax.random.split(key, 3)

    params = {
        "embedding": jax.random.normal(k_emb, (vocab_size, E), jnp.float32),
    }

    lstm_layers = []
    bound = 1.0 / jnp.sqrt(H)
    lk = k_lstm
    for layer in range(num_layers):
        d_in = E if layer == 0 else 2 * H
        dirs = []
        for _ in range(2):                    # forward, backward
            lk, k1, k2, k3, k4 = jax.random.split(lk, 5)
            wih = jax.random.uniform(k1, (4 * H, d_in), jnp.float32, -bound, bound)
            whh = jax.random.uniform(k2, (4 * H, H), jnp.float32, -bound, bound)
            b_ih = jax.random.uniform(k3, (4 * H,), jnp.float32, -bound, bound)
            b_hh = jax.random.uniform(k4, (4 * H,), jnp.float32, -bound, bound)
            dirs.append((wih.T, whh.T, (b_ih + b_hh).reshape(1, 4 * H)))
        lstm_layers.append(tuple(dirs))
    params["lstm"] = lstm_layers

    k_w, k_b = jax.random.split(k_lin)
    lb = 1.0 / jnp.sqrt(2 * H)
    params["head_w"] = jax.random.uniform(
        k_w, (2 * H, label_size), jnp.float32, -lb, lb)
    params["head_b"] = jax.random.uniform(
        k_b, (1, label_size), jnp.float32, -lb, lb)
    return params


if __name__ == "__main__":
    embedding_dim = 16
    hidden_dim = 32
    vocab_size = 50
    label_size = 5
    batch_size = 2
    num_layers = 2
    seq_len = 8

    key = jax.random.PRNGKey(0)
    k_params, k_sent = jax.random.split(key)
    params = init_params(k_params, embedding_dim, hidden_dim, vocab_size,
                         label_size, num_layers)
    sentence = jax.random.randint(k_sent, (seq_len, batch_size), 0, vocab_size,
                                  dtype=jnp.int32)

    log_probs = lstm_classifier_forward(sentence, params)
    jax.block_until_ready(log_probs)
    assert log_probs.shape == (batch_size, label_size)
    print("KERNEL_OK")
</pallas_src>

<mosaic_0001>
module attributes {stable_mosaic.version = 11 : i64} {
  func.func @kernel(%arg0: memref<64x16xbf16, #tpu.memory_space<vmem>>, %arg1: memref<16x256xbf16, #tpu.memory_space<vmem>>, %arg2: memref<32x256xbf16, #tpu.memory_space<vmem>>, %arg3: memref<1x256xf32, #tpu.memory_space<vmem>>, %arg4: memref<64x256xbf16, #tpu.memory_space<vmem>>, %arg5: memref<32x256xbf16, #tpu.memory_space<vmem>>, %arg6: memref<1x256xf32, #tpu.memory_space<vmem>>, %arg7: memref<64x5xf32, #tpu.memory_space<vmem>>, %arg8: memref<1x5xf32, #tpu.memory_space<vmem>>, %arg9: memref<8x5xf32, #tpu.memory_space<vmem>>, %arg10: memref<64x256xf32, #tpu.memory_space<vmem>>, %arg11: memref<64x32xf32, #tpu.memory_space<vmem>>, %arg12: memref<64x32xf32, #tpu.memory_space<vmem>>, %arg13: memref<64x32xf32, #tpu.memory_space<vmem>>, %arg14: memref<64x32xf32, #tpu.memory_space<vmem>>) attributes {dimension_semantics = [], scalar_prefetch = 0 : i64, scratch_operands = 5 : i64, tpu.core_type = #tpu.core_type<tc>} {
    %c0 = arith.constant 0 : index
    %c0_0 = arith.constant 0 : index
    %0 = vector.load %arg0[%c0, %c0_0] : memref<64x16xbf16, #tpu.memory_space<vmem>>, vector<64x16xbf16>
    %c0_1 = arith.constant 0 : index
    %c0_2 = arith.constant 0 : index
    %1 = vector.load %arg1[%c0_1, %c0_2] : memref<16x256xbf16, #tpu.memory_space<vmem>>, vector<16x256xbf16>
    %cst = arith.constant dense<0.000000e+00> : vector<64x256xf32>
    %2 = tpu.matmul %0, %1, %cst {dimension_numbers = #tpu.dot_dimension_numbers<[1], [0], [0], [1], [0, 0, 1, 1], [], []>} : vector<64x16xbf16>, vector<16x256xbf16>, vector<64x256xf32> -> vector<64x256xf32>
    %c0_3 = arith.constant 0 : index
    %c0_4 = arith.constant 0 : index
    %3 = vector.load %arg3[%c0_3, %c0_4] : memref<1x256xf32, #tpu.memory_space<vmem>>, vector<1x256xf32>
    %4 = vector.broadcast %3 : vector<1x256xf32> to vector<64x256xf32>
    %5 = arith.addf %2, %4 : vector<64x256xf32>
    %c0_5 = arith.constant 0 : index
    %c0_6 = arith.constant 0 : index
    %6 = vector.load %arg10[%c0_5, %c0_6] : memref<64x256xf32, #tpu.memory_space<vmem>>, vector<64x256xf32>
    tpu.vector_store %arg10[%c0_5, %c0_6], %5 {strides = array<i32>} : memref<64x256xf32, #tpu.memory_space<vmem>>, vector<64x256xf32>,
    %c0_7 = arith.constant 0 : index
    %c0_8 = arith.constant 0 : index
    %7 = vector.load %arg2[%c0_7, %c0_8] : memref<32x256xbf16, #tpu.memory_space<vmem>>, vector<32x256xbf16>
    %cst_9 = arith.constant 0.000000e+00 : f32
    %8 = vector.broadcast %cst_9 : f32 to vector<16x32xf32>
    %cst_10 = arith.constant 0.000000e+00 : f32
    %9 = vector.broadcast %cst_10 : f32 to vector<16x32xf32>
    %10 = arith.truncf %8 : vector<16x32xf32> to vector<16x32xbf16>
    %cst_11 = arith.constant dense<0.000000e+00> : vector<16x256xf32>
    %11 = tpu.matmul %10, %7, %cst_11 {dimension_numbers = #tpu.dot_dimension_numbers<[1], [0], [0], [1], [0, 0, 1, 1], [], []>} : vector<16x32xbf16>, vector<32x256xbf16>, vector<16x256xf32> -> vector<16x256xf32>
    %c0_12 = arith.constant 0 : index
    %c0_13 = arith.constant 0 : index
    %12 = vector.load %arg10[%c0_12, %c0_13] : memref<64x256xf32, #tpu.memory_space<vmem>>, vector<8x128xf32>
    %13 = vector.extract_strided_slice %11 {offsets = [0, 0], sizes = [8, 128], strides = [1, 1]} : vector<16x256xf32> to vector<8x128xf32>
    %14 = arith.addf %12, %13 : vector<8x128xf32>
    %c56 = arith.constant 56 : index
    %c128 = arith.constant 128 : index
    %15 = vector.load %arg10[%c56, %c128] : memref<64x256xf32, #tpu.memory_space<vmem>>, vector<8x128xf32>
    %16 = vector.extract_strided_slice %11 {offsets = [8, 128], sizes = [8, 128], strides = [1, 1]} : vector<16x256xf32> to vector<8x128xf32>
    %17 = arith.addf %15, %16 : vector<8x128xf32>
    %18 = tpu.concatenate %14, %17 in 0 : vector<8x128xf32>, vector<8x128xf32> -> vector<16x128xf32>
    %19 = vector.extract_strided_slice %18 {offsets = [0, 0], sizes = [16, 32], strides = [1, 1]} : vector<16x128xf32> to vector<16x32xf32>
    %20 = arith.negf %19 : vector<16x32xf32>
    %21 = math.exp %20 : vector<16x32xf32>
    %cst_14 = arith.constant 1.000000e+00 : f32
    %22 = vector.broadcast %cst_14 : f32 to vector<16x32xf32>
    %23 = arith.addf %22, %21 : vector<16x32xf32>
    %24 = arith.divf %22, %23 : vector<16x32xf32>
    %25 = vector.extract_strided_slice %18 {offsets = [0, 32], sizes = [16, 32], strides = [1, 1]} : vector<16x128xf32> to vector<16x32xf32>
    %26 = arith.negf %25 : vector<16x32xf32>
    %27 = math.exp %26 : vector<16x32xf32>
    %cst_15 = arith.constant 1.000000e+00 : f32
    %28 = vector.broadcast %cst_15 : f32 to vector<16x32xf32>
    %29 = arith.addf %28, %27 : vector<16x32xf32>
    %30 = arith.divf %28, %29 : vector<16x32xf32>
    %31 = vector.extract_strided_slice %18 {offsets = [0, 64], sizes = [16, 32], strides = [1, 1]} : vector<16x128xf32> to vector<16x32xf32>
    %32 = math.tanh %31 : vector<16x32xf32>
    %33 = vector.extract_strided_slice %18 {offsets = [0, 96], sizes = [16, 32], strides = [1, 1]} : vector<16x128xf32> to vector<16x32xf32>
    %34 = arith.negf %33 : vector<16x32xf32>
    %35 = math.exp %34 : vector<16x32xf32>
    %cst_16 = arith.constant 1.000000e+00 : f32
    %36 = vector.broadcast %cst_16 : f32 to vector<16x32xf32>
    %37 = arith.addf %36, %35 : vector<16x32xf32>
    %38 = arith.divf %36, %37 : vector<16x32xf32>
    %39 = arith.mulf %30, %9 : vector<16x32xf32>
    %40 = arith.mulf %24, %32 : vector<16x32xf32>
    %41 = arith.addf %39, %40 : vector<16x32xf32>
    %42 = math.tanh %41 : vector<16x32xf32>
    %43 = arith.mulf %38, %42 : vector<16x32xf32>
    %44 = vector.extract_strided_slice %43 {offsets = [0, 0], sizes = [8, 32], strides = [1, 1]} : vector<16x32xf32> to vector<8x32xf32>
    %c0_17 = arith.constant 0 : index
    %c0_18 = arith.constant 0 : index
    %45 = vector.load %arg11[%c0_17, %c0_18] : memref<64x32xf32, #tpu.memory_space<vmem>>, vector<8x32xf32>
    tpu.vector_store %arg11[%c0_17, %c0_18], %44 {strides = array<i32>} : memref<64x32xf32, #tpu.memory_space<vmem>>, vector<8x32xf32>,
    %46 = vector.extract_strided_slice %43 {offsets = [8, 0], sizes = [8, 32], strides = [1, 1]} : vector<16x32xf32> to vector<8x32xf32>
    %c56_19 = arith.constant 56 : index
    %c0_20 = arith.constant 0 : index
    %47 = vector.load %arg12[%c56_19, %c0_20] : memref<64x32xf32, #tpu.memory_space<vmem>>, vector<8x32xf32>
    tpu.vector_store %arg12[%c56_19, %c0_20], %46 {strides = array<i32>} : memref<64x32xf32, #tpu.memory_space<vmem>>, vector<8x32xf32>,
    %48 = arith.truncf %43 : vector<16x32xf32> to vector<16x32xbf16>
    %cst_21 = arith.constant dense<0.000000e+00> : vector<16x256xf32>
    %49 = tpu.matmul %48, %7, %cst_21 {dimension_numbers = #tpu.dot_dimension_numbers<[1], [0], [0], [1], [0, 0, 1, 1], [], []>} : vector<16x32xbf16>, vector<32x256xbf16>, vector<16x256xf32> -> vector<16x256xf32>
    %c8 = arith.constant 8 : index
    %c0_22 = arith.constant 0 : index
    %50 = vector.load %arg10[%c8, %c0_22] : memref<64x256xf32, #tpu.memory_space<vmem>>, vector<8x128xf32>
    %51 = vector.extract_strided_slice %49 {offsets = [0, 0], sizes = [8, 128], strides = [1, 1]} : vector<16x256xf32> to vector<8x128xf32>
    %52 = arith.addf %50, %51 : vector<8x128xf32>
    %c48 = arith.constant 48 : index
    %c128_23 = arith.constant 128 : index
    %53 = vector.load %arg10[%c48, %c128_23] : memref<64x256xf32, #tpu.memory_space<vmem>>, vector<8x128xf32>
    %54 = vector.extract_strided_slice %49 {offsets = [8, 128], sizes = [8, 128], strides = [1, 1]} : vector<16x256xf32> to vector<8x128xf32>
    %55 = arith.addf %53, %54 : vector<8x128xf32>
    %56 = tpu.concatenate %52, %55 in 0 : vector<8x128xf32>, vector<8x128xf32> -> vector<16x128xf32>
    %57 = vector.extract_strided_slice %56 {offsets = [0, 0], sizes = [16, 32], strides = [1, 1]} : vector<16x128xf32> to vector<16x32xf32>
    %58 = arith.negf %57 : vector<16x32xf32>
    %59 = math.exp %58 : vector<16x32xf32>
    %cst_24 = arith.constant 1.000000e+00 : f32
    %60 = vector.broadcast %cst_24 : f32 to vector<16x32xf32>
    %61 = arith.addf %60, %59 : vector<16x32xf32>
    %62 = arith.divf %60, %61 : vector<16x32xf32>
    %63 = vector.extract_strided_slice %56 {offsets = [0, 32], sizes = [16, 32], strides = [1, 1]} : vector<16x128xf32> to vector<16x32xf32>
    %64 = arith.negf %63 : vector<16x32xf32>
    %65 = math.exp %64 : vector<16x32xf32>
    %cst_25 = arith.constant 1.000000e+00 : f32
    %66 = vector.broadcast %cst_25 : f32 to vector<16x32xf32>
    %67 = arith.addf %66, %65 : vector<16x32xf32>
    %68 = arith.divf %66, %67 : vector<16x32xf32>
    %69 = vector.extract_strided_slice %56 {offsets = [0, 64], sizes = [16, 32], strides = [1, 1]} : vector<16x128xf32> to vector<16x32xf32>
    %70 = math.tanh %69 : vector<16x32xf32>
    %71 = vector.extract_strided_slice %56 {offsets = [0, 96], sizes = [16, 32], strides = [1, 1]} : vector<16x128xf32> to vector<16x32xf32>
    %72 = arith.negf %71 : vector<16x32xf32>
    %73 = math.exp %72 : vector<16x32xf32>
    %cst_26 = arith.constant 1.000000e+00 : f32
    %74 = vector.broadcast %cst_26 : f32 to vector<16x32xf32>
    %75 = arith.addf %74, %73 : vector<16x32xf32>
    %76 = arith.divf %74, %75 : vector<16x32xf32>
    %77 = arith.mulf %68, %41 : vector<16x32xf32>
    %78 = arith.mulf %62, %70 : vector<16x32xf32>
    %79 = arith.addf %77, %78 : vector<16x32xf32>
    %80 = math.tanh %79 : vector<16x32xf32>
    %81 = arith.mulf %76, %80 : vector<16x32xf32>
    %82 = vector.extract_strided_slice %81 {offsets = [0, 0], sizes = [8, 32], strides = [1, 1]} : vector<16x32xf32> to vector<8x32xf32>
    %c8_27 = arith.constant 8 : index
    %c0_28 = arith.constant 0 : index
    %83 = vector.load %arg11[%c8_27, %c0_28] : memref<64x32xf32, #tpu.memory_space<vmem>>, vector<8x32xf32>
    tpu.vector_store %arg11[%c8_27, %c0_28], %82 {strides = array<i32>} : memref<64x32xf32, #tpu.memory_space<vmem>>, vector<8x32xf32>,
    %84 = vector.extract_strided_slice %81 {offsets = [8, 0], sizes = [8, 32], strides = [1, 1]} : vector<16x32xf32> to vector<8x32xf32>
    %c48_29 = arith.constant 48 : index
    %c0_30 = arith.constant 0 : index
    %85 = vector.load %arg12[%c48_29, %c0_30] : memref<64x32xf32, #tpu.memory_space<vmem>>, vector<8x32xf32>
    tpu.vector_store %arg12[%c48_29, %c0_30], %84 {strides = array<i32>} : memref<64x32xf32, #tpu.memory_space<vmem>>, vector<8x32xf32>,
    %86 = arith.truncf %81 : vector<16x32xf32> to vector<16x32xbf16>
    %cst_31 = arith.constant dense<0.000000e+00> : vector<16x256xf32>
    %87 = tpu.matmul %86, %7, %cst_31 {dimension_numbers = #tpu.dot_dimension_numbers<[1], [0], [0], [1], [0, 0, 1, 1], [], []>} : vector<16x32xbf16>, vector<32x256xbf16>, vector<16x256xf32> -> vector<16x256xf32>
    %c16 = arith.constant 16 : index
    %c0_32 = arith.constant 0 : index
    %88 = vector.load %arg10[%c16, %c0_32] : memref<64x256xf32, #tpu.memory_space<vmem>>, vector<8x128xf32>
    %89 = vector.extract_strided_slice %87 {offsets = [0, 0], sizes = [8, 128], strides = [1, 1]} : vector<16x256xf32> to vector<8x128xf32>
    %90 = arith.addf %88, %89 : vector<8x128xf32>
    %c40 = arith.constant 40 : index
    %c128_33 = arith.constant 128 : index
    %91 = vector.load %arg10[%c40, %c128_33] : memref<64x256xf32, #tpu.memory_space<vmem>>, vector<8x128xf32>
    %92 = vector.extract_strided_slice %87 {offsets = [8, 128], sizes = [8, 128], strides = [1, 1]} : vector<16x256xf32> to vector<8x128xf32>
    %93 = arith.addf %91, %92 : vector<8x128xf32>
    %94 = tpu.concatenate %90, %93 in 0 : vector<8x128xf32>, vector<8x128xf32> -> vector<16x128xf32>
    %95 = vector.extract_strided_slice %94 {offsets = [0, 0], sizes = [16, 32], strides = [1, 1]} : vector<16x128xf32> to vector<16x32xf32>
    %96 = arith.negf %95 : vector<16x32xf32>
    %97 = math.exp %96 : vector<16x32xf32>
    %cst_34 = arith.constant 1.000000e+00 : f32
    %98 = vector.broadcast %cst_34 : f32 to vector<16x32xf32>
    %99 = arith.addf %98, %97 : vector<16x32xf32>
    %100 = arith.divf %98, %99 : vector<16x32xf32>
    %101 = vector.extract_strided_slice %94 {offsets = [0, 32], sizes = [16, 32], strides = [1, 1]} : vector<16x128xf32> to vector<16x32xf32>
    %102 = arith.negf %101 : vector<16x32xf32>
    %103 = math.exp %102 : vector<16x32xf32>
    %cst_35 = arith.constant 1.000000e+00 : f32
    %104 = vector.broadcast %cst_35 : f32 to vector<16x32xf32>
    %105 = arith.addf %104, %103 : vector<16x32xf32>
    %106 = arith.divf %104, %105 : vector<16x32xf32>
    %107 = vector.extract_strided_slice %94 {offsets = [0, 64], sizes = [16, 32], strides = [1, 1]} : vector<16x128xf32> to vector<16x32xf32>
    %108 = math.tanh %107 : vector<16x32xf32>
    %109 = vector.extract_strided_slice %94 {offsets = [0, 96], sizes = [16, 32], strides = [1, 1]} : vector<16x128xf32> to vector<16x32xf32>
    %110 = arith.negf %109 : vector<16x32xf32>
    %111 = math.exp %110 : vector<16x32xf32>
    %cst_36 = arith.constant 1.000000e+00 : f32
    %112 = vector.broadcast %cst_36 : f32 to vector<16x32xf32>
    %113 = arith.addf %112, %111 : vector<16x32xf32>
    %114 = arith.divf %112, %113 : vector<16x32xf32>
    %115 = arith.mulf %106, %79 : vector<16x32xf32>
    %116 = arith.mulf %100, %108 : vector<16x32xf32>
    %117 = arith.addf %115, %116 : vector<16x32xf32>
    %118 = math.tanh %117 : vector<16x32xf32>
    %119 = arith.mulf %114, %118 : vector<16x32xf32>
    %120 = vector.extract_strided_slice %119 {offsets = [0, 0], sizes = [8, 32], strides = [1, 1]} : vector<16x32xf32> to vector<8x32xf32>
    %c16_37 = arith.constant 16 : index
    %c0_38 = arith.constant 0 : index
    %121 = vector.load %arg11[%c16_37, %c0_38] : memref<64x32xf32, #tpu.memory_space<vmem>>, vector<8x32xf32>
    tpu.vector_store %arg11[%c16_37, %c0_38], %120 {strides = array<i32>} : memref<64x32xf32, #tpu.memory_space<vmem>>, vector<8x32xf32>,
    %122 = vector.extract_strided_slice %119 {offsets = [8, 0], sizes = [8, 32], strides = [1, 1]} : vector<16x32xf32> to vector<8x32xf32>
    %c40_39 = arith.constant 40 : index
    %c0_40 = arith.constant 0 : index
    %123 = vector.load %arg12[%c40_39, %c0_40] : memref<64x32xf32, #tpu.memory_space<vmem>>, vector<8x32xf32>
    tpu.vector_store %arg12[%c40_39, %c0_40], %122 {strides = array<i32>} : memref<64x32xf32, #tpu.memory_space<vmem>>, vector<8x32xf32>,
    %124 = arith.truncf %119 : vector<16x32xf32> to vector<16x32xbf16>
    %cst_41 = arith.constant dense<0.000000e+00> : vector<16x256xf32>
    %125 = tpu.matmul %124, %7, %cst_41 {dimension_numbers = #tpu.dot_dimension_numbers<[1], [0], [0], [1], [0, 0, 1, 1], [], []>} : vector<16x32xbf16>, vector<32x256xbf16>, vector<16x256xf32> -> vector<16x256xf32>
    %c24 = arith.constant 24 : index
    %c0_42 = arith.constant 0 : index
    %126 = vector.load %arg10[%c24, %c0_42] : memref<64x256xf32, #tpu.memory_space<vmem>>, vector<8x128xf32>
    %127 = vector.extract_strided_slice %125 {offsets = [0, 0], sizes = [8, 128], strides = [1, 1]} : vector<16x256xf32> to vector<8x128xf32>
    %128 = arith.addf %126, %127 : vector<8x128xf32>
    %c32 = arith.constant 32 : index
    %c128_43 = arith.constant 128 : index
    %129 = vector.load %arg10[%c32, %c128_43] : memref<64x256xf32, #tpu.memory_space<vmem>>, vector<8x128xf32>
    %130 = vector.extract_strided_slice %125 {offsets = [8, 128], sizes = [8, 128], strides = [1, 1]} : vector<16x256xf32> to vector<8x128xf32>
    %131 = arith.addf %129, %130 : vector<8x128xf32>
    %132 = tpu.concatenate %128, %131 in 0 : vector<8x128xf32>, vector<8x128xf32> -> vector<16x128xf32>
    %133 = vector.extract_strided_slice %132 {offsets = [0, 0], sizes = [16, 32], strides = [1, 1]} : vector<16x128xf32> to vector<16x32xf32>
    %134 = arith.negf %133 : vector<16x32xf32>
    %135 = math.exp %134 : vector<16x32xf32>
    %cst_44 = arith.constant 1.000000e+00 : f32
    %136 = vector.broadcast %cst_44 : f32 to vector<16x32xf32>
    %137 = arith.addf %136, %135 : vector<16x32xf32>
    %138 = arith.divf %136, %137 : vector<16x32xf32>
    %139 = vector.extract_strided_slice %132 {offsets = [0, 32], sizes = [16, 32], strides = [1, 1]} : vector<16x128xf32> to vector<16x32xf32>
    %140 = arith.negf %139 : vector<16x32xf32>
    %141 = math.exp %140 : vector<16x32xf32>
    %cst_45 = arith.constant 1.000000e+00 : f32
    %142 = vector.broadcast %cst_45 : f32 to vector<16x32xf32>
    %143 = arith.addf %142, %141 : vector<16x32xf32>
    %144 = arith.divf %142, %143 : vector<16x32xf32>
    %145 = vector.extract_strided_slice %132 {offsets = [0, 64], sizes = [16, 32], strides = [1, 1]} : vector<16x128xf32> to vector<16x32xf32>
    %146 = math.tanh %145 : vector<16x32xf32>
    %147 = vector.extract_strided_slice %132 {offsets = [0, 96], sizes = [16, 32], strides = [1, 1]} : vector<16x128xf32> to vector<16x32xf32>
    %148 = arith.negf %147 : vector<16x32xf32>
    %149 = math.exp %148 : vector<16x32xf32>
    %cst_46 = arith.constant 1.000000e+00 : f32
    %150 = vector.broadcast %cst_46 : f32 to vector<16x32xf32>
    %151 = arith.addf %150, %149 : vector<16x32xf32>
    %152 = arith.divf %150, %151 : vector<16x32xf32>
    %153 = arith.mulf %144, %117 : vector<16x32xf32>
    %154 = arith.mulf %138, %146 : vector<16x32xf32>
    %155 = arith.addf %153, %154 : vector<16x32xf32>
    %156 = math.tanh %155 : vector<16x32xf32>
    %157 = arith.mulf %152, %156 : vector<16x32xf32>
    %158 = vector.extract_strided_slice %157 {offsets = [0, 0], sizes = [8, 32], strides = [1, 1]} : vector<16x32xf32> to vector<8x32xf32>
    %c24_47 = arith.constant 24 : index
    %c0_48 = arith.constant 0 : index
    %159 = vector.load %arg11[%c24_47, %c0_48] : memref<64x32xf32, #tpu.memory_space<vmem>>, vector<8x32xf32>
    tpu.vector_store %arg11[%c24_47, %c0_48], %158 {strides = array<i32>} : memref<64x32xf32, #tpu.memory_space<vmem>>, vector<8x32xf32>,
    %160 = vector.extract_strided_slice %157 {offsets = [8, 0], sizes = [8, 32], strides = [1, 1]} : vector<16x32xf32> to vector<8x32xf32>
    %c32_49 = arith.constant 32 : index
    %c0_50 = arith.constant 0 : index
    %161 = vector.load %arg12[%c32_49, %c0_50] : memref<64x32xf32, #tpu.memory_space<vmem>>, vector<8x32xf32>
    tpu.vector_store %arg12[%c32_49, %c0_50], %160 {strides = array<i32>} : memref<64x32xf32, #tpu.memory_space<vmem>>, vector<8x32xf32>,
    %162 = arith.truncf %157 : vector<16x32xf32> to vector<16x32xbf16>
    %cst_51 = arith.constant dense<0.000000e+00> : vector<16x256xf32>
    %163 = tpu.matmul %162, %7, %cst_51 {dimension_numbers = #tpu.dot_dimension_numbers<[1], [0], [0], [1], [0, 0, 1, 1], [], []>} : vector<16x32xbf16>, vector<32x256xbf16>, vector<16x256xf32> -> vector<16x256xf32>
    %c32_52 = arith.constant 32 : index
    %c0_53 = arith.constant 0 : index
    %164 = vector.load %arg10[%c32_52, %c0_53] : memref<64x256xf32, #tpu.memory_space<vmem>>, vector<8x128xf32>
    %165 = vector.extract_strided_slice %163 {offsets = [0, 0], sizes = [8, 128], strides = [1, 1]} : vector<16x256xf32> to vector<8x128xf32>
    %166 = arith.addf %164, %165 : vector<8x128xf32>
    %c24_54 = arith.constant 24 : index
    %c128_55 = arith.constant 128 : index
    %167 = vector.load %arg10[%c24_54, %c128_55] : memref<64x256xf32, #tpu.memory_space<vmem>>, vector<8x128xf32>
    %168 = vector.extract_strided_slice %163 {offsets = [8, 128], sizes = [8, 128], strides = [1, 1]} : vector<16x256xf32> to vector<8x128xf32>
    %169 = arith.addf %167, %168 : vector<8x128xf32>
    %170 = tpu.concatenate %166, %169 in 0 : vector<8x128xf32>, vector<8x128xf32> -> vector<16x128xf32>
    %171 = vector.extract_strided_slice %170 {offsets = [0, 0], sizes = [16, 32], strides = [1, 1]} : vector<16x128xf32> to vector<16x32xf32>
    %172 = arith.negf %171 : vector<16x32xf32>
    %173 = math.exp %172 : vector<16x32xf32>
    %cst_56 = arith.constant 1.000000e+00 : f32
    %174 = vector.broadcast %cst_56 : f32 to vector<16x32xf32>
    %175 = arith.addf %174, %173 : vector<16x32xf32>
    %176 = arith.divf %174, %175 : vector<16x32xf32>
    %177 = vector.extract_strided_slice %170 {offsets = [0, 32], sizes = [16, 32], strides = [1, 1]} : vector<16x128xf32> to vector<16x32xf32>
    %178 = arith.negf %177 : vector<16x32xf32>
    %179 = math.exp %178 : vector<16x32xf32>
    %cst_57 = arith.constant 1.000000e+00 : f32
    %180 = vector.broadcast %cst_57 : f32 to vector<16x32xf32>
    %181 = arith.addf %180, %179 : vector<16x32xf32>
    %182 = arith.divf %180, %181 : vector<16x32xf32>
    %183 = vector.extract_strided_slice %170 {offsets = [0, 64], sizes = [16, 32], strides = [1, 1]} : vector<16x128xf32> to vector<16x32xf32>
    %184 = math.tanh %183 : vector<16x32xf32>
    %185 = vector.extract_strided_slice %170 {offsets = [0, 96], sizes = [16, 32], strides = [1, 1]} : vector<16x128xf32> to vector<16x32xf32>
    %186 = arith.negf %185 : vector<16x32xf32>
    %187 = math.exp %186 : vector<16x32xf32>
    %cst_58 = arith.constant 1.000000e+00 : f32
    %188 = vector.broadcast %cst_58 : f32 to vector<16x32xf32>
    %189 = arith.addf %188, %187 : vector<16x32xf32>
    %190 = arith.divf %188, %189 : vector<16x32xf32>
    %191 = arith.mulf %182, %155 : vector<16x32xf32>
    %192 = arith.mulf %176, %184 : vector<16x32xf32>
    %193 = arith.addf %191, %192 : vector<16x32xf32>
    %194 = math.tanh %193 : vector<16x32xf32>
    %195 = arith.mulf %190, %194 : vector<16x32xf32>
    %196 = vector.extract_strided_slice %195 {offsets = [0, 0], sizes = [8, 32], strides = [1, 1]} : vector<16x32xf32> to vector<8x32xf32>
    %c32_59 = arith.constant 32 : index
    %c0_60 = arith.constant 0 : index
    %197 = vector.load %arg11[%c32_59, %c0_60] : memref<64x32xf32, #tpu.memory_space<vmem>>, vector<8x32xf32>
    tpu.vector_store %arg11[%c32_59, %c0_60], %196 {strides = array<i32>} : memref<64x32xf32, #tpu.memory_space<vmem>>, vector<8x32xf32>,
    %198 = vector.extract_strided_slice %195 {offsets = [8, 0], sizes = [8, 32], strides = [1, 1]} : vector<16x32xf32> to vector<8x32xf32>
    %c24_61 = arith.constant 24 : index
    %c0_62 = arith.constant 0 : index
    %199 = vector.load %arg12[%c24_61, %c0_62] : memref<64x32xf32, #tpu.memory_space<vmem>>, vector<8x32xf32>
    tpu.vector_store %arg12[%c24_61, %c0_62], %198 {strides = array<i32>} : memref<64x32xf32, #tpu.memory_space<vmem>>, vector<8x32xf32>,
    %200 = arith.truncf %195 : vector<16x32xf32> to vector<16x32xbf16>
    %cst_63 = arith.constant dense<0.000000e+00> : vector<16x256xf32>
    %201 = tpu.matmul %200, %7, %cst_63 {dimension_numbers = #tpu.dot_dimension_numbers<[1], [0], [0], [1], [0, 0, 1, 1], [], []>} : vector<16x32xbf16>, vector<32x256xbf16>, vector<16x256xf32> -> vector<16x256xf32>
    %c40_64 = arith.constant 40 : index
    %c0_65 = arith.constant 0 : index
    %202 = vector.load %arg10[%c40_64, %c0_65] : memref<64x256xf32, #tpu.memory_space<vmem>>, vector<8x128xf32>
    %203 = vector.extract_strided_slice %201 {offsets = [0, 0], sizes = [8, 128], strides = [1, 1]} : vector<16x256xf32> to vector<8x128xf32>
    %204 = arith.addf %202, %203 : vector<8x128xf32>
    %c16_66 = arith.constant 16 : index
    %c128_67 = arith.constant 128 : index
    %205 = vector.load %arg10[%c16_66, %c128_67] : memref<64x256xf32, #tpu.memory_space<vmem>>, vector<8x128xf32>
    %206 = vector.extract_strided_slice %201 {offsets = [8, 128], sizes = [8, 128], strides = [1, 1]} : vector<16x256xf32> to vector<8x128xf32>
    %207 = arith.addf %205, %206 : vector<8x128xf32>
    %208 = tpu.concatenate %204, %207 in 0 : vector<8x128xf32>, vector<8x128xf32> -> vector<16x128xf32>
    %209 = vector.extract_strided_slice %208 {offsets = [0, 0], sizes = [16, 32], strides = [1, 1]} : vector<16x128xf32> to vector<16x32xf32>
    %210 = arith.negf %209 : vector<16x32xf32>
    %211 = math.exp %210 : vector<16x32xf32>
    %cst_68 = arith.constant 1.000000e+00 : f32
    %212 = vector.broadcast %cst_68 : f32 to vector<16x32xf32>
    %213 = arith.addf %212, %211 : vector<16x32xf32>
    %214 = arith.divf %212, %213 : vector<16x32xf32>
    %215 = vector.extract_strided_slice %208 {offsets = [0, 32], sizes = [16, 32], strides = [1, 1]} : vector<16x128xf32> to vector<16x32xf32>
    %216 = arith.negf %215 : vector<16x32xf32>
    %217 = math.exp %216 : vector<16x32xf32>
    %cst_69 = arith.constant 1.000000e+00 : f32
    %218 = vector.broadcast %cst_69 : f32 to vector<16x32xf32>
    %219 = arith.addf %218, %217 : vector<16x32xf32>
    %220 = arith.divf %218, %219 : vector<16x32xf32>
    %221 = vector.extract_strided_slice %208 {offsets = [0, 64], sizes = [16, 32], strides = [1, 1]} : vector<16x128xf32> to vector<16x32xf32>
    %222 = math.tanh %221 : vector<16x32xf32>
    %223 = vector.extract_strided_slice %208 {offsets = [0, 96], sizes = [16, 32], strides = [1, 1]} : vector<16x128xf32> to vector<16x32xf32>
    %224 = arith.negf %223 : vector<16x32xf32>
    %225 = math.exp %224 : vector<16x32xf32>
    %cst_70 = arith.constant 1.000000e+00 : f32
    %226 = vector.broadcast %cst_70 : f32 to vector<16x32xf32>
    %227 = arith.addf %226, %225 : vector<16x32xf32>
    %228 = arith.divf %226, %227 : vector<16x32xf32>
    %229 = arith.mulf %220, %193 : vector<16x32xf32>
    %230 = arith.mulf %214, %222 : vector<16x32xf32>
    %231 = arith.addf %229, %230 : vector<16x32xf32>
    %232 = math.tanh %231 : vector<16x32xf32>
    %233 = arith.mulf %228, %232 : vector<16x32xf32>
    %234 = vector.extract_strided_slice %233 {offsets = [0, 0], sizes = [8, 32], strides = [1, 1]} : vector<16x32xf32> to vector<8x32xf32>
    %c40_71 = arith.constant 40 : index
    %c0_72 = arith.constant 0 : index
    %235 = vector.load %arg11[%c40_71, %c0_72] : memref<64x32xf32, #tpu.memory_space<vmem>>, vector<8x32xf32>
    tpu.vector_store %arg11[%c40_71, %c0_72], %234 {strides = array<i32>} : memref<64x32xf32, #tpu.memory_space<vmem>>, vector<8x32xf32>,
    %236 = vector.extract_strided_slice %233 {offsets = [8, 0], sizes = [8, 32], strides = [1, 1]} : vector<16x32xf32> to vector<8x32xf32>
    %c16_73 = arith.constant 16 : index
    %c0_74 = arith.constant 0 : index
    %237 = vector.load %arg12[%c16_73, %c0_74] : memref<64x32xf32, #tpu.memory_space<vmem>>, vector<8x32xf32>
    tpu.vector_store %arg12[%c16_73, %c0_74], %236 {strides = array<i32>} : memref<64x32xf32, #tpu.memory_space<vmem>>, vector<8x32xf32>,
    %238 = arith.truncf %233 : vector<16x32xf32> to vector<16x32xbf16>
    %cst_75 = arith.constant dense<0.000000e+00> : vector<16x256xf32>
    %239 = tpu.matmul %238, %7, %cst_75 {dimension_numbers = #tpu.dot_dimension_numbers<[1], [0], [0], [1], [0, 0, 1, 1], [], []>} : vector<16x32xbf16>, vector<32x256xbf16>, vector<16x256xf32> -> vector<16x256xf32>
    %c48_76 = arith.constant 48 : index
    %c0_77 = arith.constant 0 : index
    %240 = vector.load %arg10[%c48_76, %c0_77] : memref<64x256xf32, #tpu.memory_space<vmem>>, vector<8x128xf32>
    %241 = vector.extract_strided_slice %239 {offsets = [0, 0], sizes = [8, 128], strides = [1, 1]} : vector<16x256xf32> to vector<8x128xf32>
    %242 = arith.addf %240, %241 : vector<8x128xf32>
    %c8_78 = arith.constant 8 : index
    %c128_79 = arith.constant 128 : index
    %243 = vector.load %arg10[%c8_78, %c128_79] : memref<64x256xf32, #tpu.memory_space<vmem>>, vector<8x128xf32>
    %244 = vector.extract_strided_slice %239 {offsets = [8, 128], sizes = [8, 128], strides = [1, 1]} : vector<16x256xf32> to vector<8x128xf32>
    %245 = arith.addf %243, %244 : vector<8x128xf32>
    %246 = tpu.concatenate %242, %245 in 0 : vector<8x128xf32>, vector<8x128xf32> -> vector<16x128xf32>
    %247 = vector.extract_strided_slice %246 {offsets = [0, 0], sizes = [16, 32], strides = [1, 1]} : vector<16x128xf32> to vector<16x32xf32>
    %248 = arith.negf %247 : vector<16x32xf32>
    %249 = math.exp %248 : vector<16x32xf32>
    %cst_80 = arith.constant 1.000000e+00 : f32
    %250 = vector.broadcast %cst_80 : f32 to vector<16x32xf32>
    %251 = arith.addf %250, %249 : vector<16x32xf32>
    %252 = arith.divf %250, %251 : vector<16x32xf32>
    %253 = vector.extract_strided_slice %246 {offsets = [0, 32], sizes = [16, 32], strides = [1, 1]} : vector<16x128xf32> to vector<16x32xf32>
    %254 = arith.negf %253 : vector<16x32xf32>
    %255 = math.exp %254 : vector<16x32xf32>
    %cst_81 = arith.constant 1.000000e+00 : f32
    %256 = vector.broadcast %cst_81 : f32 to vector<16x32xf32>
    %257 = arith.addf %256, %255 : vector<16x32xf32>
    %258 = arith.divf %256, %257 : vector<16x32xf32>
    %259 = vector.extract_strided_slice %246 {offsets = [0, 64], sizes = [16, 32], strides = [1, 1]} : vector<16x128xf32> to vector<16x32xf32>
    %260 = math.tanh %259 : vector<16x32xf32>
    %261 = vector.extract_strided_slice %246 {offsets = [0, 96], sizes = [16, 32], strides = [1, 1]} : vector<16x128xf32> to vector<16x32xf32>
    %262 = arith.negf %261 : vector<16x32xf32>
    %263 = math.exp %262 : vector<16x32xf32>
    %cst_82 = arith.constant 1.000000e+00 : f32
    %264 = vector.broadcast %cst_82 : f32 to vector<16x32xf32>
    %265 = arith.addf %264, %263 : vector<16x32xf32>
    %266 = arith.divf %264, %265 : vector<16x32xf32>
    %267 = arith.mulf %258, %231 : vector<16x32xf32>
    %268 = arith.mulf %252, %260 : vector<16x32xf32>
    %269 = arith.addf %267, %268 : vector<16x32xf32>
    %270 = math.tanh %269 : vector<16x32xf32>
    %271 = arith.mulf %266, %270 : vector<16x32xf32>
    %272 = vector.extract_strided_slice %271 {offsets = [0, 0], sizes = [8, 32], strides = [1, 1]} : vector<16x32xf32> to vector<8x32xf32>
    %c48_83 = arith.constant 48 : index
    %c0_84 = arith.constant 0 : index
    %273 = vector.load %arg11[%c48_83, %c0_84] : memref<64x32xf32, #tpu.memory_space<vmem>>, vector<8x32xf32>
    tpu.vector_store %arg11[%c48_83, %c0_84], %272 {strides = array<i32>} : memref<64x32xf32, #tpu.memory_space<vmem>>, vector<8x32xf32>,
    %274 = vector.extract_strided_slice %271 {offsets = [8, 0], sizes = [8, 32], strides = [1, 1]} : vector<16x32xf32> to vector<8x32xf32>
    %c8_85 = arith.constant 8 : index
    %c0_86 = arith.constant 0 : index
    %275 = vector.load %arg12[%c8_85, %c0_86] : memref<64x32xf32, #tpu.memory_space<vmem>>, vector<8x32xf32>
    tpu.vector_store %arg12[%c8_85, %c0_86], %274 {strides = array<i32>} : memref<64x32xf32, #tpu.memory_space<vmem>>, vector<8x32xf32>,
    %276 = arith.truncf %271 : vector<16x32xf32> to vector<16x32xbf16>
    %cst_87 = arith.constant dense<0.000000e+00> : vector<16x256xf32>
    %277 = tpu.matmul %276, %7, %cst_87 {dimension_numbers = #tpu.dot_dimension_numbers<[1], [0], [0], [1], [0, 0, 1, 1], [], []>} : vector<16x32xbf16>, vector<32x256xbf16>, vector<16x256xf32> -> vector<16x256xf32>
    %c56_88 = arith.constant 56 : index
    %c0_89 = arith.constant 0 : index
    %278 = vector.load %arg10[%c56_88, %c0_89] : memref<64x256xf32, #tpu.memory_space<vmem>>, vector<8x128xf32>
    %279 = vector.extract_strided_slice %277 {offsets = [0, 0], sizes = [8, 128], strides = [1, 1]} : vector<16x256xf32> to vector<8x128xf32>
    %280 = arith.addf %278, %279 : vector<8x128xf32>
    %c0_90 = arith.constant 0 : index
    %c128_91 = arith.constant 128 : index
    %281 = vector.load %arg10[%c0_90, %c128_91] : memref<64x256xf32, #tpu.memory_space<vmem>>, vector<8x128xf32>
    %282 = vector.extract_strided_slice %277 {offsets = [8, 128], sizes = [8, 128], strides = [1, 1]} : vector<16x256xf32> to vector<8x128xf32>
    %283 = arith.addf %281, %282 : vector<8x128xf32>
    %284 = tpu.concatenate %280, %283 in 0 : vector<8x128xf32>, vector<8x128xf32> -> vector<16x128xf32>
    %285 = vector.extract_strided_slice %284 {offsets = [0, 0], sizes = [16, 32], strides = [1, 1]} : vector<16x128xf32> to vector<16x32xf32>
    %286 = arith.negf %285 : vector<16x32xf32>
    %287 = math.exp %286 : vector<16x32xf32>
    %cst_92 = arith.constant 1.000000e+00 : f32
    %288 = vector.broadcast %cst_92 : f32 to vector<16x32xf32>
    %289 = arith.addf %288, %287 : vector<16x32xf32>
    %290 = arith.divf %288, %289 : vector<16x32xf32>
    %291 = vector.extract_strided_slice %284 {offsets = [0, 32], sizes = [16, 32], strides = [1, 1]} : vector<16x128xf32> to vector<16x32xf32>
    %292 = arith.negf %291 : vector<16x32xf32>
    %293 = math.exp %292 : vector<16x32xf32>
    %cst_93 = arith.constant 1.000000e+00 : f32
    %294 = vector.broadcast %cst_93 : f32 to vector<16x32xf32>
    %295 = arith.addf %294, %293 : vector<16x32xf32>
    %296 = arith.divf %294, %295 : vector<16x32xf32>
    %297 = vector.extract_strided_slice %284 {offsets = [0, 64], sizes = [16, 32], strides = [1, 1]} : vector<16x128xf32> to vector<16x32xf32>
    %298 = math.tanh %297 : vector<16x32xf32>
    %299 = vector.extract_strided_slice %284 {offsets = [0, 96], sizes = [16, 32], strides = [1, 1]} : vector<16x128xf32> to vector<16x32xf32>
    %300 = arith.negf %299 : vector<16x32xf32>
    %301 = math.exp %300 : vector<16x32xf32>
    %cst_94 = arith.constant 1.000000e+00 : f32
    %302 = vector.broadcast %cst_94 : f32 to vector<16x32xf32>
    %303 = arith.addf %302, %301 : vector<16x32xf32>
    %304 = arith.divf %302, %303 : vector<16x32xf32>
    %305 = arith.mulf %296, %269 : vector<16x32xf32>
    %306 = arith.mulf %290, %298 : vector<16x32xf32>
    %307 = arith.addf %305, %306 : vector<16x32xf32>
    %308 = math.tanh %307 : vector<16x32xf32>
    %309 = arith.mulf %304, %308 : vector<16x32xf32>
    %310 = vector.extract_strided_slice %309 {offsets = [0, 0], sizes = [8, 32], strides = [1, 1]} : vector<16x32xf32> to vector<8x32xf32>
    %c56_95 = arith.constant 56 : index
    %c0_96 = arith.constant 0 : index
    %311 = vector.load %arg11[%c56_95, %c0_96] : memref<64x32xf32, #tpu.memory_space<vmem>>, vector<8x32xf32>
    tpu.vector_store %arg11[%c56_95, %c0_96], %310 {strides = array<i32>} : memref<64x32xf32, #tpu.memory_space<vmem>>, vector<8x32xf32>,
    %312 = vector.extract_strided_slice %309 {offsets = [8, 0], sizes = [8, 32], strides = [1, 1]} : vector<16x32xf32> to vector<8x32xf32>
    %c0_97 = arith.constant 0 : index
    %c0_98 = arith.constant 0 : index
    %313 = vector.load %arg12[%c0_97, %c0_98] : memref<64x32xf32, #tpu.memory_space<vmem>>, vector<8x32xf32>
    tpu.vector_store %arg12[%c0_97, %c0_98], %312 {strides = array<i32>} : memref<64x32xf32, #tpu.memory_space<vmem>>, vector<8x32xf32>,
    %c0_99 = arith.constant 0 : index
    %c0_100 = arith.constant 0 : index
    %314 = vector.load %arg4[%c0_99, %c0_100] : memref<64x256xbf16, #tpu.memory_space<vmem>>, vector<64x256xbf16>
    %c0_101 = arith.constant 0 : index
    %c0_102 = arith.constant 0 : index
    %315 = vector.load %arg11[%c0_101, %c0_102] : memref<64x32xf32, #tpu.memory_space<vmem>>, vector<64x32xf32>
    %316 = arith.truncf %315 : vector<64x32xf32> to vector<64x32xbf16>
    %317 = vector.extract_strided_slice %314 {offsets = [0, 0], sizes = [32, 256], strides = [1, 1]} : vector<64x256xbf16> to vector<32x256xbf16>
    %cst_103 = arith.constant dense<0.000000e+00> : vector<64x256xf32>
    %318 = tpu.matmul %316, %317, %cst_103 {dimension_numbers = #tpu.dot_dimension_numbers<[1], [0], [0], [1], [0, 0, 1, 1], [], []>} : vector<64x32xbf16>, vector<32x256xbf16>, vector<64x256xf32> -> vector<64x256xf32>
    %c0_104 = arith.constant 0 : index
    %c0_105 = arith.constant 0 : index
    %319 = vector.load %arg12[%c0_104, %c0_105] : memref<64x32xf32, #tpu.memory_space<vmem>>, vector<64x32xf32>
    %320 = arith.truncf %319 : vector<64x32xf32> to vector<64x32xbf16>
    %321 = vector.extract_strided_slice %314 {offsets = [32, 0], sizes = [32, 256], strides = [1, 1]} : vector<64x256xbf16> to vector<32x256xbf16>
    %cst_106 = arith.constant dense<0.000000e+00> : vector<64x256xf32>
    %322 = tpu.matmul %320, %321, %cst_106 {dimension_numbers = #tpu.dot_dimension_numbers<[1], [0], [0], [1], [0, 0, 1, 1], [], []>} : vector<64x32xbf16>, vector<32x256xbf16>, vector<64x256xf32> -> vector<64x256xf32>
    %323 = arith.addf %318, %322 : vector<64x256xf32>
    %c0_107 = arith.constant 0 : index
    %c0_108 = arith.constant 0 : index
    %324 = vector.load %arg6[%c0_107, %c0_108] : memref<1x256xf32, #tpu.memory_space<vmem>>, vector<1x256xf32>
    %325 = vector.broadcast %324 : vector<1x256xf32> to vector<64x256xf32>
    %326 = arith.addf %323, %325 : vector<64x256xf32>
    %c0_109 = arith.constant 0 : index
    %c0_110 = arith.constant 0 : index
    %327 = vector.load %arg10[%c0_109, %c0_110] : memref<64x256xf32, #tpu.memory_space<vmem>>, vector<64x256xf32>
    tpu.vector_store %arg10[%c0_109, %c0_110], %326 {strides = array<i32>} : memref<64x256xf32, #tpu.memory_space<vmem>>, vector<64x256xf32>,
    %c0_111 = arith.constant 0 : index
    %c0_112 = arith.constant 0 : index
    %328 = vector.load %arg5[%c0_111, %c0_112] : memref<32x256xbf16, #tpu.memory_space<vmem>>, vector<32x256xbf16>
    %cst_113 = arith.constant 0.000000e+00 : f32
    %329 = vector.broadcast %cst_113 : f32 to vector<16x32xf32>
    %cst_114 = arith.constant 0.000000e+00 : f32
    %330 = vector.broadcast %cst_114 : f32 to vector<16x32xf32>
    %331 = arith.truncf %329 : vector<16x32xf32> to vector<16x32xbf16>
    %cst_115 = arith.constant dense<0.000000e+00> : vector<16x256xf32>
    %332 = tpu.matmul %331, %328, %cst_115 {dimension_numbers = #tpu.dot_dimension_numbers<[1], [0], [0], [1], [0, 0, 1, 1], [], []>} : vector<16x32xbf16>, vector<32x256xbf16>, vector<16x256xf32> -> vector<16x256xf32>
    %c0_116 = arith.constant 0 : index
    %c0_117 = arith.constant 0 : index
    %333 = vector.load %arg10[%c0_116, %c0_117] : memref<64x256xf32, #tpu.memory_space<vmem>>, vector<8x128xf32>
    %334 = vector.extract_strided_slice %332 {offsets = [0, 0], sizes = [8, 128], strides = [1, 1]} : vector<16x256xf32> to vector<8x128xf32>
    %335 = arith.addf %333, %334 : vector<8x128xf32>
    %c56_118 = arith.constant 56 : index
    %c128_119 = arith.constant 128 : index
    %336 = vector.load %arg10[%c56_118, %c128_119] : memref<64x256xf32, #tpu.memory_space<vmem>>, vector<8x128xf32>
    %337 = vector.extract_strided_slice %332 {offsets = [8, 128], sizes = [8, 128], strides = [1, 1]} : vector<16x256xf32> to vector<8x128xf32>
    %338 = arith.addf %336, %337 : vector<8x128xf32>
    %339 = tpu.concatenate %335, %338 in 0 : vector<8x128xf32>, vector<8x128xf32> -> vector<16x128xf32>
    %340 = vector.extract_strided_slice %339 {offsets = [0, 0], sizes = [16, 32], strides = [1, 1]} : vector<16x128xf32> to vector<16x32xf32>
    %341 = arith.negf %340 : vector<16x32xf32>
    %342 = math.exp %341 : vector<16x32xf32>
    %cst_120 = arith.constant 1.000000e+00 : f32
    %343 = vector.broadcast %cst_120 : f32 to vector<16x32xf32>
    %344 = arith.addf %343, %342 : vector<16x32xf32>
    %345 = arith.divf %343, %344 : vector<16x32xf32>
    %346 = vector.extract_strided_slice %339 {offsets = [0, 32], sizes = [16, 32], strides = [1, 1]} : vector<16x128xf32> to vector<16x32xf32>
    %347 = arith.negf %346 : vector<16x32xf32>
    %348 = math.exp %347 : vector<16x32xf32>
    %cst_121 = arith.constant 1.000000e+00 : f32
    %349 = vector.broadcast %cst_121 : f32 to vector<16x32xf32>
    %350 = arith.addf %349, %348 : vector<16x32xf32>
    %351 = arith.divf %349, %350 : vector<16x32xf32>
    %352 = vector.extract_strided_slice %339 {offsets = [0, 64], sizes = [16, 32], strides = [1, 1]} : vector<16x128xf32> to vector<16x32xf32>
    %353 = math.tanh %352 : vector<16x32xf32>
    %354 = vector.extract_strided_slice %339 {offsets = [0, 96], sizes = [16, 32], strides = [1, 1]} : vector<16x128xf32> to vector<16x32xf32>
    %355 = arith.negf %354 : vector<16x32xf32>
    %356 = math.exp %355 : vector<16x32xf32>
    %cst_122 = arith.constant 1.000000e+00 : f32
    %357 = vector.broadcast %cst_122 : f32 to vector<16x32xf32>
    %358 = arith.addf %357, %356 : vector<16x32xf32>
    %359 = arith.divf %357, %358 : vector<16x32xf32>
    %360 = arith.mulf %351, %330 : vector<16x32xf32>
    %361 = arith.mulf %345, %353 : vector<16x32xf32>
    %362 = arith.addf %360, %361 : vector<16x32xf32>
    %363 = math.tanh %362 : vector<16x32xf32>
    %364 = arith.mulf %359, %363 : vector<16x32xf32>
    %365 = vector.extract_strided_slice %364 {offsets = [0, 0], sizes = [8, 32], strides = [1, 1]} : vector<16x32xf32> to vector<8x32xf32>
    %c0_123 = arith.constant 0 : index
    %c0_124 = arith.constant 0 : index
    %366 = vector.load %arg13[%c0_123, %c0_124] : memref<64x32xf32, #tpu.memory_space<vmem>>, vector<8x32xf32>
    tpu.vector_store %arg13[%c0_123, %c0_124], %365 {strides = array<i32>} : memref<64x32xf32, #tpu.memory_space<vmem>>, vector<8x32xf32>,
    %367 = vector.extract_strided_slice %364 {offsets = [8, 0], sizes = [8, 32], strides = [1, 1]} : vector<16x32xf32> to vector<8x32xf32>
    %c56_125 = arith.constant 56 : index
    %c0_126 = arith.constant 0 : index
    %368 = vector.load %arg14[%c56_125, %c0_126] : memref<64x32xf32, #tpu.memory_space<vmem>>, vector<8x32xf32>
    tpu.vector_store %arg14[%c56_125, %c0_126], %367 {strides = array<i32>} : memref<64x32xf32, #tpu.memory_space<vmem>>, vector<8x32xf32>,
    %369 = arith.truncf %364 : vector<16x32xf32> to vector<16x32xbf16>
    %cst_127 = arith.constant dense<0.000000e+00> : vector<16x256xf32>
    %370 = tpu.matmul %369, %328, %cst_127 {dimension_numbers = #tpu.dot_dimension_numbers<[1], [0], [0], [1], [0, 0, 1, 1], [], []>} : vector<16x32xbf16>, vector<32x256xbf16>, vector<16x256xf32> -> vector<16x256xf32>
    %c8_128 = arith.constant 8 : index
    %c0_129 = arith.constant 0 : index
    %371 = vector.load %arg10[%c8_128, %c0_129] : memref<64x256xf32, #tpu.memory_space<vmem>>, vector<8x128xf32>
    %372 = vector.extract_strided_slice %370 {offsets = [0, 0], sizes = [8, 128], strides = [1, 1]} : vector<16x256xf32> to vector<8x128xf32>
    %373 = arith.addf %371, %372 : vector<8x128xf32>
    %c48_130 = arith.constant 48 : index
    %c128_131 = arith.constant 128 : index
    %374 = vector.load %arg10[%c48_130, %c128_131] : memref<64x256xf32, #tpu.memory_space<vmem>>, vector<8x128xf32>
    %375 = vector.extract_strided_slice %370 {offsets = [8, 128], sizes = [8, 128], strides = [1, 1]} : vector<16x256xf32> to vector<8x128xf32>
    %376 = arith.addf %374, %375 : vector<8x128xf32>
    %377 = tpu.concatenate %373, %376 in 0 : vector<8x128xf32>, vector<8x128xf32> -> vector<16x128xf32>
    %378 = vector.extract_strided_slice %377 {offsets = [0, 0], sizes = [16, 32], strides = [1, 1]} : vector<16x128xf32> to vector<16x32xf32>
    %379 = arith.negf %378 : vector<16x32xf32>
    %380 = math.exp %379 : vector<16x32xf32>
    %cst_132 = arith.constant 1.000000e+00 : f32
    %381 = vector.broadcast %cst_132 : f32 to vector<16x32xf32>
    %382 = arith.addf %381, %380 : vector<16x32xf32>
    %383 = arith.divf %381, %382 : vector<16x32xf32>
    %384 = vector.extract_strided_slice %377 {offsets = [0, 32], sizes = [16, 32], strides = [1, 1]} : vector<16x128xf32> to vector<16x32xf32>
    %385 = arith.negf %384 : vector<16x32xf32>
    %386 = math.exp %385 : vector<16x32xf32>
    %cst_133 = arith.constant 1.000000e+00 : f32
    %387 = vector.broadcast %cst_133 : f32 to vector<16x32xf32>
    %388 = arith.addf %387, %386 : vector<16x32xf32>
    %389 = arith.divf %387, %388 : vector<16x32xf32>
    %390 = vector.extract_strided_slice %377 {offsets = [0, 64], sizes = [16, 32], strides = [1, 1]} : vector<16x128xf32> to vector<16x32xf32>
    %391 = math.tanh %390 : vector<16x32xf32>
    %392 = vector.extract_strided_slice %377 {offsets = [0, 96], sizes = [16, 32], strides = [1, 1]} : vector<16x128xf32> to vector<16x32xf32>
    %393 = arith.negf %392 : vector<16x32xf32>
    %394 = math.exp %393 : vector<16x32xf32>
    %cst_134 = arith.constant 1.000000e+00 : f32
    %395 = vector.broadcast %cst_134 : f32 to vector<16x32xf32>
    %396 = arith.addf %395, %394 : vector<16x32xf32>
    %397 = arith.divf %395, %396 : vector<16x32xf32>
    %398 = arith.mulf %389, %362 : vector<16x32xf32>
    %399 = arith.mulf %383, %391 : vector<16x32xf32>
    %400 = arith.addf %398, %399 : vector<16x32xf32>
    %401 = math.tanh %400 : vector<16x32xf32>
    %402 = arith.mulf %397, %401 : vector<16x32xf32>
    %403 = vector.extract_strided_slice %402 {offsets = [0, 0], sizes = [8, 32], strides = [1, 1]} : vector<16x32xf32> to vector<8x32xf32>
    %c8_135 = arith.constant 8 : index
    %c0_136 = arith.constant 0 : index
    %404 = vector.load %arg13[%c8_135, %c0_136] : memref<64x32xf32, #tpu.memory_space<vmem>>, vector<8x32xf32>
    tpu.vector_store %arg13[%c8_135, %c0_136], %403 {strides = array<i32>} : memref<64x32xf32, #tpu.memory_space<vmem>>, vector<8x32xf32>,
    %405 = vector.extract_strided_slice %402 {offsets = [8, 0], sizes = [8, 32], strides = [1, 1]} : vector<16x32xf32> to vector<8x32xf32>
    %c48_137 = arith.constant 48 : index
    %c0_138 = arith.constant 0 : index
    %406 = vector.load %arg14[%c48_137, %c0_138] : memref<64x32xf32, #tpu.memory_space<vmem>>, vector<8x32xf32>
    tpu.vector_store %arg14[%c48_137, %c0_138], %405 {strides = array<i32>} : memref<64x32xf32, #tpu.memory_space<vmem>>, vector<8x32xf32>,
    %407 = arith.truncf %402 : vector<16x32xf32> to vector<16x32xbf16>
    %cst_139 = arith.constant dense<0.000000e+00> : vector<16x256xf32>
    %408 = tpu.matmul %407, %328, %cst_139 {dimension_numbers = #tpu.dot_dimension_numbers<[1], [0], [0], [1], [0, 0, 1, 1], [], []>} : vector<16x32xbf16>, vector<32x256xbf16>, vector<16x256xf32> -> vector<16x256xf32>
    %c16_140 = arith.constant 16 : index
    %c0_141 = arith.constant 0 : index
    %409 = vector.load %arg10[%c16_140, %c0_141] : memref<64x256xf32, #tpu.memory_space<vmem>>, vector<8x128xf32>
    %410 = vector.extract_strided_slice %408 {offsets = [0, 0], sizes = [8, 128], strides = [1, 1]} : vector<16x256xf32> to vector<8x128xf32>
    %411 = arith.addf %409, %410 : vector<8x128xf32>
    %c40_142 = arith.constant 40 : index
    %c128_143 = arith.constant 128 : index
    %412 = vector.load %arg10[%c40_142, %c128_143] : memref<64x256xf32, #tpu.memory_space<vmem>>, vector<8x128xf32>
    %413 = vector.extract_strided_slice %408 {offsets = [8, 128], sizes = [8, 128], strides = [1, 1]} : vector<16x256xf32> to vector<8x128xf32>
    %414 = arith.addf %412, %413 : vector<8x128xf32>
    %415 = tpu.concatenate %411, %414 in 0 : vector<8x128xf32>, vector<8x128xf32> -> vector<16x128xf32>
    %416 = vector.extract_strided_slice %415 {offsets = [0, 0], sizes = [16, 32], strides = [1, 1]} : vector<16x128xf32> to vector<16x32xf32>
    %417 = arith.negf %416 : vector<16x32xf32>
    %418 = math.exp %417 : vector<16x32xf32>
    %cst_144 = arith.constant 1.000000e+00 : f32
    %419 = vector.broadcast %cst_144 : f32 to vector<16x32xf32>
    %420 = arith.addf %419, %418 : vector<16x32xf32>
    %421 = arith.divf %419, %420 : vector<16x32xf32>
    %422 = vector.extract_strided_slice %415 {offsets = [0, 32], sizes = [16, 32], strides = [1, 1]} : vector<16x128xf32> to vector<16x32xf32>
    %423 = arith.negf %422 : vector<16x32xf32>
    %424 = math.exp %423 : vector<16x32xf32>
    %cst_145 = arith.constant 1.000000e+00 : f32
    %425 = vector.broadcast %cst_145 : f32 to vector<16x32xf32>
    %426 = arith.addf %425, %424 : vector<16x32xf32>
    %427 = arith.divf %425, %426 : vector<16x32xf32>
    %428 = vector.extract_strided_slice %415 {offsets = [0, 64], sizes = [16, 32], strides = [1, 1]} : vector<16x128xf32> to vector<16x32xf32>
    %429 = math.tanh %428 : vector<16x32xf32>
    %430 = vector.extract_strided_slice %415 {offsets = [0, 96], sizes = [16, 32], strides = [1, 1]} : vector<16x128xf32> to vector<16x32xf32>
    %431 = arith.negf %430 : vector<16x32xf32>
    %432 = math.exp %431 : vector<16x32xf32>
    %cst_146 = arith.constant 1.000000e+00 : f32
    %433 = vector.broadcast %cst_146 : f32 to vector<16x32xf32>
    %434 = arith.addf %433, %432 : vector<16x32xf32>
    %435 = arith.divf %433, %434 : vector<16x32xf32>
    %436 = arith.mulf %427, %400 : vector<16x32xf32>
    %437 = arith.mulf %421, %429 : vector<16x32xf32>
    %438 = arith.addf %436, %437 : vector<16x32xf32>
    %439 = math.tanh %438 : vector<16x32xf32>
    %440 = arith.mulf %435, %439 : vector<16x32xf32>
    %441 = vector.extract_strided_slice %440 {offsets = [0, 0], sizes = [8, 32], strides = [1, 1]} : vector<16x32xf32> to vector<8x32xf32>
    %c16_147 = arith.constant 16 : index
    %c0_148 = arith.constant 0 : index
    %442 = vector.load %arg13[%c16_147, %c0_148] : memref<64x32xf32, #tpu.memory_space<vmem>>, vector<8x32xf32>
    tpu.vector_store %arg13[%c16_147, %c0_148], %441 {strides = array<i32>} : memref<64x32xf32, #tpu.memory_space<vmem>>, vector<8x32xf32>,
    %443 = vector.extract_strided_slice %440 {offsets = [8, 0], sizes = [8, 32], strides = [1, 1]} : vector<16x32xf32> to vector<8x32xf32>
    %c40_149 = arith.constant 40 : index
    %c0_150 = arith.constant 0 : index
    %444 = vector.load %arg14[%c40_149, %c0_150] : memref<64x32xf32, #tpu.memory_space<vmem>>, vector<8x32xf32>
    tpu.vector_store %arg14[%c40_149, %c0_150], %443 {strides = array<i32>} : memref<64x32xf32, #tpu.memory_space<vmem>>, vector<8x32xf32>,
    %445 = arith.truncf %440 : vector<16x32xf32> to vector<16x32xbf16>
    %cst_151 = arith.constant dense<0.000000e+00> : vector<16x256xf32>
    %446 = tpu.matmul %445, %328, %cst_151 {dimension_numbers = #tpu.dot_dimension_numbers<[1], [0], [0], [1], [0, 0, 1, 1], [], []>} : vector<16x32xbf16>, vector<32x256xbf16>, vector<16x256xf32> -> vector<16x256xf32>
    %c24_152 = arith.constant 24 : index
    %c0_153 = arith.constant 0 : index
    %447 = vector.load %arg10[%c24_152, %c0_153] : memref<64x256xf32, #tpu.memory_space<vmem>>, vector<8x128xf32>
    %448 = vector.extract_strided_slice %446 {offsets = [0, 0], sizes = [8, 128], strides = [1, 1]} : vector<16x256xf32> to vector<8x128xf32>
    %449 = arith.addf %447, %448 : vector<8x128xf32>
    %c32_154 = arith.constant 32 : index
    %c128_155 = arith.constant 128 : index
    %450 = vector.load %arg10[%c32_154, %c128_155] : memref<64x256xf32, #tpu.memory_space<vmem>>, vector<8x128xf32>
    %451 = vector.extract_strided_slice %446 {offsets = [8, 128], sizes = [8, 128], strides = [1, 1]} : vector<16x256xf32> to vector<8x128xf32>
    %452 = arith.addf %450, %451 : vector<8x128xf32>
    %453 = tpu.concatenate %449, %452 in 0 : vector<8x128xf32>, vector<8x128xf32> -> vector<16x128xf32>
    %454 = vector.extract_strided_slice %453 {offsets = [0, 0], sizes = [16, 32], strides = [1, 1]} : vector<16x128xf32> to vector<16x32xf32>
    %455 = arith.negf %454 : vector<16x32xf32>
    %456 = math.exp %455 : vector<16x32xf32>
    %cst_156 = arith.constant 1.000000e+00 : f32
    %457 = vector.broadcast %cst_156 : f32 to vector<16x32xf32>
    %458 = arith.addf %457, %456 : vector<16x32xf32>
    %459 = arith.divf %457, %458 : vector<16x32xf32>
    %460 = vector.extract_strided_slice %453 {offsets = [0, 32], sizes = [16, 32], strides = [1, 1]} : vector<16x128xf32> to vector<16x32xf32>
    %461 = arith.negf %460 : vector<16x32xf32>
    %462 = math.exp %461 : vector<16x32xf32>
    %cst_157 = arith.constant 1.000000e+00 : f32
    %463 = vector.broadcast %cst_157 : f32 to vector<16x32xf32>
    %464 = arith.addf %463, %462 : vector<16x32xf32>
    %465 = arith.divf %463, %464 : vector<16x32xf32>
    %466 = vector.extract_strided_slice %453 {offsets = [0, 64], sizes = [16, 32], strides = [1, 1]} : vector<16x128xf32> to vector<16x32xf32>
    %467 = math.tanh %466 : vector<16x32xf32>
    %468 = vector.extract_strided_slice %453 {offsets = [0, 96], sizes = [16, 32], strides = [1, 1]} : vector<16x128xf32> to vector<16x32xf32>
    %469 = arith.negf %468 : vector<16x32xf32>
    %470 = math.exp %469 : vector<16x32xf32>
    %cst_158 = arith.constant 1.000000e+00 : f32
    %471 = vector.broadcast %cst_158 : f32 to vector<16x32xf32>
    %472 = arith.addf %471, %470 : vector<16x32xf32>
    %473 = arith.divf %471, %472 : vector<16x32xf32>
    %474 = arith.mulf %465, %438 : vector<16x32xf32>
    %475 = arith.mulf %459, %467 : vector<16x32xf32>
    %476 = arith.addf %474, %475 : vector<16x32xf32>
    %477 = math.tanh %476 : vector<16x32xf32>
    %478 = arith.mulf %473, %477 : vector<16x32xf32>
    %479 = vector.extract_strided_slice %478 {offsets = [0, 0], sizes = [8, 32], strides = [1, 1]} : vector<16x32xf32> to vector<8x32xf32>
    %c24_159 = arith.constant 24 : index
    %c0_160 = arith.constant 0 : index
    %480 = vector.load %arg13[%c24_159, %c0_160] : memref<64x32xf32, #tpu.memory_space<vmem>>, vector<8x32xf32>
    tpu.vector_store %arg13[%c24_159, %c0_160], %479 {strides = array<i32>} : memref<64x32xf32, #tpu.memory_space<vmem>>, vector<8x32xf32>,
    %481 = vector.extract_strided_slice %478 {offsets = [8, 0], sizes = [8, 32], strides = [1, 1]} : vector<16x32xf32> to vector<8x32xf32>
    %c32_161 = arith.constant 32 : index
    %c0_162 = arith.constant 0 : index
    %482 = vector.load %arg14[%c32_161, %c0_162] : memref<64x32xf32, #tpu.memory_space<vmem>>, vector<8x32xf32>
    tpu.vector_store %arg14[%c32_161, %c0_162], %481 {strides = array<i32>} : memref<64x32xf32, #tpu.memory_space<vmem>>, vector<8x32xf32>,
    %483 = arith.truncf %478 : vector<16x32xf32> to vector<16x32xbf16>
    %cst_163 = arith.constant dense<0.000000e+00> : vector<16x256xf32>
    %484 = tpu.matmul %483, %328, %cst_163 {dimension_numbers = #tpu.dot_dimension_numbers<[1], [0], [0], [1], [0, 0, 1, 1], [], []>} : vector<16x32xbf16>, vector<32x256xbf16>, vector<16x256xf32> -> vector<16x256xf32>
    %c32_164 = arith.constant 32 : index
    %c0_165 = arith.constant 0 : index
    %485 = vector.load %arg10[%c32_164, %c0_165] : memref<64x256xf32, #tpu.memory_space<vmem>>, vector<8x128xf32>
    %486 = vector.extract_strided_slice %484 {offsets = [0, 0], sizes = [8, 128], strides = [1, 1]} : vector<16x256xf32> to vector<8x128xf32>
    %487 = arith.addf %485, %486 : vector<8x128xf32>
    %c24_166 = arith.constant 24 : index
    %c128_167 = arith.constant 128 : index
    %488 = vector.load %arg10[%c24_166, %c128_167] : memref<64x256xf32, #tpu.memory_space<vmem>>, vector<8x128xf32>
    %489 = vector.extract_strided_slice %484 {offsets = [8, 128], sizes = [8, 128], strides = [1, 1]} : vector<16x256xf32> to vector<8x128xf32>
    %490 = arith.addf %488, %489 : vector<8x128xf32>
    %491 = tpu.concatenate %487, %490 in 0 : vector<8x128xf32>, vector<8x128xf32> -> vector<16x128xf32>
    %492 = vector.extract_strided_slice %491 {offsets = [0, 0], sizes = [16, 32], strides = [1, 1]} : vector<16x128xf32> to vector<16x32xf32>
    %493 = arith.negf %492 : vector<16x32xf32>
    %494 = math.exp %493 : vector<16x32xf32>
    %cst_168 = arith.constant 1.000000e+00 : f32
    %495 = vector.broadcast %cst_168 : f32 to vector<16x32xf32>
    %496 = arith.addf %495, %494 : vector<16x32xf32>
    %497 = arith.divf %495, %496 : vector<16x32xf32>
    %498 = vector.extract_strided_slice %491 {offsets = [0, 32], sizes = [16, 32], strides = [1, 1]} : vector<16x128xf32> to vector<16x32xf32>
    %499 = arith.negf %498 : vector<16x32xf32>
    %500 = math.exp %499 : vector<16x32xf32>
    %cst_169 = arith.constant 1.000000e+00 : f32
    %501 = vector.broadcast %cst_169 : f32 to vector<16x32xf32>
    %502 = arith.addf %501, %500 : vector<16x32xf32>
    %503 = arith.divf %501, %502 : vector<16x32xf32>
    %504 = vector.extract_strided_slice %491 {offsets = [0, 64], sizes = [16, 32], strides = [1, 1]} : vector<16x128xf32> to vector<16x32xf32>
    %505 = math.tanh %504 : vector<16x32xf32>
    %506 = vector.extract_strided_slice %491 {offsets = [0, 96], sizes = [16, 32], strides = [1, 1]} : vector<16x128xf32> to vector<16x32xf32>
    %507 = arith.negf %506 : vector<16x32xf32>
    %508 = math.exp %507 : vector<16x32xf32>
    %cst_170 = arith.constant 1.000000e+00 : f32
    %509 = vector.broadcast %cst_170 : f32 to vector<16x32xf32>
    %510 = arith.addf %509, %508 : vector<16x32xf32>
    %511 = arith.divf %509, %510 : vector<16x32xf32>
    %512 = arith.mulf %503, %476 : vector<16x32xf32>
    %513 = arith.mulf %497, %505 : vector<16x32xf32>
    %514 = arith.addf %512, %513 : vector<16x32xf32>
    %515 = math.tanh %514 : vector<16x32xf32>
    %516 = arith.mulf %511, %515 : vector<16x32xf32>
    %517 = vector.extract_strided_slice %516 {offsets = [0, 0], sizes = [8, 32], strides = [1, 1]} : vector<16x32xf32> to vector<8x32xf32>
    %c32_171 = arith.constant 32 : index
    %c0_172 = arith.constant 0 : index
    %518 = vector.load %arg13[%c32_171, %c0_172] : memref<64x32xf32, #tpu.memory_space<vmem>>, vector<8x32xf32>
    tpu.vector_store %arg13[%c32_171, %c0_172], %517 {strides = array<i32>} : memref<64x32xf32, #tpu.memory_space<vmem>>, vector<8x32xf32>,
    %519 = vector.extract_strided_slice %516 {offsets = [8, 0], sizes = [8, 32], strides = [1, 1]} : vector<16x32xf32> to vector<8x32xf32>
    %c24_173 = arith.constant 24 : index
    %c0_174 = arith.constant 0 : index
    %520 = vector.load %arg14[%c24_173, %c0_174] : memref<64x32xf32, #tpu.memory_space<vmem>>, vector<8x32xf32>
    tpu.vector_store %arg14[%c24_173, %c0_174], %519 {strides = array<i32>} : memref<64x32xf32, #tpu.memory_space<vmem>>, vector<8x32xf32>,
    %521 = arith.truncf %516 : vector<16x32xf32> to vector<16x32xbf16>
    %cst_175 = arith.constant dense<0.000000e+00> : vector<16x256xf32>
    %522 = tpu.matmul %521, %328, %cst_175 {dimension_numbers = #tpu.dot_dimension_numbers<[1], [0], [0], [1], [0, 0, 1, 1], [], []>} : vector<16x32xbf16>, vector<32x256xbf16>, vector<16x256xf32> -> vector<16x256xf32>
    %c40_176 = arith.constant 40 : index
    %c0_177 = arith.constant 0 : index
    %523 = vector.load %arg10[%c40_176, %c0_177] : memref<64x256xf32, #tpu.memory_space<vmem>>, vector<8x128xf32>
    %524 = vector.extract_strided_slice %522 {offsets = [0, 0], sizes = [8, 128], strides = [1, 1]} : vector<16x256xf32> to vector<8x128xf32>
    %525 = arith.addf %523, %524 : vector<8x128xf32>
    %c16_178 = arith.constant 16 : index
    %c128_179 = arith.constant 128 : index
    %526 = vector.load %arg10[%c16_178, %c128_179] : memref<64x256xf32, #tpu.memory_space<vmem>>, vector<8x128xf32>
    %527 = vector.extract_strided_slice %522 {offsets = [8, 128], sizes = [8, 128], strides = [1, 1]} : vector<16x256xf32> to vector<8x128xf32>
    %528 = arith.addf %526, %527 : vector<8x128xf32>
    %529 = tpu.concatenate %525, %528 in 0 : vector<8x128xf32>, vector<8x128xf32> -> vector<16x128xf32>
    %530 = vector.extract_strided_slice %529 {offsets = [0, 0], sizes = [16, 32], strides = [1, 1]} : vector<16x128xf32> to vector<16x32xf32>
    %531 = arith.negf %530 : vector<16x32xf32>
    %532 = math.exp %531 : vector<16x32xf32>
    %cst_180 = arith.constant 1.000000e+00 : f32
    %533 = vector.broadcast %cst_180 : f32 to vector<16x32xf32>
    %534 = arith.addf %533, %532 : vector<16x32xf32>
    %535 = arith.divf %533, %534 : vector<16x32xf32>
    %536 = vector.extract_strided_slice %529 {offsets = [0, 32], sizes = [16, 32], strides = [1, 1]} : vector<16x128xf32> to vector<16x32xf32>
    %537 = arith.negf %536 : vector<16x32xf32>
    %538 = math.exp %537 : vector<16x32xf32>
    %cst_181 = arith.constant 1.000000e+00 : f32
    %539 = vector.broadcast %cst_181 : f32 to vector<16x32xf32>
    %540 = arith.addf %539, %538 : vector<16x32xf32>
    %541 = arith.divf %539, %540 : vector<16x32xf32>
    %542 = vector.extract_strided_slice %529 {offsets = [0, 64], sizes = [16, 32], strides = [1, 1]} : vector<16x128xf32> to vector<16x32xf32>
    %543 = math.tanh %542 : vector<16x32xf32>
    %544 = vector.extract_strided_slice %529 {offsets = [0, 96], sizes = [16, 32], strides = [1, 1]} : vector<16x128xf32> to vector<16x32xf32>
    %545 = arith.negf %544 : vector<16x32xf32>
    %546 = math.exp %545 : vector<16x32xf32>
    %cst_182 = arith.constant 1.000000e+00 : f32
    %547 = vector.broadcast %cst_182 : f32 to vector<16x32xf32>
    %548 = arith.addf %547, %546 : vector<16x32xf32>
    %549 = arith.divf %547, %548 : vector<16x32xf32>
    %550 = arith.mulf %541, %514 : vector<16x32xf32>
    %551 = arith.mulf %535, %543 : vector<16x32xf32>
    %552 = arith.addf %550, %551 : vector<16x32xf32>
    %553 = math.tanh %552 : vector<16x32xf32>
    %554 = arith.mulf %549, %553 : vector<16x32xf32>
    %555 = vector.extract_strided_slice %554 {offsets = [0, 0], sizes = [8, 32], strides = [1, 1]} : vector<16x32xf32> to vector<8x32xf32>
    %c40_183 = arith.constant 40 : index
    %c0_184 = arith.constant 0 : index
    %556 = vector.load %arg13[%c40_183, %c0_184] : memref<64x32xf32, #tpu.memory_space<vmem>>, vector<8x32xf32>
    tpu.vector_store %arg13[%c40_183, %c0_184], %555 {strides = array<i32>} : memref<64x32xf32, #tpu.memory_space<vmem>>, vector<8x32xf32>,
    %557 = vector.extract_strided_slice %554 {offsets = [8, 0], sizes = [8, 32], strides = [1, 1]} : vector<16x32xf32> to vector<8x32xf32>
    %c16_185 = arith.constant 16 : index
    %c0_186 = arith.constant 0 : index
    %558 = vector.load %arg14[%c16_185, %c0_186] : memref<64x32xf32, #tpu.memory_space<vmem>>, vector<8x32xf32>
    tpu.vector_store %arg14[%c16_185, %c0_186], %557 {strides = array<i32>} : memref<64x32xf32, #tpu.memory_space<vmem>>, vector<8x32xf32>,
    %559 = arith.truncf %554 : vector<16x32xf32> to vector<16x32xbf16>
    %cst_187 = arith.constant dense<0.000000e+00> : vector<16x256xf32>
    %560 = tpu.matmul %559, %328, %cst_187 {dimension_numbers = #tpu.dot_dimension_numbers<[1], [0], [0], [1], [0, 0, 1, 1], [], []>} : vector<16x32xbf16>, vector<32x256xbf16>, vector<16x256xf32> -> vector<16x256xf32>
    %c48_188 = arith.constant 48 : index
    %c0_189 = arith.constant 0 : index
    %561 = vector.load %arg10[%c48_188, %c0_189] : memref<64x256xf32, #tpu.memory_space<vmem>>, vector<8x128xf32>
    %562 = vector.extract_strided_slice %560 {offsets = [0, 0], sizes = [8, 128], strides = [1, 1]} : vector<16x256xf32> to vector<8x128xf32>
    %563 = arith.addf %561, %562 : vector<8x128xf32>
    %c8_190 = arith.constant 8 : index
    %c128_191 = arith.constant 128 : index
    %564 = vector.load %arg10[%c8_190, %c128_191] : memref<64x256xf32, #tpu.memory_space<vmem>>, vector<8x128xf32>
    %565 = vector.extract_strided_slice %560 {offsets = [8, 128], sizes = [8, 128], strides = [1, 1]} : vector<16x256xf32> to vector<8x128xf32>
    %566 = arith.addf %564, %565 : vector<8x128xf32>
    %567 = tpu.concatenate %563, %566 in 0 : vector<8x128xf32>, vector<8x128xf32> -> vector<16x128xf32>
    %568 = vector.extract_strided_slice %567 {offsets = [0, 0], sizes = [16, 32], strides = [1, 1]} : vector<16x128xf32> to vector<16x32xf32>
    %569 = arith.negf %568 : vector<16x32xf32>
    %570 = math.exp %569 : vector<16x32xf32>
    %cst_192 = arith.constant 1.000000e+00 : f32
    %571 = vector.broadcast %cst_192 : f32 to vector<16x32xf32>
    %572 = arith.addf %571, %570 : vector<16x32xf32>
    %573 = arith.divf %571, %572 : vector<16x32xf32>
    %574 = vector.extract_strided_slice %567 {offsets = [0, 32], sizes = [16, 32], strides = [1, 1]} : vector<16x128xf32> to vector<16x32xf32>
    %575 = arith.negf %574 : vector<16x32xf32>
    %576 = math.exp %575 : vector<16x32xf32>
    %cst_193 = arith.constant 1.000000e+00 : f32
    %577 = vector.broadcast %cst_193 : f32 to vector<16x32xf32>
    %578 = arith.addf %577, %576 : vector<16x32xf32>
    %579 = arith.divf %577, %578 : vector<16x32xf32>
    %580 = vector.extract_strided_slice %567 {offsets = [0, 64], sizes = [16, 32], strides = [1, 1]} : vector<16x128xf32> to vector<16x32xf32>
    %581 = math.tanh %580 : vector<16x32xf32>
    %582 = vector.extract_strided_slice %567 {offsets = [0, 96], sizes = [16, 32], strides = [1, 1]} : vector<16x128xf32> to vector<16x32xf32>
    %583 = arith.negf %582 : vector<16x32xf32>
    %584 = math.exp %583 : vector<16x32xf32>
    %cst_194 = arith.constant 1.000000e+00 : f32
    %585 = vector.broadcast %cst_194 : f32 to vector<16x32xf32>
    %586 = arith.addf %585, %584 : vector<16x32xf32>
    %587 = arith.divf %585, %586 : vector<16x32xf32>
    %588 = arith.mulf %579, %552 : vector<16x32xf32>
    %589 = arith.mulf %573, %581 : vector<16x32xf32>
    %590 = arith.addf %588, %589 : vector<16x32xf32>
    %591 = math.tanh %590 : vector<16x32xf32>
    %592 = arith.mulf %587, %591 : vector<16x32xf32>
    %593 = vector.extract_strided_slice %592 {offsets = [0, 0], sizes = [8, 32], strides = [1, 1]} : vector<16x32xf32> to vector<8x32xf32>
    %c48_195 = arith.constant 48 : index
    %c0_196 = arith.constant 0 : index
    %594 = vector.load %arg13[%c48_195, %c0_196] : memref<64x32xf32, #tpu.memory_space<vmem>>, vector<8x32xf32>
    tpu.vector_store %arg13[%c48_195, %c0_196], %593 {strides = array<i32>} : memref<64x32xf32, #tpu.memory_space<vmem>>, vector<8x32xf32>,
    %595 = vector.extract_strided_slice %592 {offsets = [8, 0], sizes = [8, 32], strides = [1, 1]} : vector<16x32xf32> to vector<8x32xf32>
    %c8_197 = arith.constant 8 : index
    %c0_198 = arith.constant 0 : index
    %596 = vector.load %arg14[%c8_197, %c0_198] : memref<64x32xf32, #tpu.memory_space<vmem>>, vector<8x32xf32>
    tpu.vector_store %arg14[%c8_197, %c0_198], %595 {strides = array<i32>} : memref<64x32xf32, #tpu.memory_space<vmem>>, vector<8x32xf32>,
    %597 = arith.truncf %592 : vector<16x32xf32> to vector<16x32xbf16>
    %cst_199 = arith.constant dense<0.000000e+00> : vector<16x256xf32>
    %598 = tpu.matmul %597, %328, %cst_199 {dimension_numbers = #tpu.dot_dimension_numbers<[1], [0], [0], [1], [0, 0, 1, 1], [], []>} : vector<16x32xbf16>, vector<32x256xbf16>, vector<16x256xf32> -> vector<16x256xf32>
    %c56_200 = arith.constant 56 : index
    %c0_201 = arith.constant 0 : index
    %599 = vector.load %arg10[%c56_200, %c0_201] : memref<64x256xf32, #tpu.memory_space<vmem>>, vector<8x128xf32>
    %600 = vector.extract_strided_slice %598 {offsets = [0, 0], sizes = [8, 128], strides = [1, 1]} : vector<16x256xf32> to vector<8x128xf32>
    %601 = arith.addf %599, %600 : vector<8x128xf32>
    %c0_202 = arith.constant 0 : index
    %c128_203 = arith.constant 128 : index
    %602 = vector.load %arg10[%c0_202, %c128_203] : memref<64x256xf32, #tpu.memory_space<vmem>>, vector<8x128xf32>
    %603 = vector.extract_strided_slice %598 {offsets = [8, 128], sizes = [8, 128], strides = [1, 1]} : vector<16x256xf32> to vector<8x128xf32>
    %604 = arith.addf %602, %603 : vector<8x128xf32>
    %605 = tpu.concatenate %601, %604 in 0 : vector<8x128xf32>, vector<8x128xf32> -> vector<16x128xf32>
    %606 = vector.extract_strided_slice %605 {offsets = [0, 0], sizes = [16, 32], strides = [1, 1]} : vector<16x128xf32> to vector<16x32xf32>
    %607 = arith.negf %606 : vector<16x32xf32>
    %608 = math.exp %607 : vector<16x32xf32>
    %cst_204 = arith.constant 1.000000e+00 : f32
    %609 = vector.broadcast %cst_204 : f32 to vector<16x32xf32>
    %610 = arith.addf %609, %608 : vector<16x32xf32>
    %611 = arith.divf %609, %610 : vector<16x32xf32>
    %612 = vector.extract_strided_slice %605 {offsets = [0, 32], sizes = [16, 32], strides = [1, 1]} : vector<16x128xf32> to vector<16x32xf32>
    %613 = arith.negf %612 : vector<16x32xf32>
    %614 = math.exp %613 : vector<16x32xf32>
    %cst_205 = arith.constant 1.000000e+00 : f32
    %615 = vector.broadcast %cst_205 : f32 to vector<16x32xf32>
    %616 = arith.addf %615, %614 : vector<16x32xf32>
    %617 = arith.divf %615, %616 : vector<16x32xf32>
    %618 = vector.extract_strided_slice %605 {offsets = [0, 64], sizes = [16, 32], strides = [1, 1]} : vector<16x128xf32> to vector<16x32xf32>
    %619 = math.tanh %618 : vector<16x32xf32>
    %620 = vector.extract_strided_slice %605 {offsets = [0, 96], sizes = [16, 32], strides = [1, 1]} : vector<16x128xf32> to vector<16x32xf32>
    %621 = arith.negf %620 : vector<16x32xf32>
    %622 = math.exp %621 : vector<16x32xf32>
    %cst_206 = arith.constant 1.000000e+00 : f32
    %623 = vector.broadcast %cst_206 : f32 to vector<16x32xf32>
    %624 = arith.addf %623, %622 : vector<16x32xf32>
    %625 = arith.divf %623, %624 : vector<16x32xf32>
    %626 = arith.mulf %617, %590 : vector<16x32xf32>
    %627 = arith.mulf %611, %619 : vector<16x32xf32>
    %628 = arith.addf %626, %627 : vector<16x32xf32>
    %629 = math.tanh %628 : vector<16x32xf32>
    %630 = arith.mulf %625, %629 : vector<16x32xf32>
    %631 = vector.extract_strided_slice %630 {offsets = [0, 0], sizes = [8, 32], strides = [1, 1]} : vector<16x32xf32> to vector<8x32xf32>
    %c56_207 = arith.constant 56 : index
    %c0_208 = arith.constant 0 : index
    %632 = vector.load %arg13[%c56_207, %c0_208] : memref<64x32xf32, #tpu.memory_space<vmem>>, vector<8x32xf32>
    tpu.vector_store %arg13[%c56_207, %c0_208], %631 {strides = array<i32>} : memref<64x32xf32, #tpu.memory_space<vmem>>, vector<8x32xf32>,
    %633 = vector.extract_strided_slice %630 {offsets = [8, 0], sizes = [8, 32], strides = [1, 1]} : vector<16x32xf32> to vector<8x32xf32>
    %c0_209 = arith.constant 0 : index
    %c0_210 = arith.constant 0 : index
    %634 = vector.load %arg14[%c0_209, %c0_210] : memref<64x32xf32, #tpu.memory_space<vmem>>, vector<8x32xf32>
    tpu.vector_store %arg14[%c0_209, %c0_210], %633 {strides = array<i32>} : memref<64x32xf32, #tpu.memory_space<vmem>>, vector<8x32xf32>,
    %c56_211 = arith.constant 56 : index
    %c0_212 = arith.constant 0 : index
    %635 = vector.load %arg13[%c56_211, %c0_212] : memref<64x32xf32, #tpu.memory_space<vmem>>, vector<8x32xf32>
    %c56_213 = arith.constant 56 : index
    %c0_214 = arith.constant 0 : index
    %636 = vector.load %arg14[%c56_213, %c0_214] : memref<64x32xf32, #tpu.memory_space<vmem>>, vector<8x32xf32>
    %c0_215 = arith.constant 0 : index
    %c0_216 = arith.constant 0 : index
    %637 = vector.load %arg7[%c0_215, %c0_216] : memref<64x5xf32, #tpu.memory_space<vmem>>, vector<64x5xf32>
    %638 = vector.extract_strided_slice %637 {offsets = [0, 0], sizes = [32, 5], strides = [1, 1]} : vector<64x5xf32> to vector<32x5xf32>
    %cst_217 = arith.constant dense<0.000000e+00> : vector<8x5xf32>
    %639 = tpu.matmul %635, %638, %cst_217 {dimension_numbers = #tpu.dot_dimension_numbers<[1], [0], [0], [1], [0, 0, 1, 1], [], []>} : vector<8x32xf32>, vector<32x5xf32>, vector<8x5xf32> -> vector<8x5xf32>
    %640 = vector.extract_strided_slice %637 {offsets = [32, 0], sizes = [32, 5], strides = [1, 1]} : vector<64x5xf32> to vector<32x5xf32>
    %cst_218 = arith.constant dense<0.000000e+00> : vector<8x5xf32>
    %641 = tpu.matmul %636, %640, %cst_218 {dimension_numbers = #tpu.dot_dimension_numbers<[1], [0], [0], [1], [0, 0, 1, 1], [], []>} : vector<8x32xf32>, vector<32x5xf32>, vector<8x5xf32> -> vector<8x5xf32>
    %642 = arith.addf %639, %641 : vector<8x5xf32>
    %c0_219 = arith.constant 0 : index
    %c0_220 = arith.constant 0 : index
    %643 = vector.load %arg8[%c0_219, %c0_220] : memref<1x5xf32, #tpu.memory_space<vmem>>, vector<1x5xf32>
    %644 = vector.broadcast %643 : vector<1x5xf32> to vector<8x5xf32>
    %645 = arith.addf %642, %644 : vector<8x5xf32>
    %cst_221 = arith.constant dense<0xFF800000> : vector<8xf32>
    %646 = vector.multi_reduction <maximumf>, %645, %cst_221 [1] : vector<8x5xf32> to vector<8xf32>
    %647 = vector.shape_cast %646 : vector<8xf32> to vector<8x1xf32>
    %648 = vector.broadcast %647 : vector<8x1xf32> to vector<8x5xf32>
    %649 = arith.subf %645, %648 : vector<8x5xf32>
    %650 = math.exp %649 : vector<8x5xf32>
    %cst_222 = arith.constant dense<0.000000e+00> : vector<8xf32>
    %651 = vector.multi_reduction <add>, %650, %cst_222 [1] : vector<8x5xf32> to vector<8xf32>
    %652 = vector.shape_cast %651 : vector<8xf32> to vector<8x1xf32>
    %653 = math.log %652 : vector<8x1xf32>
    %654 = vector.broadcast %653 : vector<8x1xf32> to vector<8x5xf32>
    %655 = arith.subf %649, %654 : vector<8x5xf32>
    %c0_223 = arith.constant 0 : index
    %c0_224 = arith.constant 0 : index
    %656 = vector.load %arg9[%c0_223, %c0_224] : memref<8x5xf32, #tpu.memory_space<vmem>>, vector<8x5xf32>
    tpu.vector_store %arg9[%c0_223, %c0_224], %655 {strides = array<i32>} : memref<8x5xf32, #tpu.memory_space<vmem>>, vector<8x5xf32>,
    return
  }
}

</mosaic_0001>

<bundles_post_ra>
// kernel: tpu_custom_call.1
= control target key start
LH: loop header
LB: loop body
LE: loop exit
PB: predicated region body
PF: predicated region fallthrough
CT: control target
= control target key end

     0   :  { %14 = vsyncpa [#allocation8], 0  ;;  %s3903_s0 = inlined_call_operand.vmem [shape: bf16[64,16], index: 0, kind: input, shape index: {}]   ;;  %s3904_s1 = inlined_call_operand.hbm [shape: bf16[16,256], index: 1, kind: input, shape index: {}]   ;;  %s3905_s2 = inlined_call_operand.vmem [shape: bf16[32,256], index: 2, kind: input, shape index: {}]   ;;  %s3906_s3 = inlined_call_operand.vmem [shape: f32[1,256], index: 3, kind: input, shape index: {}]   ;;  %s3907_s4 = inlined_call_operand.vmem [shape: bf16[64,256], index: 4, kind: input, shape index: {}]   ;;  %s3908_s5 = inlined_call_operand.hbm [shape: bf16[32,256], index: 5, kind: input, shape index: {}]   ;;  %s3909_s6 = inlined_call_operand.vmem [shape: f32[1,256], index: 6, kind: input, shape index: {}]   ;;  %s3910_s7 = inlined_call_operand.vmem [shape: f32[64,5], index: 7, kind: input, shape index: {}]   ;;  %s3911_s8 = inlined_call_operand.vmem [shape: f32[1,5], index: 8, kind: input, shape index: {}]   ;;  %s3912_s9 = inlined_call_operand.hbm [shape: f32[8,5], index: 9, kind: output, shape index: {}]  }
   0x1   :  { %15 = vsyncpa [#allocation11], 0 }
   0x2   :  { %16 = vsyncpa [#allocation9], 0  ;;  %s23_s11 = sshll.u32 %s3904_s1, 4  ;;  %s3059_s12 = smov [#allocation7]   ;;  %s24_s11 = int_to_ptr.hbm [resolvable:$true] %s23_s11 }
   0x3   :  { %s25_s13 = sshll.u32 %s3059_s12, 4  ;;  %s42_s16 = sshll.u32 %s3908_s5, 4  ;;  %s26_s13 = int_to_ptr.vmem [resolvable:$true] %s25_s13  ;;  %s43_s16 = int_to_ptr.hbm [resolvable:$true] %s42_s16 }
   0x4   :  { %s3060_s17 = smov 128   ;;  %s3061_s18 = smov 8  }
   0x5   :  { %31 = dma.hbm_to_vmem [thread:$0]  %s24_s11, 256, %s26_s13, [#allocation8], %s3060_s17, %s3060_s17, %s3061_s18  }
   0x6   :  { %s3062_s19 = smov [#allocation10]  }
   0x7   :  { %s44_s20 = sshll.u32 %s3062_s19, 4  ;;  %s45_s20 = int_to_ptr.vmem [resolvable:$true] %s44_s20 }
   0x8   :  { %50 = dma.hbm_to_vmem [thread:$0]  %s43_s16, 512, %s45_s20, [#allocation11], %s3060_s17, %s3060_s17, %s3061_s18  }
   0x9   :  { %3053 = dma.done.wait [#allocation8], 256  }
   0xa   :  { %3054 = vsyncadd [#allocation8], 4294967040 }
   0xb   :  { %3055 = dma.done.wait [#allocation11], 512  }
   0xc   :  { %3056 = vsyncadd [#allocation11], 4294966784  ;;  %v2694_v0 = vld [vmem:[#allocation7 + $0x4] sm:$0xf]  ;;  %v2536_v1 = vld [vmem:[#allocation7 + $0x8] sm:$0xf0] }
   0xd   :  { %v2558_v2 = vld [vmem:[%s3905_s2 + $0x10] sm:$0xf]  ;;  %v2539_v3 = vor.u32 %v2694_v0, %v2536_v1  ;;  %v2699_v4 = vld [vmem:[%s3905_s2 + $0x14] sm:$0xf0]  ;;  %v2690_v5 = vld [vmem:[%s3903_s0] sm:$0xff]  ;;  %vm112_vm0 = vcmask 130048  }
   0xe   :  { %v2550_v6 = vld [vmem:[%s3905_s2] sm:$0xf]  ;;  %v3135_v7 = vor.u32 %v2699_v4, %v2558_v2  ;;  %v2697_v8 = vld [vmem:[%s3905_s2 + $0x4] sm:$0xf0]  ;;  %v2698_v12 = vld [vmem:[%s3905_s2 + $0x14] sm:$0xf] }
   0xf   :  { %v2534_v9 = vld [vmem:[#allocation7] sm:$0xf]  ;;  %v2695_v10 = vld [vmem:[#allocation7 + $0x4] sm:$0xf0]  ;;  %161 = vmatpush.bf16.msra.mxu1 %v2539_v3  ;;  %v2560_v13 = vld [vmem:[%s3905_s2 + $0x18] sm:$0xf0]  ;;  %v3147_v14 = vor.u32 %v2697_v8, %v2550_v6 }
  0x10   :  { %v2535_v11 = vor.u32 %v2695_v10, %v2534_v9  ;;  %233 = vmatpush.bf16.msra.mxu2 %v3135_v7  ;;  %v3149_v15 = vor.u32 %v2698_v12, %v2560_v13  ;;  %v2696_v16 = vld [vmem:[%s3905_s2 + $0x4] sm:$0xf]  ;;  %v2552_v17 = vld [vmem:[%s3905_s2 + $0x8] sm:$0xf0]  ;;  %v3063_v19 = vmov 0   ;;  %v2692_v21 = vld [vmem:[%s3903_s0 + $0x10] sm:$0xff] }
  0x11   :  { %v3159_v18 = vor.u32 %v2696_v16, %v2552_v17  ;;  %v2691_v20 = vld [vmem:[%s3903_s0 + $0x8] sm:$0xff]  ;;  %v2693_v22 = vld [vmem:[%s3903_s0 + $0x18] sm:$0xff]  ;;  %v76_v23 = vld [vmem:[%s3906_s3] sm:$0x3]  ;;  %s3064_s0 = smov 64   ;;  %s3065_s3 = smov 32  }
  0x12   :  { %132 = vmatpush.bf16.msra.mxu0 %v2535_v11  ;;  %2544 = vmatmul.msk.bf16.vlgmr.msra.gmra.mxu1 %vm112_vm0, %v2690_v5  ;;  %v3200_v24 = vperm.slane %v76_v23, 1  ;;  %v3205_v27 = vperm.slane %v76_v23, 0  ;;  %vm223_vm9 = vcmask 261120   ;;  %s2505_s24 = sshll.u32 %s3912_s9, 4  ;;  %s2506_s24 = int_to_ptr.hbm [resolvable:$true] %s2505_s24 }
  0x13   :  { %246 = vmatpush.bf16.msra.mxu3 %v3149_v15  ;;  %730 = vmatpush.bf16.msrb.mxu1 %v3149_v15 }
  0x14   :  { %234 = vmatpush.bf16.msra.mxu2 %v3147_v14 }
  0x15   :  { %2540 = vmatmul.msk.bf16.vlgmr.msra.gmra.mxu0 %vm112_vm0, %v2690_v5 }
  0x16   :  { %717 = vmatpush.bf16.msrb.mxu0 %v3135_v7 }
  0x17   :  { %247 = vmatpush.bf16.msra.mxu3 %v3159_v18  ;;  %235 = vmatmul.bf16.vlgmr.msra.gmra.mxu2 %v3063_v19 }
  0x18   :  { %354 = vmatpush.bf16.msrb.mxu2 %v3135_v7  ;;  %731 = vmatpush.bf16.msrb.mxu1 %v3159_v18 }
  0x1a   :  { %718 = vmatpush.bf16.msrb.mxu0 %v3147_v14  ;;  %248 = vmatmul.bf16.vlgmr.msra.gmra.mxu3 %v3063_v19 }
  0x1b   :  { %367 = vmatpush.bf16.msrb.mxu3 %v3149_v15 }
  0x1c   :  { %355 = vmatpush.bf16.msrb.mxu2 %v3147_v14  ;;  %972 = vmatpush.bf16.msra.mxu1 %v3149_v15 }
  0x1e   :  { %959 = vmatpush.bf16.msra.mxu0 %v3135_v7 }
  0x1f   :  { %368 = vmatpush.bf16.msrb.mxu3 %v3159_v18 }
  0x20   :  { %475 = vmatpush.bf16.msra.mxu2 %v3135_v7  ;;  %973 = vmatpush.bf16.msra.mxu1 %v3159_v18 }
  0x22   :  { %960 = vmatpush.bf16.msra.mxu0 %v3147_v14  ;;  %2545 = vmatmul.msk.bf16.gmra.mxu1 %vm112_vm0, %v2691_v20 }
  0x23   :  { %488 = vmatpush.bf16.msra.mxu3 %v3149_v15 }
  0x24   :  { %476 = vmatpush.bf16.msra.mxu2 %v3147_v14 }
  0x25   :  { %2541 = vmatmul.msk.bf16.gmra.mxu0 %vm112_vm0, %v2691_v20 }
  0x27   :  { %489 = vmatpush.bf16.msra.mxu3 %v3159_v18 }
  0x32   :  { %2546 = vmatmul.msk.bf16.gmra.mxu1 %vm112_vm0, %v2692_v21 }
  0x35   :  { %2542 = vmatmul.msk.bf16.gmra.mxu0 %vm112_vm0, %v2692_v21 }
  0x42   :  { %2547 = vmatmul.msk.bf16.gmra.mxu1 %vm112_vm0, %v2693_v22 }
  0x45   :  { %2543 = vmatmul.msk.bf16.gmra.mxu0 %vm112_vm0, %v2693_v22 }
  0x8f   :  { %v163_v25 = vpop.f32.mrf.mxu1 }
  0x90   :  { %v3203_v26 = vadd.f32 %v163_v25, %v3200_v24 }
  0x92   :  { %v134_v28 = vpop.f32.mrf.mxu0 }
  0x93   :  { %v135_v29 = vadd.f32 %v134_v28, %v3205_v27 }
  0x97   :  { %v3208_v30 = vpop.f32.mrf.mxu1 }
  0x9a   :  { %v236_v31 = vpop.f32.mrf.mxu2 }
  0x9b   :  { %v254_v32 = vadd.f32 %v236_v31, %v135_v29 }
  0x9d   :  { %v249_v33 = vpop.f32.mrf.mxu3  ;;  %2721 = vtanh.f32 %v254_v32  ;;  %v2564_v49 = vmul.f32 -1.442695, %v254_v32 }
  0x9f   :  { %v168_v34 = vpop.f32.mrf.mxu1 }
  0xa0   :  { %v3211_v35 = vadd.f32 %v168_v34, %v3200_v24 }
  0xa2   :  { %v238_v36 = vpop.f32.mrf.mxu2 }
  0xa3   :  { %v2722_v37 = vpop.eup %2721 }
  0xa4   :  { %301 = vrot.lane.b32.xlu0 %v2722_v37, %s3064_s0 }
  0xa5   :  { %v250_v46 = vpop.f32.mrf.mxu3 }
  0xa7   :  { %v3214_v38 = vpop.f32.mrf.mxu1 }
  0xaf   :  { %v3216_v39 = vpop.f32.mrf.mxu1 }
  0xb7   :  { %v175_v40 = vpop.f32.mrf.mxu1 }
  0xb8   :  { %v3219_v41 = vadd.f32 %v175_v40, %v3200_v24 }
  0xbf   :  { %v178_v42 = vpop.f32.mrf.mxu1 }
  0xc0   :  { %v3222_v43 = vadd.f32 %v178_v42, %v3200_v24  ;;  %v136_v42 = vpop.f32.mrf.mxu0 }
  0xc7   :  { %v180_v44 = vpop.f32.mrf.mxu1 }
  0xc8   :  { %v181_v45 = vadd.f32 %v180_v44, %v3200_v24  ;;  %v137_v44 = vadd.f32 %v136_v42, %v3205_v27 }
  0xca   :  { %v256_v47 = vadd.f32 %v250_v46, %v181_v45 }
  0xcc   :  { %2723 = vtanh.f32 %v256_v47  ;;  %v2565_v0 = vmul.f32 -1.442695, %v256_v47 }
  0xcd   :  { %2725 = vpow2.f32 %v2564_v49 }
  0xd2   :  { %v2724_v48 = vpop.eup %2723 }
  0xd3   :  { %303 = vrot.lane.b32.xlu0 %v2724_v48, %s3064_s0  ;;  %v2726_v50 = vpop.eup %2725 }
  0xd4   :  { %v263_v51 = vadd.f32 1.0, %v2726_v50 }
  0xd6   :  { %2727 = vrcp.f32 %v263_v51  ;;  %vm270_vm1 = vweird.f32 %v263_v51  ;;  %v276_v56 = vand.u32 2147483648, %v263_v51  ;;  %v274_v58 = vand.u32 2147483647, %v263_v51 }
  0xd7   :  { %2729 = vpow2.f32 %v2565_v0 }
  0xd8   :  { %v277_v59 = vor.u32 1.1754944e-38, %v276_v56  ;;  %vm275_vm4 = vcmp.eq.f32.partialorder %v274_v58, 8.507059e+37 }
  0xdc   :  { %v2728_v52 = vpop.eup %2727 }
  0xdd   :  { %v266_v53 = vmul.f32 %v2728_v52, %v263_v51  ;;  %vm271_vm2 = vweird.f32 %v2728_v52  ;;  %v2730_v1 = vpop.eup %2729 }
  0xde   :  { %vm272_vm3 = vmor %vm270_vm1, %vm271_vm2  ;;  %v264_v2 = vadd.f32 1.0, %v2730_v1 }
  0xdf   :  { %v267_v54 = vsub.f32 1.0, %v266_v53 }
  0xe0   :  { %2731 = vrcp.f32 %v264_v2  ;;  %v291_v9 = vand.u32 2147483648, %v264_v2  ;;  %vm285_vm6 = vweird.f32 %v264_v2  ;;  %v289_v10 = vand.u32 2147483647, %v264_v2 }
  0xe1   :  { %v268_v55 = vmul.f32 %v2728_v52, %v267_v54 }
  0xe2   :  { %v292_v12 = vor.u32 1.1754944e-38, %v291_v9  ;;  %vm290_vm8 = vcmp.eq.f32.partialorder %v289_v10, 8.507059e+37 }
  0xe3   :  { %v269_v57 = vadd.f32 %v2728_v52, %v268_v55 }
  0xe5   :  { %v273_v60 = vsel %vm272_vm3, %v2728_v52, %v269_v57 }
  0xe6   :  { %v278_v62 = vsel %vm275_vm4, %v277_v59, %v273_v60  ;;  %v2732_v3 = vpop.eup %2731 }
  0xe7   :  { %v281_v4 = vmul.f32 %v2732_v3, %v264_v2  ;;  %vm286_vm5 = vweird.f32 %v2732_v3  ;;  %v297_v20 = vmul.f32 0.0, %v278_v62 }
  0xe8   :  { %vm287_vm7 = vmor %vm285_vm6, %vm286_vm5 }
  0xe9   :  { %v282_v5 = vsub.f32 1.0, %v281_v4 }
  0xeb   :  { %v283_v6 = vmul.f32 %v2732_v3, %v282_v5 }
  0xed   :  { %v284_v8 = vadd.f32 %v2732_v3, %v283_v6 }
  0xef   :  { %v288_v11 = vsel %vm287_vm7, %v2732_v3, %v284_v8 }
  0xf0   :  { %v293_v13 = vsel %vm290_vm8, %v292_v12, %v288_v11 }
  0xf1   :  { %v298_v25 = vmul.f32 0.0, %v293_v13 }
 0x116   :  { %v302_v61 = vpop.permute.xlu0 %301 }
 0x117   :  { %v307_v63 = vmul.f32 %v302_v61, %v278_v62 }
 0x119   :  { %311 = vrot.lane.b32.xlu1 %v307_v63, %s3065_s3 }
 0x145   :  { %v304_v16 = vpop.permute.xlu0 %303 }
 0x146   :  { %v308_v17 = vmul.f32 %v304_v16, %v293_v13 }
 0x148   :  { %313 = vrot.lane.b32.xlu1 %v308_v17, %s3065_s3 }
 0x18b   :  { %v312_v21 = vpop.permute.xlu1 %311 }
 0x18c   :  { %v3228_v22 = vadd.f32 %v312_v21, %v297_v20 }
 0x18e   :  { %2733 = vtanh.f32 %v3228_v22 }
 0x194   :  { %v2734_v23 = vpop.eup %2733 }
 0x195   :  { %323 = vrot.lane.b32.xlu2 %v2734_v23, %s3064_s0 }
 0x1ba   :  { %v314_v28 = vpop.permute.xlu1 %313 }
 0x1bb   :  { %v3232_v29 = vadd.f32 %v314_v28, %v298_v25 }
 0x1bd   :  { %2735 = vtanh.f32 %v3232_v29 }
 0x1c3   :  { %v2736_v31 = vpop.eup %2735 }
 0x1c4   :  { %325 = vrot.lane.b32.xlu2 %v2736_v31, %s3064_s0 }
 0x1ef   :  { %v324_v32 = vpop.permute.xlu2 %323 }
 0x1f0   :  { %v3236_v34 = vmul.f32 %v324_v32, %v278_v62 }
 0x21e   :  { %v326_v33 = vpop.permute.xlu2 %325 }
 0x21f   :  { %v3238_v36 = vmul.f32 %v326_v33, %v293_v13 }
 0x221   :  { %v341_v37 = vpack.c.bf16 %v3238_v36, %v3236_v34 }
 0x223   :  { %343 = vrot.lane.b32.xlu0 %v341_v37, %s3065_s3 }
 0x295   :  { %v344_v40 = vpop.permute.xlu0 %343 }
 0x296   :  { %2566 = vmatmul.msk.bf16.vlgmr.msrb.gmra.mxu2 %vm223_vm9, %v344_v40  ;;  %2567 = vmatmul.msk.bf16.vlgmr.msrb.gmra.mxu3 %vm223_vm9, %v344_v40 }
 0x297   :  { %609 = vmatpush.bf16.msrb.mxu3 %v3149_v15  ;;  %596 = vmatpush.bf16.msrb.mxu2 %v3135_v7 }
 0x29b   :  { %610 = vmatpush.bf16.msrb.mxu3 %v3159_v18  ;;  %597 = vmatpush.bf16.msrb.mxu2 %v3147_v14 }
 0x319   :  { %v357_v45 = vpop.f32.mrf.mxu2  ;;  %v370_v46 = vpop.f32.mrf.mxu3 }
 0x31a   :  { %v375_v47 = vadd.f32 %v357_v45, %v137_v44 }
 0x31c   :  { %2737 = vtanh.f32 %v375_v47  ;;  %v2568_v56 = vmul.f32 -1.442695, %v375_v47 }
 0x321   :  { %v359_v48 = vpop.f32.mrf.mxu2  ;;  %v371_v49 = vpop.f32.mrf.mxu3 }
 0x322   :  { %v2738_v50 = vpop.eup %2737  ;;  %v377_v51 = vadd.f32 %v371_v49, %v3222_v43  ;;  %v139_v48 = vpop.f32.mrf.mxu0 }
 0x323   :  { %422 = vrot.lane.b32.xlu1 %v2738_v50, %s3064_s0  ;;  %v140_v49 = vadd.f32 %v139_v48, %v3205_v27 }
 0x324   :  { %2739 = vtanh.f32 %v377_v51  ;;  %v2569_v53 = vmul.f32 -1.442695, %v377_v51 }
 0x326   :  { %2741 = vpow2.f32 %v2569_v53 }
 0x32a   :  { %v2740_v52 = vpop.eup %2739 }
 0x32b   :  { %424 = vrot.lane.b32.xlu2 %v2740_v52, %s3064_s0 }
 0x32c   :  { %v2742_v54 = vpop.eup %2741 }
 0x32d   :  { %v385_v55 = vadd.f32 1.0, %v2742_v54 }
 0x32f   :  { %2743 = vrcp.f32 %v385_v55  ;;  %v412_v0 = vand.u32 2147483648, %v385_v55  ;;  %vm406_vm11 = vweird.f32 %v385_v55  ;;  %v410_v1 = vand.u32 2147483647, %v385_v55 }
 0x330   :  { %2745 = vpow2.f32 %v2568_v56 }
 0x331   :  { %v413_v4 = vor.u32 1.1754944e-38, %v412_v0  ;;  %vm411_vm13 = vcmp.eq.f32.partialorder %v410_v1, 8.507059e+37 }
 0x335   :  { %v2744_v57 = vpop.eup %2743 }
 0x336   :  { %v2746_v58 = vpop.eup %2745  ;;  %v402_v59 = vmul.f32 %v2744_v57, %v385_v55  ;;  %vm407_vm10 = vweird.f32 %v2744_v57 }
 0x337   :  { %v384_v60 = vadd.f32 1.0, %v2746_v58  ;;  %vm408_vm12 = vmor %vm406_vm11, %vm407_vm10 }
 0x338   :  { %v403_v61 = vsub.f32 1.0, %v402_v59 }
 0x339   :  { %2747 = vrcp.f32 %v384_v60  ;;  %v397_v12 = vand.u32 2147483648, %v384_v60  ;;  %vm391_vm15 = vweird.f32 %v384_v60  ;;  %v395_v13 = vand.u32 2147483647, %v384_v60 }
 0x33a   :  { %v404_v43 = vmul.f32 %v2744_v57, %v403_v61 }
 0x33b   :  { %v398_v17 = vor.u32 1.1754944e-38, %v397_v12  ;;  %vm396_vm1 = vcmp.eq.f32.partialorder %v395_v13, 8.507059e+37 }
 0x33c   :  { %v405_v62 = vadd.f32 %v2744_v57, %v404_v43 }
 0x33e   :  { %v409_v2 = vsel %vm408_vm12, %v2744_v57, %v405_v62 }
 0x33f   :  { %v2748_v63 = vpop.eup %2747  ;;  %v414_v6 = vsel %vm411_vm13, %v413_v4, %v409_v2 }
 0x340   :  { %v387_v3 = vmul.f32 %v2748_v63, %v384_v60  ;;  %vm392_vm14 = vweird.f32 %v2748_v63  ;;  %v419_v25 = vmul.f32 %v414_v6, %v3232_v29 }
 0x341   :  { %vm393_vm0 = vmor %vm391_vm15, %vm392_vm14 }
 0x342   :  { %v388_v9 = vsub.f32 1.0, %v387_v3 }
 0x344   :  { %v389_v10 = vmul.f32 %v2748_v63, %v388_v9 }
 0x346   :  { %v390_v11 = vadd.f32 %v2748_v63, %v389_v10 }
 0x348   :  { %v394_v16 = vsel %vm393_vm0, %v2748_v63, %v390_v11 }
 0x349   :  { %v399_v21 = vsel %vm396_vm1, %v398_v17, %v394_v16 }
 0x34a   :  { %v418_v33 = vmul.f32 %v399_v21, %v3228_v22 }
 0x385   :  { %v425_v5 = vpop.permute.xlu2 %424 }
 0x386   :  { %v429_v8 = vmul.f32 %v425_v5, %v414_v6 }
 0x388   :  { %434 = vrot.lane.b32.xlu1 %v429_v8, %s3065_s3 }
 0x395   :  { %v423_v20 = vpop.permute.xlu1 %422 }
 0x396   :  { %v428_v23 = vmul.f32 %v423_v20, %v399_v21 }
 0x398   :  { %432 = vrot.lane.b32.xlu0 %v428_v23, %s3065_s3 }
 0x3fa   :  { %v435_v28 = vpop.permute.xlu1 %434 }
 0x3fb   :  { %v3256_v31 = vadd.f32 %v435_v28, %v419_v25 }
 0x3fd   :  { %2749 = vtanh.f32 %v3256_v31 }
 0x403   :  { %v2750_v32 = vpop.eup %2749 }
 0x404   :  { %446 = vrot.lane.b32.xlu0 %v2750_v32, %s3064_s0 }
 0x40a   :  { %v433_v37 = vpop.permute.xlu0 %432 }
 0x40b   :  { %v3261_v40 = vadd.f32 %v433_v37, %v418_v33 }
 0x40d   :  { %2751 = vtanh.f32 %v3261_v40 }
 0x413   :  { %v2752_v42 = vpop.eup %2751 }
 0x414   :  { %444 = vrot.lane.b32.xlu2 %v2752_v42, %s3064_s0 }
 0x46e   :  { %v445_v44 = vpop.permute.xlu2 %444 }
 0x46f   :  { %v3265_v45 = vmul.f32 %v445_v44, %v399_v21 }
 0x476   :  { %v447_v29 = vpop.permute.xlu0 %446 }
 0x477   :  { %v3267_v46 = vmul.f32 %v447_v29, %v414_v6 }
 0x479   :  { %v462_v47 = vpack.c.bf16 %v3267_v46, %v3265_v45 }
 0x47b   :  { %464 = vrot.lane.b32.xlu1 %v462_v47, %s3065_s3 }
 0x4ed   :  { %v465_v22 = vpop.permute.xlu1 %464 }
 0x4ee   :  { %2570 = vmatmul.msk.bf16.vlgmr.msra.gmra.mxu2 %vm223_vm9, %v465_v22  ;;  %2571 = vmatmul.msk.bf16.vlgmr.msra.gmra.mxu3 %vm223_vm9, %v465_v22 }
 0x4ef   :  { %851 = vmatpush.bf16.msra.mxu3 %v3149_v15  ;;  %838 = vmatpush.bf16.msra.mxu2 %v3135_v7 }
 0x4f3   :  { %852 = vmatpush.bf16.msra.mxu3 %v3159_v18  ;;  %839 = vmatpush.bf16.msra.mxu2 %v3147_v14 }
 0x571   :  { %v478_v50 = vpop.f32.mrf.mxu2  ;;  %v491_v51 = vpop.f32.mrf.mxu3 }
 0x572   :  { %v496_v52 = vadd.f32 %v478_v50, %v140_v49 }
 0x574   :  { %2753 = vtanh.f32 %v496_v52  ;;  %v2572_v58 = vmul.f32 -1.442695, %v496_v52 }
 0x579   :  { %v480_v53 = vpop.f32.mrf.mxu2  ;;  %v492_v54 = vpop.f32.mrf.mxu3 }
 0x57a   :  { %v2754_v55 = vpop.eup %2753  ;;  %v498_v56 = vadd.f32 %v492_v54, %v3219_v41  ;;  %v141_v54 = vpop.f32.mrf.mxu0 }
 0x57b   :  { %543 = vrot.lane.b32.xlu2 %v2754_v55, %s3064_s0  ;;  %v142_v55 = vadd.f32 %v141_v54, %v3205_v27 }
 0x57c   :  { %2755 = vtanh.f32 %v498_v56  ;;  %v2573_v63 = vmul.f32 -1.442695, %v498_v56 }
 0x57d   :  { %2757 = vpow2.f32 %v2572_v58 }
 0x582   :  { %v2756_v57 = vpop.eup %2755 }
 0x583   :  { %545 = vrot.lane.b32.xlu0 %v2756_v57, %s3064_s0  ;;  %v2758_v59 = vpop.eup %2757 }
 0x584   :  { %v505_v60 = vadd.f32 1.0, %v2758_v59  ;;  %v174_v59 = vadd.f32 %v3216_v39, %v3200_v24 }
 0x586   :  { %2759 = vrcp.f32 %v505_v60  ;;  %v518_v41 = vand.u32 2147483648, %v505_v60  ;;  %vm512_vm3 = vweird.f32 %v505_v60  ;;  %v516_v2 = vand.u32 2147483647, %v505_v60 }
 0x587   :  { %2761 = vpow2.f32 %v2573_v63 }
 0x588   :  { %v519_v5 = vor.u32 1.1754944e-38, %v518_v41  ;;  %vm517_vm5 = vcmp.eq.f32.partialorder %v516_v2, 8.507059e+37 }
 0x58c   :  { %v2760_v61 = vpop.eup %2759 }
 0x58d   :  { %v508_v43 = vmul.f32 %v2760_v61, %v505_v60  ;;  %vm513_vm2 = vweird.f32 %v2760_v61  ;;  %v2762_v3 = vpop.eup %2761 }
 0x58e   :  { %vm514_vm4 = vmor %vm512_vm3, %vm513_vm2  ;;  %v506_v6 = vadd.f32 1.0, %v2762_v3 }
 0x58f   :  { %v509_v62 = vsub.f32 1.0, %v508_v43 }
 0x590   :  { %2763 = vrcp.f32 %v506_v6  ;;  %v533_v20 = vand.u32 2147483648, %v506_v6  ;;  %vm527_vm7 = vweird.f32 %v506_v6  ;;  %v531_v21 = vand.u32 2147483647, %v506_v6 }
 0x591   :  { %v510_v0 = vmul.f32 %v2760_v61, %v509_v62 }
 0x592   :  { %v534_v25 = vor.u32 1.1754944e-38, %v533_v20  ;;  %vm532_vm10 = vcmp.eq.f32.partialorder %v531_v21, 8.507059e+37 }
 0x593   :  { %v511_v1 = vadd.f32 %v2760_v61, %v510_v0 }
 0x595   :  { %v515_v4 = vsel %vm514_vm4, %v2760_v61, %v511_v1 }
 0x596   :  { %v520_v9 = vsel %vm517_vm5, %v519_v5, %v515_v4  ;;  %v2764_v11 = vpop.eup %2763 }
 0x597   :  { %v523_v12 = vmul.f32 %v2764_v11, %v506_v6  ;;  %vm528_vm6 = vweird.f32 %v2764_v11  ;;  %v539_v37 = vmul.f32 %v520_v9, %v3261_v40 }
 0x598   :  { %vm529_vm8 = vmor %vm527_vm7, %vm528_vm6 }
 0x599   :  { %v524_v13 = vsub.f32 1.0, %v523_v12 }
 0x59b   :  { %v525_v16 = vmul.f32 %v2764_v11, %v524_v13 }
 0x59d   :  { %v526_v17 = vadd.f32 %v2764_v11, %v525_v16 }
 0x59f   :  { %v530_v23 = vsel %vm529_vm8, %v2764_v11, %v526_v17 }
 0x5a0   :  { %v535_v32 = vsel %vm532_vm10, %v534_v25, %v530_v23 }
 0x5a1   :  { %v540_v29 = vmul.f32 %v535_v32, %v3256_v31 }
 0x5d5   :  { %v544_v8 = vpop.permute.xlu2 %543 }
 0x5d6   :  { %v549_v10 = vmul.f32 %v544_v8, %v520_v9 }
 0x5d8   :  { %553 = vrot.lane.b32.xlu1 %v549_v10, %s3065_s3 }
 0x5f5   :  { %v546_v28 = vpop.permute.xlu0 %545 }
 0x5f6   :  { %v550_v33 = vmul.f32 %v546_v28, %v535_v32 }
 0x5f8   :  { %555 = vrot.lane.b32.xlu2 %v550_v33, %s3065_s3 }
 0x64a   :  { %v554_v42 = vpop.permute.xlu1 %553 }
 0x64b   :  { %v3285_v44 = vadd.f32 %v554_v42, %v539_v37 }
 0x64d   :  { %2765 = vtanh.f32 %v3285_v44 }
 0x652   :  { %v556_v47 = vpop.permute.xlu2 %555 }
 0x653   :  { %v2766_v22 = vpop.eup %2765  ;;  %v3289_v48 = vadd.f32 %v556_v47, %v540_v29 }
 0x654   :  { %565 = vrot.lane.b32.xlu0 %v2766_v22, %s3064_s0 }
 0x655   :  { %2767 = vtanh.f32 %v3289_v48 }
 0x65b   :  { %v2768_v49 = vpop.eup %2767 }
 0x65c   :  { %567 = vrot.lane.b32.xlu1 %v2768_v49, %s3064_s0 }
 0x6c6   :  { %v566_v50 = vpop.permute.xlu0 %565 }
 0x6c7   :  { %v3294_v51 = vmul.f32 %v566_v50, %v520_v9 }
 0x6ce   :  { %v568_v40 = vpop.permute.xlu1 %567 }
 0x6cf   :  { %v3296_v52 = vmul.f32 %v568_v40, %v535_v32 }
 0x6d1   :  { %v583_v31 = vpack.c.bf16 %v3296_v52, %v3294_v51 }
 0x6d3   :  { %585 = vrot.lane.b32.xlu2 %v583_v31, %s3065_s3 }
 0x72d   :  { %v586_v53 = vpop.permute.xlu2 %585 }
 0x72e   :  { %2574 = vmatmul.msk.bf16.vlgmr.msrb.gmra.mxu2 %vm223_vm9, %v586_v53  ;;  %2575 = vmatmul.msk.bf16.vlgmr.msrb.gmra.mxu3 %vm223_vm9, %v586_v53 }
 0x72f   :  { %1093 = vmatpush.bf16.msrb.mxu3 %v3149_v15  ;;  %1080 = vmatpush.bf16.msrb.mxu2 %v3135_v7 }
 0x733   :  { %1094 = vmatpush.bf16.msrb.mxu3 %v3159_v18  ;;  %1081 = vmatpush.bf16.msrb.mxu2 %v3147_v14 }
 0x7b1   :  { %v599_v56 = vpop.f32.mrf.mxu2  ;;  %v612_v57 = vpop.f32.mrf.mxu3 }
 0x7b2   :  { %v617_v58 = vadd.f32 %v599_v56, %v142_v55 }
 0x7b4   :  { %2769 = vtanh.f32 %v617_v58  ;;  %v2576_v14 = vmul.f32 -1.442695, %v617_v58  ;;  %v144_v58 = vpop.f32.mrf.mxu0 }
 0x7b9   :  { %v601_v60 = vpop.f32.mrf.mxu2  ;;  %v613_v61 = vpop.f32.mrf.mxu3 }
 0x7ba   :  { %v2770_v43 = vpop.eup %2769  ;;  %v619_v15 = vadd.f32 %v613_v61, %v174_v59 }
 0x7bb   :  { %664 = vrot.lane.b32.xlu0 %v2770_v43, %s3064_s0  ;;  %v145_v43 = vadd.f32 %v144_v58, %v3205_v27 }
 0x7bc   :  { %2771 = vtanh.f32 %v619_v15  ;;  %v2577_v18 = vmul.f32 -1.442695, %v619_v15  ;;  %v3333_v59 = vpop.f32.mrf.mxu0 }
 0x7bd   :  { %2773 = vpow2.f32 %v2576_v14 }
 0x7be   :  { %2775 = vpow2.f32 %v2577_v18  ;;  %v171_v18 = vadd.f32 %v3214_v38, %v3200_v24 }
 0x7c2   :  { %v2772_v7 = vpop.eup %2771 }
 0x7c3   :  { %666 = vrot.lane.b32.xlu1 %v2772_v7, %s3064_s0  ;;  %v2774_v62 = vpop.eup %2773 }
 0x7c4   :  { %v626_v63 = vadd.f32 1.0, %v2774_v62  ;;  %v2776_v0 = vpop.eup %2775  ;;  %v3335_v60 = vpop.f32.mrf.mxu0 }
 0x7c5   :  { %v627_v1 = vadd.f32 1.0, %v2776_v0 }
 0x7c6   :  { %2777 = vrcp.f32 %v626_v63  ;;  %v639_v9 = vand.u32 2147483648, %v626_v63  ;;  %vm633_vm12 = vweird.f32 %v626_v63  ;;  %v637_v10 = vand.u32 2147483647, %v626_v63 }
 0x7c7   :  { %2779 = vrcp.f32 %v627_v1  ;;  %v654_v23 = vand.u32 2147483648, %v627_v1  ;;  %vm648_vm0 = vweird.f32 %v627_v1  ;;  %v652_v25 = vand.u32 2147483647, %v627_v1 }
 0x7c8   :  { %v640_v13 = vor.u32 1.1754944e-38, %v639_v9  ;;  %vm638_vm14 = vcmp.eq.f32.partialorder %v637_v10, 8.507059e+37 }
 0x7c9   :  { %v655_v32 = vor.u32 1.1754944e-38, %v654_v23  ;;  %vm653_vm2 = vcmp.eq.f32.partialorder %v652_v25, 8.507059e+37 }
 0x7cc   :  { %v2778_v39 = vpop.eup %2777  ;;  %v3337_v61 = vpop.f32.mrf.mxu0 }
 0x7cd   :  { %v629_v41 = vmul.f32 %v2778_v39, %v626_v63  ;;  %v2780_v3 = vpop.eup %2779  ;;  %vm634_vm11 = vweird.f32 %v2778_v39 }
 0x7ce   :  { %v644_v5 = vmul.f32 %v2780_v3, %v627_v1  ;;  %vm635_vm13 = vmor %vm633_vm12, %vm634_vm11  ;;  %vm649_vm15 = vweird.f32 %v2780_v3 }
 0x7cf   :  { %v630_v2 = vsub.f32 1.0, %v629_v41  ;;  %vm650_vm1 = vmor %vm648_vm0, %vm649_vm15 }
 0x7d0   :  { %v645_v8 = vsub.f32 1.0, %v644_v5 }
 0x7d1   :  { %v631_v4 = vmul.f32 %v2778_v39, %v630_v2 }
 0x7d2   :  { %v646_v12 = vmul.f32 %v2780_v3, %v645_v8 }
 0x7d3   :  { %v632_v6 = vadd.f32 %v2778_v39, %v631_v4 }
 0x7d4   :  { %v647_v21 = vadd.f32 %v2780_v3, %v646_v12 }
 0x7d5   :  { %v636_v11 = vsel %vm635_vm13, %v2778_v39, %v632_v6 }
 0x7d6   :  { %v641_v17 = vsel %vm638_vm14, %v640_v13, %v636_v11  ;;  %v651_v28 = vsel %vm650_vm1, %v2780_v3, %v647_v21 }
 0x7d7   :  { %v656_v37 = vsel %vm653_vm2, %v655_v32, %v651_v28  ;;  %v660_v29 = vmul.f32 %v641_v17, %v3285_v44 }
 0x7d8   :  { %v661_v50 = vmul.f32 %v656_v37, %v3289_v48 }
 0x82d   :  { %v665_v16 = vpop.permute.xlu0 %664 }
 0x82e   :  { %v670_v20 = vmul.f32 %v665_v16, %v641_v17 }
 0x830   :  { %674 = vrot.lane.b32.xlu2 %v670_v20, %s3065_s3 }
 0x835   :  { %v667_v33 = vpop.permute.xlu1 %666 }
 0x836   :  { %v671_v42 = vmul.f32 %v667_v33, %v656_v37 }
 0x838   :  { %676 = vrot.lane.b32.xlu0 %v671_v42, %s3065_s3 }
 0x88a   :  { %v675_v47 = vpop.permute.xlu2 %674 }
 0x88b   :  { %v3315_v22 = vadd.f32 %v675_v47, %v660_v29 }
 0x88d   :  { %2781 = vtanh.f32 %v3315_v22 }
 0x893   :  { %v2782_v49 = vpop.eup %2781 }
 0x894   :  { %686 = vrot.lane.b32.xlu1 %v2782_v49, %s3064_s0 }
 0x8aa   :  { %v677_v40 = vpop.permute.xlu0 %676 }
 0x8ab   :  { %v3320_v31 = vadd.f32 %v677_v40, %v661_v50 }
 0x8ad   :  { %2783 = vtanh.f32 %v3320_v31 }
 0x8b3   :  { %v2784_v53 = vpop.eup %2783 }
 0x8b4   :  { %688 = vrot.lane.b32.xlu2 %v2784_v53, %s3064_s0 }
 0x906   :  { %v687_v54 = vpop.permute.xlu1 %686 }
 0x907   :  { %v3324_v55 = vmul.f32 %v687_v54, %v641_v17 }
 0x90e   :  { %v689_v44 = vpop.permute.xlu2 %688 }
 0x90f   :  { %v3326_v56 = vmul.f32 %v689_v44, %v656_v37 }
 0x911   :  { %v704_v57 = vpack.c.bf16 %v3326_v56, %v3324_v55 }
 0x913   :  { %706 = vrot.lane.b32.xlu0 %v704_v57, %s3065_s3 }
 0x985   :  { %v707_v48 = vpop.permute.xlu0 %706 }
 0x986   :  { %2578 = vmatmul.msk.bf16.vlgmr.msrb.gmra.mxu0 %vm223_vm9, %v707_v48  ;;  %2579 = vmatmul.msk.bf16.vlgmr.msrb.gmra.mxu1 %vm223_vm9, %v707_v48 }
 0xa03   :  { %v720_v15 = vpop.f32.mrf.mxu0  ;;  %v733_v7 = vpop.f32.mrf.mxu1 }
 0xa04   :  { %v738_v14 = vadd.f32 %v720_v15, %v145_v43 }
 0xa06   :  { %2785 = vtanh.f32 %v738_v14  ;;  %v2580_v4 = vmul.f32 -1.442695, %v738_v14 }
 0xa0b   :  { %v722_v62 = vpop.f32.mrf.mxu0  ;;  %v734_v63 = vpop.f32.mrf.mxu1 }
 0xa0c   :  { %v2786_v0 = vpop.eup %2785  ;;  %v740_v1 = vadd.f32 %v734_v63, %v171_v18 }
 0xa0d   :  { %785 = vrot.lane.b32.xlu1 %v2786_v0, %s3064_s0  ;;  %v147_v0 = vadd.f32 %v3333_v59, %v3205_v27 }
 0xa0e   :  { %2787 = vtanh.f32 %v740_v1  ;;  %v2581_v41 = vmul.f32 -1.442695, %v740_v1 }
 0xa10   :  { %2789 = vpow2.f32 %v2581_v41 }
 0xa14   :  { %v2788_v39 = vpop.eup %2787 }
 0xa15   :  { %787 = vrot.lane.b32.xlu2 %v2788_v39, %s3064_s0 }
 0xa16   :  { %v2790_v2 = vpop.eup %2789 }
 0xa17   :  { %v748_v3 = vadd.f32 1.0, %v2790_v2 }
 0xa19   :  { %2791 = vrcp.f32 %v748_v3  ;;  %v775_v13 = vand.u32 2147483648, %v748_v3  ;;  %vm769_vm4 = vweird.f32 %v748_v3  ;;  %v773_v16 = vand.u32 2147483647, %v748_v3 }
 0xa1a   :  { %2793 = vpow2.f32 %v2580_v4 }
 0xa1b   :  { %v776_v21 = vor.u32 1.1754944e-38, %v775_v13  ;;  %vm774_vm6 = vcmp.eq.f32.partialorder %v773_v16, 8.507059e+37 }
 0xa1f   :  { %v2792_v5 = vpop.eup %2791 }
 0xa20   :  { %v2794_v6 = vpop.eup %2793  ;;  %v765_v38 = vmul.f32 %v2792_v5, %v748_v3  ;;  %vm770_vm3 = vweird.f32 %v2792_v5 }
 0xa21   :  { %v747_v8 = vadd.f32 1.0, %v2794_v6  ;;  %vm771_vm5 = vmor %vm769_vm4, %vm770_vm3 }
 0xa22   :  { %v766_v9 = vsub.f32 1.0, %v765_v38 }
 0xa23   :  { %2795 = vrcp.f32 %v747_v8  ;;  %v760_v42 = vand.u32 2147483648, %v747_v8  ;;  %vm754_vm8 = vweird.f32 %v747_v8  ;;  %v758_v29 = vand.u32 2147483647, %v747_v8 }
 0xa24   :  { %v767_v10 = vmul.f32 %v2792_v5, %v766_v9 }
 0xa25   :  { %v761_v49 = vor.u32 1.1754944e-38, %v760_v42  ;;  %vm759_vm11 = vcmp.eq.f32.partialorder %v758_v29, 8.507059e+37 }
 0xa26   :  { %v768_v11 = vadd.f32 %v2792_v5, %v767_v10 }
 0xa28   :  { %v772_v17 = vsel %vm771_vm5, %v2792_v5, %v768_v11 }
 0xa29   :  { %v2796_v12 = vpop.eup %2795  ;;  %v777_v25 = vsel %vm774_vm6, %v776_v21, %v772_v17 }
 0xa2a   :  { %v750_v20 = vmul.f32 %v2796_v12, %v747_v8  ;;  %vm755_vm7 = vweird.f32 %v2796_v12  ;;  %v782_v54 = vmul.f32 %v777_v25, %v3320_v31 }
 0xa2b   :  { %vm756_vm10 = vmor %vm754_vm8, %vm755_vm7 }
 0xa2c   :  { %v751_v32 = vsub.f32 1.0, %v750_v20 }
 0xa2e   :  { %v752_v33 = vmul.f32 %v2796_v12, %v751_v32 }
 0xa30   :  { %v753_v37 = vadd.f32 %v2796_v12, %v752_v33 }
 0xa32   :  { %v757_v47 = vsel %vm756_vm10, %v2796_v12, %v753_v37 }
 0xa33   :  { %v762_v40 = vsel %vm759_vm11, %v761_v49, %v757_v47 }
 0xa34   :  { %v781_v58 = vmul.f32 %v762_v40, %v3315_v22 }
 0xa6f   :  { %v788_v23 = vpop.permute.xlu2 %787 }
 0xa70   :  { %v792_v28 = vmul.f32 %v788_v23, %v777_v25 }
 0xa72   :  { %797 = vrot.lane.b32.xlu1 %v792_v28, %s3065_s3 }
 0xa7f   :  { %v786_v50 = vpop.permute.xlu1 %785 }
 0xa80   :  { %v791_v53 = vmul.f32 %v786_v50, %v762_v40 }
 0xa82   :  { %795 = vrot.lane.b32.xlu0 %v791_v53, %s3065_s3 }
 0xae4   :  { %v798_v44 = vpop.permute.xlu1 %797 }
 0xae5   :  { %v3347_v57 = vadd.f32 %v798_v44, %v782_v54 }
 0xae7   :  { %2797 = vtanh.f32 %v3347_v57 }
 0xaed   :  { %v2798_v48 = vpop.eup %2797 }
 0xaee   :  { %809 = vrot.lane.b32.xlu0 %v2798_v48, %s3064_s0 }
 0xaf4   :  { %v796_v43 = vpop.permute.xlu0 %795 }
 0xaf5   :  { %v3352_v15 = vadd.f32 %v796_v43, %v781_v58 }
 0xaf7   :  { %2799 = vtanh.f32 %v3352_v15 }
 0xafd   :  { %v2800_v7 = vpop.eup %2799 }
 0xafe   :  { %807 = vrot.lane.b32.xlu2 %v2800_v7, %s3064_s0 }
 0xb58   :  { %v808_v14 = vpop.permute.xlu2 %807 }
 0xb59   :  { %v3356_v18 = vmul.f32 %v808_v14, %v762_v40 }
 0xb60   :  { %v810_v31 = vpop.permute.xlu0 %809 }
 0xb61   :  { %v3358_v62 = vmul.f32 %v810_v31, %v777_v25 }
 0xb63   :  { %v825_v63 = vpack.c.bf16 %v3358_v62, %v3356_v18 }
 0xb65   :  { %827 = vrot.lane.b32.xlu1 %v825_v63, %s3065_s3 }
 0xbd7   :  { %v828_v22 = vpop.permute.xlu1 %827 }
 0xbd8   :  { %2582 = vmatmul.msk.bf16.vlgmr.msra.gmra.mxu2 %vm223_vm9, %v828_v22  ;;  %2583 = vmatmul.msk.bf16.vlgmr.msra.gmra.mxu3 %vm223_vm9, %v828_v22 }
 0xc5b   :  { %v841_v1 = vpop.f32.mrf.mxu2  ;;  %v854_v39 = vpop.f32.mrf.mxu3 }
 0xc5c   :  { %v859_v41 = vadd.f32 %v841_v1, %v147_v0 }
 0xc5e   :  { %2801 = vtanh.f32 %v859_v41  ;;  %v2584_v38 = vmul.f32 -1.442695, %v859_v41 }
 0xc63   :  { %v843_v2 = vpop.f32.mrf.mxu2  ;;  %v855_v3 = vpop.f32.mrf.mxu3 }
 0xc64   :  { %v2802_v4 = vpop.eup %2801  ;;  %v861_v5 = vadd.f32 %v855_v3, %v3211_v35 }
 0xc65   :  { %906 = vrot.lane.b32.xlu2 %v2802_v4, %s3064_s0  ;;  %v150_v4 = vadd.f32 %v3335_v60, %v3205_v27 }
 0xc66   :  { %2803 = vtanh.f32 %v861_v5  ;;  %v2585_v12 = vmul.f32 -1.442695, %v861_v5 }
 0xc67   :  { %2805 = vpow2.f32 %v2584_v38 }
 0xc6c   :  { %v2804_v6 = vpop.eup %2803 }
 0xc6d   :  { %908 = vrot.lane.b32.xlu0 %v2804_v6, %s3064_s0  ;;  %v2806_v8 = vpop.eup %2805 }
 0xc6e   :  { %v868_v9 = vadd.f32 1.0, %v2806_v8  ;;  %v166_v8 = vadd.f32 %v3208_v30, %v3200_v24 }
 0xc70   :  { %2807 = vrcp.f32 %v868_v9  ;;  %v881_v35 = vand.u32 2147483648, %v868_v9  ;;  %vm875_vm13 = vweird.f32 %v868_v9  ;;  %v879_v17 = vand.u32 2147483647, %v868_v9 }
 0xc71   :  { %2809 = vpow2.f32 %v2585_v12 }
 0xc72   :  { %v882_v23 = vor.u32 1.1754944e-38, %v881_v35  ;;  %vm880_vm15 = vcmp.eq.f32.partialorder %v879_v17, 8.507059e+37 }
 0xc76   :  { %v2808_v59 = vpop.eup %2807 }
 0xc77   :  { %v871_v10 = vmul.f32 %v2808_v59, %v868_v9  ;;  %vm876_vm12 = vweird.f32 %v2808_v59  ;;  %v2810_v20 = vpop.eup %2809 }
 0xc78   :  { %vm877_vm14 = vmor %vm875_vm13, %vm876_vm12  ;;  %v869_v25 = vadd.f32 1.0, %v2810_v20 }
 0xc79   :  { %v872_v11 = vsub.f32 1.0, %v871_v10 }
 0xc7a   :  { %2811 = vrcp.f32 %v869_v25  ;;  %v896_v50 = vand.u32 2147483648, %v869_v25  ;;  %vm890_vm1 = vweird.f32 %v869_v25  ;;  %v894_v40 = vand.u32 2147483647, %v869_v25 }
 0xc7b   :  { %v873_v13 = vmul.f32 %v2808_v59, %v872_v11 }
 0xc7c   :  { %v897_v54 = vor.u32 1.1754944e-38, %v896_v50  ;;  %vm895_vm3 = vcmp.eq.f32.partialorder %v894_v40, 8.507059e+37 }
 0xc7d   :  { %v874_v16 = vadd.f32 %v2808_v59, %v873_v13 }
 0xc7f   :  { %v878_v21 = vsel %vm877_vm14, %v2808_v59, %v874_v16 }
 0xc80   :  { %v883_v32 = vsel %vm880_vm15, %v882_v23, %v878_v21  ;;  %v2812_v37 = vpop.eup %2811 }
 0xc81   :  { %v886_v42 = vmul.f32 %v2812_v37, %v869_v25  ;;  %vm891_vm0 = vweird.f32 %v2812_v37  ;;  %v902_v43 = vmul.f32 %v883_v32, %v3352_v15 }
 0xc82   :  { %vm892_vm2 = vmor %vm890_vm1, %vm891_vm0 }
 0xc83   :  { %v887_v29 = vsub.f32 1.0, %v886_v42 }
 0xc85   :  { %v888_v47 = vmul.f32 %v2812_v37, %v887_v29 }
 0xc87   :  { %v889_v49 = vadd.f32 %v2812_v37, %v888_v47 }
 0xc89   :  { %v893_v53 = vsel %vm892_vm2, %v2812_v37, %v889_v49 }
 0xc8a   :  { %v898_v48 = vsel %vm895_vm3, %v897_v54, %v893_v53 }
 0xc8b   :  { %v903_v31 = vmul.f32 %v898_v48, %v3347_v57 }
 0xcbf   :  { %v907_v28 = vpop.permute.xlu2 %906 }
 0xcc0   :  { %v912_v33 = vmul.f32 %v907_v28, %v883_v32 }
 0xcc2   :  { %916 = vrot.lane.b32.xlu1 %v912_v33, %s3065_s3 }
 0xcdf   :  { %v909_v44 = vpop.permute.xlu0 %908 }
 0xce0   :  { %v913_v58 = vmul.f32 %v909_v44, %v898_v48 }
 0xce2   :  { %918 = vrot.lane.b32.xlu2 %v913_v58, %s3065_s3 }
 0xd34   :  { %v917_v7 = vpop.permute.xlu1 %916 }
 0xd35   :  { %v3373_v14 = vadd.f32 %v917_v7, %v902_v43 }
 0xd37   :  { %2813 = vtanh.f32 %v3373_v14 }
 0xd3c   :  { %v919_v63 = vpop.permute.xlu2 %918 }
 0xd3d   :  { %v2814_v22 = vpop.eup %2813  ;;  %v3377_v0 = vadd.f32 %v919_v63, %v903_v31 }
 0xd3e   :  { %928 = vrot.lane.b32.xlu0 %v2814_v22, %s3064_s0 }
 0xd3f   :  { %2815 = vtanh.f32 %v3377_v0 }
 0xd45   :  { %v2816_v1 = vpop.eup %2815 }
 0xd46   :  { %930 = vrot.lane.b32.xlu1 %v2816_v1, %s3064_s0 }
 0xdb0   :  { %v929_v39 = vpop.permute.xlu0 %928 }
 0xdb1   :  { %v3382_v41 = vmul.f32 %v929_v39, %v883_v32 }
 0xdb8   :  { %v931_v15 = vpop.permute.xlu1 %930 }
 0xdb9   :  { %v3384_v2 = vmul.f32 %v931_v15, %v898_v48 }
 0xdbb   :  { %v946_v57 = vpack.c.bf16 %v3384_v2, %v3382_v41 }
 0xdbd   :  { %948 = vrot.lane.b32.xlu2 %v946_v57, %s3065_s3 }
 0xe17   :  { %v949_v3 = vpop.permute.xlu2 %948 }
 0xe18   :  { %2586 = vmatmul.msk.bf16.vlgmr.msra.gmra.mxu0 %vm223_vm9, %v949_v3  ;;  %2587 = vmatmul.msk.bf16.vlgmr.msra.gmra.mxu1 %vm223_vm9, %v949_v3 }
 0xe95   :  { %v962_v5 = vpop.f32.mrf.mxu0  ;;  %v975_v6 = vpop.f32.mrf.mxu1 }
 0xe96   :  { %v980_v38 = vadd.f32 %v962_v5, %v150_v4 }
 0xe98   :  { %2817 = vtanh.f32 %v980_v38  ;;  %v2588_v13 = vmul.f32 -1.442695, %v980_v38 }
 0xe9d   :  { %v964_v9 = vpop.f32.mrf.mxu0  ;;  %v976_v59 = vpop.f32.mrf.mxu1 }
 0xe9e   :  { %v2818_v10 = vpop.eup %2817  ;;  %v982_v11 = vadd.f32 %v976_v59, %v166_v8 }
 0xe9f   :  { %1027 = vrot.lane.b32.xlu0 %v2818_v10, %s3064_s0 }
 0xea0   :  { %2819 = vtanh.f32 %v982_v11  ;;  %v2589_v60 = vmul.f32 -1.442695, %v982_v11 }
 0xea1   :  { %2821 = vpow2.f32 %v2588_v13 }
 0xea2   :  { %2823 = vpow2.f32 %v2589_v60 }
 0xea6   :  { %v2820_v12 = vpop.eup %2819 }
 0xea7   :  { %1029 = vrot.lane.b32.xlu1 %v2820_v12, %s3064_s0  ;;  %v2822_v16 = vpop.eup %2821 }
 0xea8   :  { %v989_v35 = vadd.f32 1.0, %v2822_v16  ;;  %v2824_v17 = vpop.eup %2823 }
 0xea9   :  { %v990_v20 = vadd.f32 1.0, %v2824_v17 }
 0xeaa   :  { %2825 = vrcp.f32 %v989_v35  ;;  %v1002_v37 = vand.u32 2147483648, %v989_v35  ;;  %vm996_vm5 = vweird.f32 %v989_v35  ;;  %v1000_v42 = vand.u32 2147483647, %v989_v35 }
 0xeab   :  { %2827 = vrcp.f32 %v990_v20  ;;  %v1017_v44 = vand.u32 2147483648, %v990_v20  ;;  %vm1011_vm10 = vweird.f32 %v990_v20  ;;  %v1015_v48 = vand.u32 2147483647, %v990_v20 }
 0xeac   :  { %v1003_v49 = vor.u32 1.1754944e-38, %v1002_v37  ;;  %vm1001_vm7 = vcmp.eq.f32.partialorder %v1000_v42, 8.507059e+37 }
 0xead   :  { %v1018_v43 = vor.u32 1.1754944e-38, %v1017_v44  ;;  %vm1016_vm12 = vcmp.eq.f32.partialorder %v1015_v48, 8.507059e+37 }
 0xeb0   :  { %v2826_v24 = vpop.eup %2825 }
 0xeb1   :  { %v992_v30 = vmul.f32 %v2826_v24, %v989_v35  ;;  %v2828_v23 = vpop.eup %2827  ;;  %vm997_vm4 = vweird.f32 %v2826_v24 }
 0xeb2   :  { %v1007_v28 = vmul.f32 %v2828_v23, %v990_v20  ;;  %vm998_vm6 = vmor %vm996_vm5, %vm997_vm4  ;;  %vm1012_vm8 = vweird.f32 %v2828_v23 }
 0xeb3   :  { %v993_v21 = vsub.f32 1.0, %v992_v30  ;;  %vm1013_vm11 = vmor %vm1011_vm10, %vm1012_vm8 }
 0xeb4   :  { %v1008_v33 = vsub.f32 1.0, %v1007_v28 }
 0xeb5   :  { %v994_v25 = vmul.f32 %v2826_v24, %v993_v21 }
 0xeb6   :  { %v1009_v47 = vmul.f32 %v2828_v23, %v1008_v33 }
 0xeb7   :  { %v995_v32 = vadd.f32 %v2826_v24, %v994_v25 }
 0xeb8   :  { %v1010_v54 = vadd.f32 %v2828_v23, %v1009_v47 }
 0xeb9   :  { %v999_v29 = vsel %vm998_vm6, %v2826_v24, %v995_v32 }
 0xeba   :  { %v1004_v40 = vsel %vm1001_vm7, %v1003_v49, %v999_v29  ;;  %v1014_v58 = vsel %vm1013_vm11, %v2828_v23, %v1010_v54 }
 0xebb   :  { %v1019_v31 = vsel %vm1016_vm12, %v1018_v43, %v1014_v58  ;;  %v1023_v22 = vmul.f32 %v1004_v40, %v3373_v14 }
 0xebc   :  { %v1024_v57 = vmul.f32 %v1019_v31, %v3377_v0  ;;  %v152_v0 = vadd.f32 %v3337_v61, %v3205_v27 }
 0xf11   :  { %v1028_v50 = vpop.permute.xlu0 %1027 }
 0xf12   :  { %v1033_v53 = vmul.f32 %v1028_v50, %v1004_v40 }
 0xf14   :  { %1037 = vrot.lane.b32.xlu2 %v1033_v53, %s3065_s3 }
 0xf19   :  { %v1030_v7 = vpop.permute.xlu1 %1029 }
 0xf1a   :  { %v1034_v63 = vmul.f32 %v1030_v7, %v1019_v31 }
 0xf1c   :  { %1039 = vrot.lane.b32.xlu0 %v1034_v63, %s3065_s3 }
 0xf6e   :  { %v1038_v1 = vpop.permute.xlu2 %1037 }
 0xf6f   :  { %v3400_v39 = vadd.f32 %v1038_v1, %v1023_v22 }
 0xf71   :  { %2829 = vtanh.f32 %v3400_v39 }
 0xf77   :  { %v2830_v15 = vpop.eup %2829 }
 0xf78   :  { %1049 = vrot.lane.b32.xlu1 %v2830_v15, %s3064_s0 }
 0xf8e   :  { %v1040_v3 = vpop.permute.xlu0 %1039 }
 0xf8f   :  { %v3405_v4 = vadd.f32 %v1040_v3, %v1024_v57 }
 0xf91   :  { %2831 = vtanh.f32 %v3405_v4 }
 0xf97   :  { %v2832_v5 = vpop.eup %2831 }
 0xf98   :  { %1051 = vrot.lane.b32.xlu2 %v2832_v5, %s3064_s0  ;;  %v2701_v5 = vld [vmem:[%s3907_s4 + $0x4] sm:$0xf0] }
 0xfea   :  { %v1050_v6 = vpop.permute.xlu1 %1049 }
 0xfeb   :  { %v1055_v38 = vmul.f32 %v1050_v6, %v1004_v40 }
 0xff2   :  { %v1052_v14 = vpop.permute.xlu2 %1051 }
 0xff3   :  { %v1056_v8 = vmul.f32 %v1052_v14, %v1019_v31  ;;  %v2700_v14 = vld [vmem:[%s3907_s4 + $0x4] sm:$0xf] }
 0xff5   :  { %v1067_v9 = vpack.c.bf16 %v1056_v8, %v1055_v38 }
 0xff7   :  { %1069 = vrot.lane.b32.xlu0 %v1067_v9, %s3065_s3 }
0x1069   :  { %v1070_v59 = vpop.permute.xlu0 %1069 }
0x106a   :  { %2590 = vmatmul.msk.bf16.vlgmr.msrb.gmra.mxu2 %vm223_vm9, %v1070_v59  ;;  %2591 = vmatmul.msk.bf16.vlgmr.msrb.gmra.mxu3 %vm223_vm9, %v1070_v59 }
0x10ed   :  { %v1083_v10 = vpop.f32.mrf.mxu2  ;;  %v1096_v11 = vpop.f32.mrf.mxu3 }
0x10ee   :  { %v1101_v12 = vadd.f32 %v1083_v10, %v152_v0 }
0x10f0   :  { %2833 = vtanh.f32 %v1101_v12  ;;  %v2592_v27 = vmul.f32 -1.442695, %v1101_v12 }
0x10f5   :  { %v1085_v13 = vpop.f32.mrf.mxu2  ;;  %v1097_v60 = vpop.f32.mrf.mxu3 }
0x10f6   :  { %v2834_v16 = vpop.eup %2833  ;;  %v1103_v35 = vadd.f32 %v1097_v60, %v3203_v26 }
0x10f7   :  { %1148 = vrot.lane.b32.xlu0 %v2834_v16, %s3064_s0 }
0x10f8   :  { %2835 = vtanh.f32 %v1103_v35  ;;  %v2593_v26 = vmul.f32 -1.442695, %v1103_v35 }
0x10fa   :  { %2837 = vpow2.f32 %v2593_v26 }
0x10fb   :  { %2839 = vpow2.f32 %v2592_v27 }
0x10fe   :  { %v2836_v17 = vpop.eup %2835 }
0x10ff   :  { %1150 = vrot.lane.b32.xlu1 %v2836_v17, %s3064_s0  ;;  %1063 = vrot.lane.b32.xlu0 %v1056_v8, %s3065_s3 }
0x1100   :  { %v2838_v61 = vpop.eup %2837 }
0x1101   :  { %v1111_v20 = vadd.f32 1.0, %v2838_v61  ;;  %v2840_v24 = vpop.eup %2839 }
0x1103   :  { %2841 = vrcp.f32 %v1111_v20  ;;  %v1138_v33 = vand.u32 2147483648, %v1111_v20  ;;  %vm1132_vm14 = vweird.f32 %v1111_v20  ;;  %v1136_v37 = vand.u32 2147483647, %v1111_v20 }
0x1105   :  { %v1139_v47 = vor.u32 1.1754944e-38, %v1138_v33  ;;  %vm1137_vm0 = vcmp.eq.f32.partialorder %v1136_v37, 8.507059e+37 }
0x1107   :  { %453 = vrot.lane.b32.xlu0 %v3265_v45, %s3065_s3  ;;  %v1110_v45 = vadd.f32 1.0, %v2840_v24 }
0x1109   :  { %v2842_v30 = vpop.eup %2841  ;;  %2843 = vrcp.f32 %v1110_v45  ;;  %v1123_v44 = vand.u32 2147483648, %v1110_v45  ;;  %vm1117_vm2 = vweird.f32 %v1110_v45  ;;  %v1121_v48 = vand.u32 2147483647, %v1110_v45 }
0x110a   :  { %vm1133_vm13 = vweird.f32 %v2842_v30 }
0x110b   :  { %vm1134_vm15 = vmor %vm1132_vm14, %vm1133_vm13  ;;  %v1124_v43 = vor.u32 1.1754944e-38, %v1123_v44  ;;  %vm1122_vm4 = vcmp.eq.f32.partialorder %v1121_v48, 8.507059e+37 }
0x110f   :  { %942 = vrot.lane.b32.xlu0 %v3384_v2, %s3065_s3  ;;  %v1128_v2 = vmul.f32 %v2842_v30, %v1111_v20  ;;  %v2844_v23 = vpop.eup %2843 }
0x1110   :  { %vm1118_vm1 = vweird.f32 %v2844_v23 }
0x1111   :  { %v1129_v21 = vsub.f32 1.0, %v1128_v2  ;;  %vm1119_vm3 = vmor %vm1117_vm2, %vm1118_vm1  ;;  %v2707_v2 = vld [vmem:[%s3907_s4 + $0x34] sm:$0xf0] }
0x1113   :  { %v1130_v25 = vmul.f32 %v2842_v30, %v1129_v21  ;;  %v2706_v21 = vld [vmem:[%s3907_s4 + $0x34] sm:$0xf] }
0x1115   :  { %v1131_v32 = vadd.f32 %v2842_v30, %v1130_v25  ;;  %v2704_v25 = vld [vmem:[%s3907_s4 + $0x24] sm:$0xf] }
0x1117   :  { %579 = vrot.lane.b32.xlu0 %v3296_v52, %s3065_s3  ;;  %v1113_v52 = vmul.f32 %v2844_v23, %v1110_v45  ;;  %v1135_v29 = vsel %vm1134_vm15, %v2842_v30, %v1131_v32 }
0x1118   :  { %v3427_v50 = vsel %vm1137_vm0, %v1139_v47, %v1135_v29 }
0x1119   :  { %v1145_v59 = vmul.f32 %v3427_v50, %v3405_v4 }
0x111f   :  { %937 = vrot.lane.b32.xlu0 %v3382_v41, %s3065_s3  ;;  %v1114_v41 = vsub.f32 1.0, %v1113_v52 }
0x1121   :  { %v1115_v42 = vmul.f32 %v2844_v23, %v1114_v41 }
0x1123   :  { %v1116_v53 = vadd.f32 %v2844_v23, %v1115_v42 }
0x1125   :  { %v1120_v58 = vsel %vm1119_vm3, %v2844_v23, %v1116_v53 }
0x1126   :  { %v3432_v7 = vsel %vm1122_vm4, %v1124_v43, %v1120_v58 }
0x1127   :  { %1058 = vrot.lane.b32.xlu0 %v1055_v38, %s3065_s3  ;;  %v2622_v38 = vld [vmem:[%s3907_s4 + $0x8] sm:$0xf0]  ;;  %v1144_v61 = vmul.f32 %v3432_v7, %v3400_v39  ;;  %v2604_v39 = vld [vmem:[%s3907_s4 + $0x30] sm:$0xf] }
0x1128   :  { %v2625_v9 = vor.u32 %v2700_v14, %v2622_v38  ;;  %v2605_v23 = vor.u32 %v2707_v2, %v2604_v39  ;;  %v2708_v14 = vld [vmem:[#allocation10 + $0x4] sm:$0xf] }
0x112a   :  { %1258 = vmatpush.bf16.msrb.mxu0 %v2605_v23 }
0x1169   :  { %v1149_v28 = vpop.permute.xlu0 %1148 }
0x116a   :  { %v1154_v63 = vmul.f32 %v1149_v28, %v3432_v7  ;;  %v2598_v28 = vld [vmem:[%s3907_s4 + $0x28] sm:$0xf0] }
0x116b   :  { %v2601_v32 = vor.u32 %v2704_v25, %v2598_v28 }
0x1171   :  { %v1151_v49 = vpop.permute.xlu1 %1150  ;;  %v1064_v40 = vpop.permute.xlu0 %1063 }
0x1172   :  { %v1155_v54 = vmul.f32 %v1151_v49, %v3427_v50  ;;  %1066 = vst.msk [vmem:[#allocation4 + $0x8] sm:$0xff] %vm223_vm9, %v1064_v40 }
0x1174   :  { %1160 = vrot.lane.b32.xlu2 %v1155_v54, %s3065_s3 }
0x1179   :  { %v454_v31 = vpop.permute.xlu0 %453  ;;  %v1209_v29 = vld [vmem:[#allocation4 + $0x8] sm:$0xff] }
0x117a   :  { %456 = vst.msk [vmem:[#allocation3 + $0x8] sm:$0xff] %vm223_vm9, %v454_v31  ;;  %v2711_v31 = vld [vmem:[#allocation10 + $0x14] sm:$0xf0] }
0x117c   :  { %1158 = vrot.lane.b32.xlu2 %v1154_v63, %s3065_s3  ;;  %v2644_v63 = vld [vmem:[#allocation10] sm:$0xf] }
0x1181   :  { %v943_v22 = vpop.permute.xlu0 %942  ;;  %v1197_v35 = vld [vmem:[#allocation3 + $0x8] sm:$0xff] }
0x1182   :  { %945 = vst.msk [vmem:[#allocation4 + $0x10] sm:$0xff] %vm223_vm9, %v943_v22 }
0x1184   :  { %332 = vrot.lane.b32.xlu2 %v3236_v34, %s3065_s3  ;;  %v2628_v34 = vld [vmem:[%s3907_s4 + $0x10] sm:$0xf] }
0x1189   :  { %v580_v1 = vpop.permute.xlu0 %579  ;;  %v1210_v54 = vld [vmem:[#allocation4 + $0x10] sm:$0xff] }
0x118a   :  { %582 = vst.msk [vmem:[#allocation4 + $0x28] sm:$0xff] %vm223_vm9, %v580_v1  ;;  %v2709_v1 = vld [vmem:[#allocation10 + $0x4] sm:$0xf0] }
0x118c   :  { %821 = vrot.lane.b32.xlu2 %v3358_v62, %s3065_s3  ;;  %v2703_v62 = vld [vmem:[%s3907_s4 + $0x14] sm:$0xf0] }
0x118d   :  { %v2629_v3 = vor.u32 %v2703_v62, %v2628_v34 }
0x118f   :  { %1348 = vmatpush.bf16.msra.mxu2 %v2629_v3 }
0x1191   :  { %v938_v15 = vpop.permute.xlu0 %937 }
0x1192   :  { %940 = vst.msk [vmem:[#allocation3 + $0x28] sm:$0xff] %vm223_vm9, %v938_v15  ;;  %v3534_v15 = vor.u32 %v2709_v1, %v2644_v63 }
0x1194   :  { %695 = vrot.lane.b32.xlu2 %v3324_v55, %s3065_s3  ;;  %v2702_v55 = vld [vmem:[%s3907_s4 + $0x14] sm:$0xf] }
0x1199   :  { %v1059_v57 = vpop.permute.xlu0 %1058 }
0x119a   :  { %1061 = vst.msk [vmem:[#allocation3 + $0x30] sm:$0xff] %vm223_vm9, %v1059_v57 }
0x119c   :  { %816 = vrot.lane.b32.xlu2 %v3356_v18, %s3065_s3  ;;  %v2630_v18 = vld [vmem:[%s3907_s4 + $0x18] sm:$0xf0] }
0x119d   :  { %v2633_v6 = vor.u32 %v2702_v55, %v2630_v18  ;;  %v1213_v55 = vld [vmem:[#allocation4 + $0x28] sm:$0xff] }
0x119e   :  { %v1201_v18 = vld [vmem:[#allocation3 + $0x28] sm:$0xff] }
0x119f   :  { %1377 = vmatpush.bf16.msra.mxu3 %v2633_v6  ;;  %v2654_v6 = vld [vmem:[#allocation10 + $0x18] sm:$0xf0] }
0x11a3   :  { %1378 = vmatpush.bf16.msra.mxu3 %v2625_v9 }
0x11a4   :  { %458 = vrot.lane.b32.xlu2 %v3267_v46, %s3065_s3  ;;  %v2620_v46 = vld [vmem:[%s3907_s4] sm:$0xf] }
0x11a5   :  { %v2621_v8 = vor.u32 %v2701_v5, %v2620_v46  ;;  %v2710_v5 = vld [vmem:[#allocation10 + $0x14] sm:$0xf] }
0x11a6   :  { %v3548_v38 = vor.u32 %v2710_v5, %v2654_v6 }
0x11a7   :  { %1349 = vmatpush.bf16.msra.mxu2 %v2621_v8  ;;  %v2646_v8 = vld [vmem:[#allocation10 + $0x8] sm:$0xf0] }
0x11a8   :  { %v3551_v9 = vor.u32 %v2708_v14, %v2646_v8  ;;  %1602 = vmatpush.bf16.msrb.mxu3 %v3548_v38 }
0x11ac   :  { %1603 = vmatpush.bf16.msrb.mxu3 %v3551_v9 }
0x11ce   :  { %v1161_v0 = vpop.permute.xlu2 %1160 }
0x11cf   :  { %v1165_v10 = vadd.f32 %v1161_v0, %v1145_v59 }
0x11d1   :  { %2845 = vtanh.f32 %v1165_v10 }
0x11d6   :  { %v1159_v11 = vpop.permute.xlu2 %1158 }
0x11d7   :  { %v2846_v12 = vpop.eup %2845  ;;  %v1164_v20 = vadd.f32 %v1159_v11, %v1144_v61 }
0x11d8   :  { %1172 = vrot.lane.b32.xlu1 %v2846_v12, %s3064_s0 }
0x11d9   :  { %2847 = vtanh.f32 %v1164_v20 }
0x11de   :  { %v333_v13 = vpop.permute.xlu2 %332 }
0x11df   :  { %335 = vst.msk [vmem:[#allocation3] sm:$0xff] %vm223_vm9, %v333_v13  ;;  %v2848_v30 = vpop.eup %2847  ;;  %v1202_v13 = vld [vmem:[#allocation3 + $0x30] sm:$0xff] }
0x11e6   :  { %v822_v60 = vpop.permute.xlu2 %821  ;;  %v1196_v16 = vld [vmem:[#allocation3] sm:$0xff] }
0x11e7   :  { %824 = vst.msk [vmem:[#allocation4 + $0x18] sm:$0xff] %vm223_vm9, %v822_v60  ;;  %v1204_v17 = vpack.c.bf16 %v1197_v35, %v1196_v16 }
0x11e9   :  { %2634 = vmatmul.msk.bf16.vlgmr.msra.gmra.mxu2 %vm223_vm9, %v1204_v17  ;;  %2638 = vmatmul.msk.bf16.vlgmr.msra.gmra.mxu3 %vm223_vm9, %v1204_v17 }
0x11ea   :  { %1844 = vmatpush.bf16.msra.mxu3 %v3548_v38 }
0x11ee   :  { %v696_v4 = vpop.permute.xlu2 %695  ;;  %v1211_v40 = vld [vmem:[#allocation4 + $0x18] sm:$0xff]  ;;  %1845 = vmatpush.bf16.msra.mxu3 %v3551_v9 }
0x11ef   :  { %698 = vst.msk [vmem:[#allocation3 + $0x18] sm:$0xff] %vm223_vm9, %v696_v4  ;;  %v1217_v58 = vpack.c.bf16 %v1211_v40, %v1210_v54  ;;  %v1400_v54 = vld [vmem:[%s3909_s6] sm:$0x3] }
0x11f0   :  { %v3614_v5 = vperm.slane %v1400_v54, 1 }
0x11f6   :  { %v817_v26 = vpop.permute.xlu2 %816  ;;  %v1199_v48 = vld [vmem:[#allocation3 + $0x18] sm:$0xff] }
0x11f7   :  { %819 = vst.msk [vmem:[#allocation3 + $0x20] sm:$0xff] %vm223_vm9, %v817_v26 }
0x11fe   :  { %v459_v27 = vpop.permute.xlu2 %458  ;;  %v1200_v62 = vld [vmem:[#allocation3 + $0x20] sm:$0xff] }
0x11ff   :  { %461 = vst.msk [vmem:[#allocation4 + $0x30] sm:$0xff] %vm223_vm9, %v459_v27  ;;  %v1206_v46 = vpack.c.bf16 %v1201_v18, %v1200_v62 }
0x1206   :  { %v1214_v0 = vld [vmem:[#allocation4 + $0x30] sm:$0xff] }
0x124a   :  { %v1173_v24 = vpop.permute.xlu1 %1172 }
0x124b   :  { %v1177_v45 = vmul.f32 %v1173_v24, %v3427_v50 }
0x124d   :  { %1184 = vrot.lane.b32.xlu1 %v1177_v45, %s3065_s3 }
0x1255   :  { %1170 = vrot.lane.b32.xlu1 %v2848_v30, %s3064_s0 }
0x125d   :  { %574 = vrot.lane.b32.xlu1 %v3294_v51, %s3065_s3  ;;  %v2606_v51 = vld [vmem:[%s3907_s4 + $0x38] sm:$0xf0] }
0x125e   :  { %v2609_v52 = vor.u32 %v2706_v21, %v2606_v51 }
0x1260   :  { %1287 = vmatpush.bf16.msrb.mxu1 %v2609_v52 }
0x1264   :  { %1288 = vmatpush.bf16.msrb.mxu1 %v2601_v32 }
0x1265   :  { %700 = vrot.lane.b32.xlu1 %v3326_v56, %s3065_s3  ;;  %v2705_v56 = vld [vmem:[%s3907_s4 + $0x24] sm:$0xf0] }
0x1268   :  { %1481 = vmatpush.bf16.msra.mxu1 %v3548_v38 }
0x126c   :  { %1482 = vmatpush.bf16.msra.mxu1 %v3551_v9  ;;  %v3569_v12 = vpop.f32.mrf.mxu3 }
0x126d   :  { %337 = vrot.lane.b32.xlu1 %v3238_v36, %s3065_s3  ;;  %v2596_v36 = vld [vmem:[%s3907_s4 + $0x20] sm:$0xf] }
0x126e   :  { %v2597_v41 = vor.u32 %v2705_v56, %v2596_v36 }
0x1270   :  { %1259 = vmatpush.bf16.msrb.mxu0 %v2597_v41 }
0x1274   :  { %v1382_v4 = vpop.f32.mrf.mxu3 }
0x12bf   :  { %v1185_v33 = vpop.permute.xlu1 %1184 }
0x12c0   :  { %1187 = vst.msk [vmem:[#allocation4] sm:$0xff] %vm223_vm9, %v1185_v33 }
0x12c7   :  { %v1171_v37 = vpop.permute.xlu1 %1170  ;;  %v1208_v42 = vld [vmem:[#allocation4] sm:$0xff] }
0x12c8   :  { %v1176_v47 = vmul.f32 %v1171_v37, %v3432_v7  ;;  %v1216_v49 = vpack.c.bf16 %v1209_v29, %v1208_v42  ;;  %v2652_v7 = vld [vmem:[#allocation10 + $0x10] sm:$0xf] }
0x12c9   :  { %v3531_v22 = vor.u32 %v2711_v31, %v2652_v7 }
0x12ca   :  { %2610 = vmatmul.msk.bf16.vlgmr.msrb.gmra.mxu0 %vm223_vm9, %v1216_v49  ;;  %2614 = vmatmul.msk.bf16.vlgmr.msrb.gmra.mxu1 %vm223_vm9, %v1216_v49 }
0x12cb   :  { %1179 = vrot.lane.b32.xlu1 %v1176_v47, %s3065_s3  ;;  %1468 = vmatpush.bf16.msra.mxu0 %v3531_v22 }
0x12cc   :  { %1589 = vmatpush.bf16.msrb.mxu2 %v3531_v22  ;;  %1723 = vmatpush.bf16.msrb.mxu1 %v3548_v38 }
0x12cf   :  { %v575_v50 = vpop.permute.xlu1 %574  ;;  %1469 = vmatpush.bf16.msra.mxu0 %v3534_v15 }
0x12d0   :  { %577 = vst.msk [vmem:[#allocation3 + $0x10] sm:$0xff] %vm223_vm9, %v575_v50  ;;  %1590 = vmatpush.bf16.msrb.mxu2 %v3534_v15  ;;  %1724 = vmatpush.bf16.msrb.mxu1 %v3551_v9 }
0x12d3   :  { %1710 = vmatpush.bf16.msrb.mxu0 %v3531_v22 }
0x12d4   :  { %1831 = vmatpush.bf16.msra.mxu2 %v3531_v22 }
0x12d7   :  { %v701_v53 = vpop.permute.xlu1 %700  ;;  %v1198_v44 = vld [vmem:[#allocation3 + $0x10] sm:$0xff]  ;;  %1711 = vmatpush.bf16.msrb.mxu0 %v3534_v15 }
0x12d8   :  { %703 = vst.msk [vmem:[#allocation4 + $0x20] sm:$0xff] %vm223_vm9, %v701_v53  ;;  %v1205_v43 = vpack.c.bf16 %v1199_v48, %v1198_v44  ;;  %1832 = vmatpush.bf16.msra.mxu2 %v3534_v15  ;;  %v3606_v48 = vperm.slane %v1400_v54, 0 }
0x12da   :  { %2611 = vmatmul.msk.bf16.gmra.mxu0 %vm223_vm9, %v1217_v58  ;;  %2615 = vmatmul.msk.bf16.gmra.mxu1 %vm223_vm9, %v1217_v58 }
0x12db   :  { %2635 = vmatmul.msk.bf16.gmra.mxu2 %vm223_vm9, %v1205_v43  ;;  %2639 = vmatmul.msk.bf16.gmra.mxu3 %vm223_vm9, %v1205_v43 }
0x12df   :  { %v338_v57 = vpop.permute.xlu1 %337  ;;  %v1212_v34 = vld [vmem:[#allocation4 + $0x20] sm:$0xff] }
0x12e0   :  { %340 = vst.msk [vmem:[#allocation4 + $0x38] sm:$0xff] %vm223_vm9, %v338_v57  ;;  %v1218_v3 = vpack.c.bf16 %v1213_v55, %v1212_v34 }
0x12e7   :  { %v1215_v59 = vld [vmem:[#allocation4 + $0x38] sm:$0xff] }
0x12e8   :  { %v1219_v10 = vpack.c.bf16 %v1215_v59, %v1214_v0 }
0x12ea   :  { %2612 = vmatmul.msk.bf16.gmra.mxu0 %vm223_vm9, %v1218_v3  ;;  %2616 = vmatmul.msk.bf16.gmra.mxu1 %vm223_vm9, %v1218_v3 }
0x12eb   :  { %2636 = vmatmul.msk.bf16.gmra.mxu2 %vm223_vm9, %v1206_v46  ;;  %2640 = vmatmul.msk.bf16.gmra.mxu3 %vm223_vm9, %v1206_v46 }
0x12fa   :  { %2613 = vmatmul.msk.bf16.gmra.mxu0 %vm223_vm9, %v1219_v10  ;;  %2617 = vmatmul.msk.bf16.gmra.mxu1 %vm223_vm9, %v1219_v10 }
0x130a   :  { %1470 = vmatmul.bf16.vlgmr.msra.gmra.mxu0 %v3063_v19  ;;  %1483 = vmatmul.bf16.vlgmr.msra.gmra.mxu1 %v3063_v19  ;;  %v1351_v19 = vpop.f32.mrf.mxu2 }
0x130b   :  { %1965 = vmatpush.bf16.msra.mxu1 %v3548_v38  ;;  %1952 = vmatpush.bf16.msra.mxu0 %v3531_v22 }
0x130f   :  { %1966 = vmatpush.bf16.msra.mxu1 %v3551_v9  ;;  %1953 = vmatpush.bf16.msra.mxu0 %v3534_v15 }
0x1312   :  { %v3579_v20 = vpop.f32.mrf.mxu2 }
0x133d   :  { %v1180_v11 = vpop.permute.xlu1 %1179 }
0x133e   :  { %1182 = vst.msk [vmem:[#allocation3 + $0x38] sm:$0xff] %vm223_vm9, %v1180_v11 }
0x1345   :  { %v1203_v60 = vld [vmem:[#allocation3 + $0x38] sm:$0xff] }
0x1346   :  { %v1207_v16 = vpack.c.bf16 %v1203_v60, %v1202_v13 }
0x1347   :  { %v1261_v35 = vpop.f32.mrf.mxu0  ;;  %v3571_v17 = vpop.f32.mrf.mxu1 }
0x1348   :  { %2637 = vmatmul.msk.bf16.gmra.mxu2 %vm223_vm9, %v1207_v16  ;;  %2641 = vmatmul.msk.bf16.gmra.mxu3 %vm223_vm9, %v1207_v16  ;;  %v1352_v44 = vadd.f32 %v1351_v19, %v1261_v35 }
0x134a   :  { %v1406_v58 = vadd.f32 %v3606_v48, %v1352_v44 }
0x134f   :  { %v3575_v26 = vpop.f32.mrf.mxu0  ;;  %v1292_v27 = vpop.f32.mrf.mxu1 }
0x1350   :  { %v3577_v61 = vadd.f32 %v1382_v4, %v1292_v27 }
0x1357   :  { %v1266_v24 = vpop.f32.mrf.mxu0  ;;  %v1295_v45 = vpop.f32.mrf.mxu1 }
0x135e   :  { %v1356_v30 = vpop.f32.mrf.mxu2  ;;  %v1385_v39 = vpop.f32.mrf.mxu3 }
0x135f   :  { %v3581_v2 = vadd.f32 %v1356_v30, %v1266_v24  ;;  %v3583_v21 = vadd.f32 %v1385_v39, %v1295_v45  ;;  %v1268_v23 = vpop.f32.mrf.mxu0  ;;  %v1297_v51 = vpop.f32.mrf.mxu1 }
0x1366   :  { %v1358_v36 = vpop.f32.mrf.mxu2  ;;  %v1387_v56 = vpop.f32.mrf.mxu3 }
0x1367   :  { %v3585_v52 = vadd.f32 %v1358_v36, %v1268_v23  ;;  %v3587_v25 = vadd.f32 %v1387_v56, %v1297_v51  ;;  %v1271_v28 = vpop.f32.mrf.mxu0  ;;  %v1300_v41 = vpop.f32.mrf.mxu1 }
0x136e   :  { %v1361_v32 = vpop.f32.mrf.mxu2  ;;  %v1390_v33 = vpop.f32.mrf.mxu3 }
0x136f   :  { %v3589_v37 = vadd.f32 %v1361_v32, %v1271_v28  ;;  %v3591_v42 = vadd.f32 %v1390_v33, %v1300_v41  ;;  %v3593_v29 = vpop.f32.mrf.mxu0  ;;  %v3595_v47 = vpop.f32.mrf.mxu1 }
0x1376   :  { %v3610_v34 = vpop.f32.mrf.mxu3 }
0x1377   :  { %v3597_v49 = vpop.f32.mrf.mxu0  ;;  %v3599_v50 = vpop.f32.mrf.mxu1 }
0x137f   :  { %v3601_v40 = vpop.f32.mrf.mxu0  ;;  %v1307_v53 = vpop.f32.mrf.mxu1 }
0x1387   :  { %v1471_v43 = vpop.f32.mrf.mxu0  ;;  %v1484_v7 = vpop.f32.mrf.mxu1 }
0x1388   :  { %v1489_v31 = vadd.f32 %v1471_v43, %v1406_v58 }
0x138a   :  { %2849 = vtanh.f32 %v1489_v31  ;;  %v2658_v57 = vmul.f32 -1.442695, %v1489_v31 }
0x138c   :  { %2851 = vpow2.f32 %v2658_v57 }
0x138f   :  { %v1473_v63 = vpop.f32.mrf.mxu0  ;;  %v1485_v8 = vpop.f32.mrf.mxu1 }
0x1390   :  { %v2850_v1 = vpop.eup %2849 }
0x1391   :  { %1536 = vrot.lane.b32.xlu2 %v2850_v1, %s3064_s0 }
0x1392   :  { %v2852_v62 = vpop.eup %2851 }
0x1393   :  { %v1498_v55 = vadd.f32 1.0, %v2852_v62 }
0x1395   :  { %2853 = vrcp.f32 %v1498_v55  ;;  %v1511_v16 = vand.u32 2147483648, %v1498_v55  ;;  %vm1505_vm6 = vweird.f32 %v1498_v55  ;;  %v1509_v35 = vand.u32 2147483647, %v1498_v55 }
0x1397   :  { %v1512_v4 = vor.u32 1.1754944e-38, %v1511_v16  ;;  %vm1510_vm8 = vcmp.eq.f32.partialorder %v1509_v35, 8.507059e+37 }
0x139b   :  { %v2854_v6 = vpop.eup %2853 }
0x139c   :  { %v1501_v0 = vmul.f32 %v2854_v6, %v1498_v55  ;;  %vm1506_vm5 = vweird.f32 %v2854_v6 }
0x139d   :  { %vm1507_vm7 = vmor %vm1505_vm6, %vm1506_vm5 }
0x139e   :  { %v1502_v10 = vsub.f32 1.0, %v1501_v0 }
0x13a0   :  { %v1503_v13 = vmul.f32 %v2854_v6, %v1502_v10  ;;  %v3641_v10 = vpop.f32.mrf.mxu2 }
0x13a2   :  { %v1504_v60 = vadd.f32 %v2854_v6, %v1503_v13 }
0x13a4   :  { %v1508_v19 = vsel %vm1507_vm7, %v2854_v6, %v1504_v60  ;;  %v1354_v60 = vadd.f32 %v3579_v20, %v3575_v26 }
0x13a5   :  { %v1513_v24 = vsel %vm1510_vm8, %v1512_v4, %v1508_v19 }
0x13a6   :  { %v1532_v7 = vmul.f32 0.0, %v1513_v24  ;;  %v1408_v16 = vadd.f32 %v3606_v48, %v1354_v60 }
0x13cb   :  { %v3612_v3 = vpop.f32.mrf.mxu3 }
0x13d3   :  { %v1397_v18 = vpop.f32.mrf.mxu3 }
0x13d4   :  { %v1398_v46 = vadd.f32 %v1397_v18, %v1307_v53 }
0x13d6   :  { %v1421_v14 = vadd.f32 %v3614_v5, %v1398_v46 }
0x13d8   :  { %v1491_v59 = vadd.f32 %v1485_v8, %v1421_v14 }
0x13da   :  { %2855 = vtanh.f32 %v1491_v59  ;;  %v2659_v30 = vmul.f32 -1.442695, %v1491_v59 }
0x13dc   :  { %2857 = vpow2.f32 %v2659_v30 }
0x13e0   :  { %v2856_v11 = vpop.eup %2855 }
0x13e1   :  { %1538 = vrot.lane.b32.xlu0 %v2856_v11, %s3064_s0  ;;  %v3643_v11 = vpop.f32.mrf.mxu2 }
0x13e2   :  { %v2858_v39 = vpop.eup %2857 }
0x13e3   :  { %v1499_v23 = vadd.f32 1.0, %v2858_v39 }
0x13e5   :  { %2859 = vrcp.f32 %v1499_v23  ;;  %v1526_v32 = vand.u32 2147483648, %v1499_v23  ;;  %vm1520_vm11 = vweird.f32 %v1499_v23  ;;  %v1524_v33 = vand.u32 2147483647, %v1499_v23 }
0x13e7   :  { %v1527_v54 = vor.u32 1.1754944e-38, %v1526_v32  ;;  %vm1525_vm13 = vcmp.eq.f32.partialorder %v1524_v33, 8.507059e+37 }
0x13e9   :  { %v3645_v13 = vpop.f32.mrf.mxu2 }
0x13eb   :  { %v1537_v27 = vpop.permute.xlu2 %1536  ;;  %v2860_v51 = vpop.eup %2859 }
0x13ec   :  { %v1542_v45 = vmul.f32 %v1537_v27, %v1513_v24  ;;  %v1516_v36 = vmul.f32 %v2860_v51, %v1499_v23  ;;  %vm1521_vm10 = vweird.f32 %v2860_v51  ;;  %v1396_v27 = vadd.f32 %v3612_v3, %v3599_v50 }
0x13ed   :  { %vm1522_vm12 = vmor %vm1520_vm11, %vm1521_vm10 }
0x13ee   :  { %1546 = vrot.lane.b32.xlu1 %v1542_v45, %s3065_s3  ;;  %v1517_v56 = vsub.f32 1.0, %v1516_v36 }
0x13f0   :  { %v1518_v28 = vmul.f32 %v2860_v51, %v1517_v56 }
0x13f2   :  { %v1519_v41 = vadd.f32 %v2860_v51, %v1518_v28 }
0x13f4   :  { %v1523_v53 = vsel %vm1522_vm12, %v2860_v51, %v1519_v41 }
0x13f5   :  { %v1528_v58 = vsel %vm1525_vm13, %v1527_v54, %v1523_v53 }
0x13f6   :  { %v1533_v57 = vmul.f32 0.0, %v1528_v58 }
0x1453   :  { %v1539_v44 = vpop.permute.xlu0 %1538 }
0x1454   :  { %v1543_v43 = vmul.f32 %v1539_v44, %v1528_v58 }
0x1456   :  { %1548 = vrot.lane.b32.xlu2 %v1543_v43, %s3065_s3 }
0x1460   :  { %v1547_v31 = vpop.permute.xlu1 %1546 }
0x1461   :  { %v3620_v63 = vadd.f32 %v1547_v31, %v1532_v7 }
0x1463   :  { %2861 = vtanh.f32 %v3620_v63 }
0x1469   :  { %v2862_v1 = vpop.eup %2861 }
0x146a   :  { %1558 = vrot.lane.b32.xlu0 %v2862_v1, %s3064_s0 }
0x14b0   :  { %v1549_v62 = vpop.permute.xlu2 %1548 }
0x14b1   :  { %v3624_v55 = vadd.f32 %v1549_v62, %v1533_v57 }
0x14b3   :  { %2863 = vtanh.f32 %v3624_v55 }
0x14b9   :  { %v2864_v18 = vpop.eup %2863 }
0x14ba   :  { %1560 = vrot.lane.b32.xlu1 %v2864_v18, %s3064_s0 }
0x14dc   :  { %v1559_v46 = vpop.permute.xlu0 %1558 }
0x14dd   :  { %v3628_v14 = vmul.f32 %v1559_v46, %v1513_v24  ;;  %v1419_v24 = vadd.f32 %v3614_v5, %v1396_v27 }
0x152c   :  { %v1561_v6 = vpop.permute.xlu1 %1560 }
0x152d   :  { %v3630_v8 = vmul.f32 %v1561_v6, %v1528_v58 }
0x152f   :  { %v1576_v59 = vpack.c.bf16 %v3630_v8, %v3628_v14 }
0x1531   :  { %1578 = vrot.lane.b32.xlu2 %v1576_v59, %s3065_s3 }
0x158b   :  { %v1579_v0 = vpop.permute.xlu2 %1578 }
0x158c   :  { %2660 = vmatmul.msk.bf16.vlgmr.msrb.gmra.mxu2 %vm223_vm9, %v1579_v0  ;;  %2661 = vmatmul.msk.bf16.vlgmr.msrb.gmra.mxu3 %vm223_vm9, %v1579_v0 }
0x158d   :  { %2086 = vmatpush.bf16.msrb.mxu3 %v3548_v38  ;;  %2073 = vmatpush.bf16.msrb.mxu2 %v3531_v22 }
0x1591   :  { %2087 = vmatpush.bf16.msrb.mxu3 %v3551_v9  ;;  %2074 = vmatpush.bf16.msrb.mxu2 %v3534_v15 }
0x160f   :  { %v1592_v35 = vpop.f32.mrf.mxu2  ;;  %v1605_v19 = vpop.f32.mrf.mxu3 }
0x1610   :  { %v1610_v4 = vadd.f32 %v1592_v35, %v1408_v16 }
0x1612   :  { %2865 = vtanh.f32 %v1610_v4  ;;  %v2662_v26 = vmul.f32 -1.442695, %v1610_v4 }
0x1617   :  { %v1594_v45 = vpop.f32.mrf.mxu2  ;;  %v1606_v30 = vpop.f32.mrf.mxu3 }
0x1618   :  { %v2866_v39 = vpop.eup %2865  ;;  %v1612_v23 = vadd.f32 %v1606_v30, %v1419_v24 }
0x1619   :  { %1657 = vrot.lane.b32.xlu0 %v2866_v39, %s3064_s0 }
0x161a   :  { %2867 = vtanh.f32 %v1612_v23  ;;  %v2663_v20 = vmul.f32 -1.442695, %v1612_v23 }
0x161b   :  { %2869 = vpow2.f32 %v2662_v26 }
0x161c   :  { %2871 = vpow2.f32 %v2663_v20 }
0x1620   :  { %v2868_v51 = vpop.eup %2867 }
0x1621   :  { %1659 = vrot.lane.b32.xlu1 %v2868_v51, %s3064_s0  ;;  %v2870_v36 = vpop.eup %2869 }
0x1622   :  { %v1619_v56 = vadd.f32 1.0, %v2870_v36  ;;  %v2872_v50 = vpop.eup %2871 }
0x1623   :  { %v1620_v3 = vadd.f32 1.0, %v2872_v50 }
0x1624   :  { %2873 = vrcp.f32 %v1619_v56  ;;  %v1632_v43 = vand.u32 2147483648, %v1619_v56  ;;  %vm1626_vm15 = vweird.f32 %v1619_v56  ;;  %v1630_v7 = vand.u32 2147483647, %v1619_v56 }
0x1625   :  { %2875 = vrcp.f32 %v1620_v3  ;;  %v1647_v59 = vand.u32 2147483648, %v1620_v3  ;;  %vm1641_vm3 = vweird.f32 %v1620_v3  ;;  %v1645_v0 = vand.u32 2147483647, %v1620_v3 }
0x1626   :  { %v1633_v57 = vor.u32 1.1754944e-38, %v1632_v43  ;;  %vm1631_vm1 = vcmp.eq.f32.partialorder %v1630_v7, 8.507059e+37 }
0x1627   :  { %v1648_v16 = vor.u32 1.1754944e-38, %v1647_v59  ;;  %vm1646_vm5 = vcmp.eq.f32.partialorder %v1645_v0, 8.507059e+37 }
0x162a   :  { %v2874_v28 = vpop.eup %2873 }
0x162b   :  { %v1622_v41 = vmul.f32 %v2874_v28, %v1619_v56  ;;  %v2876_v33 = vpop.eup %2875  ;;  %vm1627_vm14 = vweird.f32 %v2874_v28 }
0x162c   :  { %v1637_v54 = vmul.f32 %v2876_v33, %v1620_v3  ;;  %vm1628_vm0 = vmor %vm1626_vm15, %vm1627_vm14  ;;  %vm1642_vm2 = vweird.f32 %v2876_v33  ;;  %v1410_v3 = vadd.f32 %v3606_v48, %v3581_v2 }
0x162d   :  { %v1623_v32 = vsub.f32 1.0, %v1622_v41  ;;  %vm1643_vm4 = vmor %vm1641_vm3, %vm1642_vm2 }
0x162e   :  { %v1638_v58 = vsub.f32 1.0, %v1637_v54 }
0x162f   :  { %v1624_v53 = vmul.f32 %v2874_v28, %v1623_v32 }
0x1630   :  { %v1639_v1 = vmul.f32 %v2876_v33, %v1638_v58 }
0x1631   :  { %v1625_v44 = vadd.f32 %v2874_v28, %v1624_v53 }
0x1632   :  { %v1640_v6 = vadd.f32 %v2876_v33, %v1639_v1 }
0x1633   :  { %v1629_v31 = vsel %vm1628_vm0, %v2874_v28, %v1625_v44 }
0x1634   :  { %v1634_v18 = vsel %vm1631_vm1, %v1633_v57, %v1629_v31  ;;  %v1644_v60 = vsel %vm1643_vm4, %v2876_v33, %v1640_v6  ;;  %v1393_v33 = vadd.f32 %v3610_v34, %v3595_v47 }
0x1635   :  { %v1649_v19 = vsel %vm1646_vm5, %v1648_v16, %v1644_v60  ;;  %v1653_v27 = vmul.f32 %v1634_v18, %v3620_v63 }
0x1636   :  { %v1654_v39 = vmul.f32 %v1649_v19, %v3624_v55  ;;  %v1417_v53 = vadd.f32 %v3614_v5, %v1393_v33 }
0x168b   :  { %v1658_v62 = vpop.permute.xlu0 %1657 }
0x168c   :  { %v1663_v46 = vmul.f32 %v1658_v62, %v1634_v18 }
0x168e   :  { %1667 = vrot.lane.b32.xlu2 %v1663_v46, %s3065_s3 }
0x1693   :  { %v1660_v35 = vpop.permute.xlu1 %1659 }
0x1694   :  { %v1664_v4 = vmul.f32 %v1660_v35, %v1649_v19 }
0x1696   :  { %1669 = vrot.lane.b32.xlu0 %v1664_v4, %s3065_s3 }
0x16e8   :  { %v1668_v24 = vpop.permute.xlu2 %1667 }
0x16e9   :  { %v3658_v45 = vadd.f32 %v1668_v24, %v1653_v27 }
0x16eb   :  { %2877 = vtanh.f32 %v3658_v45 }
0x16f1   :  { %v2878_v30 = vpop.eup %2877 }
0x16f2   :  { %1679 = vrot.lane.b32.xlu1 %v2878_v30, %s3064_s0 }
0x1708   :  { %v1670_v23 = vpop.permute.xlu0 %1669 }
0x1709   :  { %v3663_v51 = vadd.f32 %v1670_v23, %v1654_v39 }
0x170b   :  { %2879 = vtanh.f32 %v3663_v51 }
0x1711   :  { %v2880_v26 = vpop.eup %2879 }
0x1712   :  { %1681 = vrot.lane.b32.xlu2 %v2880_v26, %s3064_s0 }
0x1764   :  { %v1680_v20 = vpop.permute.xlu1 %1679 }
0x1765   :  { %v3667_v36 = vmul.f32 %v1680_v20, %v1634_v18 }
0x176c   :  { %v1682_v63 = vpop.permute.xlu2 %1681 }
0x176d   :  { %v3669_v56 = vmul.f32 %v1682_v63, %v1649_v19 }
0x176f   :  { %v1697_v50 = vpack.c.bf16 %v3669_v56, %v3667_v36 }
0x1771   :  { %1699 = vrot.lane.b32.xlu0 %v1697_v50, %s3065_s3 }
0x17e3   :  { %v1700_v55 = vpop.permute.xlu0 %1699 }
0x17e4   :  { %2664 = vmatmul.msk.bf16.vlgmr.msrb.gmra.mxu0 %vm223_vm9, %v1700_v55  ;;  %2665 = vmatmul.msk.bf16.vlgmr.msrb.gmra.mxu1 %vm223_vm9, %v1700_v55 }
0x17e5   :  { %2207 = vmatpush.bf16.msrb.mxu1 %v3548_v38  ;;  %2194 = vmatpush.bf16.msrb.mxu0 %v3531_v22 }
0x17e9   :  { %2208 = vmatpush.bf16.msrb.mxu1 %v3551_v9  ;;  %2195 = vmatpush.bf16.msrb.mxu0 %v3534_v15 }
0x1861   :  { %v1713_v28 = vpop.f32.mrf.mxu0  ;;  %v1726_v41 = vpop.f32.mrf.mxu1 }
0x1862   :  { %v1731_v32 = vadd.f32 %v1713_v28, %v1410_v3 }
0x1864   :  { %2881 = vtanh.f32 %v1731_v32  ;;  %v2666_v57 = vmul.f32 -1.442695, %v1731_v32 }
0x1869   :  { %v1715_v54 = vpop.f32.mrf.mxu0  ;;  %v1727_v44 = vpop.f32.mrf.mxu1 }
0x186a   :  { %v2882_v58 = vpop.eup %2881  ;;  %v1733_v43 = vadd.f32 %v1727_v44, %v1417_v53 }
0x186b   :  { %1778 = vrot.lane.b32.xlu1 %v2882_v58, %s3064_s0 }
0x186c   :  { %2883 = vtanh.f32 %v1733_v43  ;;  %v2667_v2 = vmul.f32 -1.442695, %v1733_v43 }
0x186e   :  { %2885 = vpow2.f32 %v2667_v2 }
0x1872   :  { %v2884_v7 = vpop.eup %2883 }
0x1873   :  { %1780 = vrot.lane.b32.xlu2 %v2884_v7, %s3064_s0 }
0x1874   :  { %v2886_v31 = vpop.eup %2885 }
0x1875   :  { %v1741_v1 = vadd.f32 1.0, %v2886_v31 }
0x1877   :  { %2887 = vrcp.f32 %v1741_v1  ;;  %v1768_v60 = vand.u32 2147483648, %v1741_v1  ;;  %vm1762_vm7 = vweird.f32 %v1741_v1  ;;  %v1766_v16 = vand.u32 2147483647, %v1741_v1 }
0x1878   :  { %2889 = vpow2.f32 %v2666_v57 }
0x1879   :  { %v1769_v4 = vor.u32 1.1754944e-38, %v1768_v60  ;;  %vm1767_vm10 = vcmp.eq.f32.partialorder %v1766_v16, 8.507059e+37 }
0x187d   :  { %v2888_v47 = vpop.eup %2887 }
0x187e   :  { %v2890_v34 = vpop.eup %2889  ;;  %v1758_v62 = vmul.f32 %v2888_v47, %v1741_v1  ;;  %vm1763_vm6 = vweird.f32 %v2888_v47 }
0x187f   :  { %v1740_v18 = vadd.f32 1.0, %v2890_v34  ;;  %vm1764_vm8 = vmor %vm1762_vm7, %vm1763_vm6 }
0x1880   :  { %v1759_v46 = vsub.f32 1.0, %v1758_v62 }
0x1881   :  { %2891 = vrcp.f32 %v1740_v18  ;;  %v1753_v20 = vand.u32 2147483648, %v1740_v18  ;;  %vm1747_vm12 = vweird.f32 %v1740_v18  ;;  %v1751_v63 = vand.u32 2147483647, %v1740_v18 }
0x1882   :  { %v1760_v6 = vmul.f32 %v2888_v47, %v1759_v46  ;;  %v1415_v46 = vadd.f32 %v3614_v5, %v3591_v42 }
0x1883   :  { %v1754_v55 = vor.u32 1.1754944e-38, %v1753_v20  ;;  %vm1752_vm14 = vcmp.eq.f32.partialorder %v1751_v63, 8.507059e+37 }
0x1884   :  { %v1761_v59 = vadd.f32 %v2888_v47, %v1760_v6 }
0x1886   :  { %v1765_v35 = vsel %vm1764_vm8, %v2888_v47, %v1761_v59  ;;  %v1412_v47 = vadd.f32 %v3606_v48, %v3585_v52 }
0x1887   :  { %v2892_v0 = vpop.eup %2891  ;;  %v1770_v24 = vsel %vm1767_vm10, %v1769_v4, %v1765_v35 }
0x1888   :  { %v1743_v19 = vmul.f32 %v2892_v0, %v1740_v18  ;;  %vm1748_vm11 = vweird.f32 %v2892_v0  ;;  %v1775_v32 = vmul.f32 %v1770_v24, %v3663_v51 }
0x1889   :  { %vm1749_vm13 = vmor %vm1747_vm12, %vm1748_vm11 }
0x188a   :  { %v1744_v39 = vsub.f32 1.0, %v1743_v19 }
0x188c   :  { %v1745_v23 = vmul.f32 %v2892_v0, %v1744_v39 }
0x188e   :  { %v1746_v26 = vadd.f32 %v2892_v0, %v1745_v23 }
0x1890   :  { %v1750_v50 = vsel %vm1749_vm13, %v2892_v0, %v1746_v26 }
0x1891   :  { %v1755_v28 = vsel %vm1752_vm14, %v1754_v55, %v1750_v50 }
0x1892   :  { %v1774_v44 = vmul.f32 %v1755_v28, %v3658_v45 }
0x18cd   :  { %v1781_v27 = vpop.permute.xlu2 %1780 }
0x18ce   :  { %v1785_v30 = vmul.f32 %v1781_v27, %v1770_v24 }
0x18d0   :  { %1790 = vrot.lane.b32.xlu1 %v1785_v30, %s3065_s3 }
0x18dd   :  { %v1779_v3 = vpop.permute.xlu1 %1778 }
0x18de   :  { %v1784_v41 = vmul.f32 %v1779_v3, %v1755_v28 }
0x18e0   :  { %1788 = vrot.lane.b32.xlu0 %v1784_v41, %s3065_s3 }
0x1942   :  { %v1791_v33 = vpop.permute.xlu1 %1790 }
0x1943   :  { %v3690_v53 = vadd.f32 %v1791_v33, %v1775_v32 }
0x1945   :  { %2893 = vtanh.f32 %v3690_v53 }
0x194b   :  { %v2894_v54 = vpop.eup %2893 }
0x194c   :  { %1802 = vrot.lane.b32.xlu0 %v2894_v54, %s3064_s0 }
0x1952   :  { %v1789_v58 = vpop.permute.xlu0 %1788 }
0x1953   :  { %v3695_v43 = vadd.f32 %v1789_v58, %v1774_v44 }
0x1955   :  { %2895 = vtanh.f32 %v3695_v43 }
0x195b   :  { %v2896_v7 = vpop.eup %2895 }
0x195c   :  { %1800 = vrot.lane.b32.xlu2 %v2896_v7, %s3064_s0 }
0x19b6   :  { %v1801_v2 = vpop.permute.xlu2 %1800 }
0x19b7   :  { %v3699_v31 = vmul.f32 %v1801_v2, %v1755_v28 }
0x19be   :  { %v1803_v51 = vpop.permute.xlu0 %1802 }
0x19bf   :  { %v3701_v1 = vmul.f32 %v1803_v51, %v1770_v24 }
0x19c1   :  { %v1818_v57 = vpack.c.bf16 %v3701_v1, %v3699_v31 }
0x19c3   :  { %1820 = vrot.lane.b32.xlu1 %v1818_v57, %s3065_s3 }
0x1a35   :  { %v1821_v45 = vpop.permute.xlu1 %1820 }
0x1a36   :  { %2668 = vmatmul.msk.bf16.vlgmr.msra.gmra.mxu2 %vm223_vm9, %v1821_v45  ;;  %2669 = vmatmul.msk.bf16.vlgmr.msra.gmra.mxu3 %vm223_vm9, %v1821_v45 }
0x1a37   :  { %2315 = vmatpush.bf16.msra.mxu2 %v3531_v22  ;;  %2328 = vmatpush.bf16.msra.mxu3 %v3548_v38 }
0x1a3b   :  { %2316 = vmatpush.bf16.msra.mxu2 %v3534_v15  ;;  %2329 = vmatpush.bf16.msra.mxu3 %v3551_v9 }
0x1ab9   :  { %v1834_v34 = vpop.f32.mrf.mxu2  ;;  %v1847_v62 = vpop.f32.mrf.mxu3 }
0x1aba   :  { %v1852_v18 = vadd.f32 %v1834_v34, %v1412_v47 }
0x1abc   :  { %2897 = vtanh.f32 %v1852_v18  ;;  %v2670_v38 = vmul.f32 -1.442695, %v1852_v18 }
0x1ac1   :  { %v1836_v6 = vpop.f32.mrf.mxu2  ;;  %v1848_v59 = vpop.f32.mrf.mxu3 }
0x1ac2   :  { %v2898_v0 = vpop.eup %2897  ;;  %v1854_v22 = vadd.f32 %v1848_v59, %v1415_v46 }
0x1ac3   :  { %1899 = vrot.lane.b32.xlu2 %v2898_v0, %s3064_s0 }
0x1ac4   :  { %2899 = vtanh.f32 %v1854_v22  ;;  %v2671_v19 = vmul.f32 -1.442695, %v1854_v22 }
0x1ac5   :  { %2901 = vpow2.f32 %v2670_v38  ;;  %v1414_v38 = vadd.f32 %v3606_v48, %v3589_v37 }
0x1aca   :  { %v2900_v15 = vpop.eup %2899 }
0x1acb   :  { %1901 = vrot.lane.b32.xlu0 %v2900_v15, %s3064_s0  ;;  %v2902_v9 = vpop.eup %2901 }
0x1acc   :  { %v1861_v52 = vadd.f32 1.0, %v2902_v9 }
0x1ace   :  { %2903 = vrcp.f32 %v1861_v52  ;;  %v1874_v27 = vand.u32 2147483648, %v1861_v52  ;;  %vm1868_vm0 = vweird.f32 %v1861_v52  ;;  %v1872_v24 = vand.u32 2147483647, %v1861_v52 }
0x1acf   :  { %2905 = vpow2.f32 %v2671_v19 }
0x1ad0   :  { %v1875_v23 = vor.u32 1.1754944e-38, %v1874_v27  ;;  %vm1873_vm2 = vcmp.eq.f32.partialorder %v1872_v24, 8.507059e+37 }
0x1ad4   :  { %v2904_v60 = vpop.eup %2903 }
0x1ad5   :  { %v1864_v16 = vmul.f32 %v2904_v60, %v1861_v52  ;;  %vm1869_vm15 = vweird.f32 %v2904_v60  ;;  %v2906_v30 = vpop.eup %2905 }
0x1ad6   :  { %vm1870_vm1 = vmor %vm1868_vm0, %vm1869_vm15  ;;  %v1862_v26 = vadd.f32 1.0, %v2906_v30 }
0x1ad7   :  { %v1865_v35 = vsub.f32 1.0, %v1864_v16  ;;  %v1413_v16 = vadd.f32 %v3614_v5, %v3587_v25 }
0x1ad8   :  { %2907 = vrcp.f32 %v1862_v26  ;;  %v1889_v33 = vand.u32 2147483648, %v1862_v26  ;;  %vm1883_vm4 = vweird.f32 %v1862_v26  ;;  %v1887_v54 = vand.u32 2147483647, %v1862_v26 }
0x1ad9   :  { %v1866_v42 = vmul.f32 %v2904_v60, %v1865_v35 }
0x1ada   :  { %v1890_v58 = vor.u32 1.1754944e-38, %v1889_v33  ;;  %vm1888_vm6 = vcmp.eq.f32.partialorder %v1887_v54, 8.507059e+37 }
0x1adb   :  { %v1867_v4 = vadd.f32 %v2904_v60, %v1866_v42 }
0x1add   :  { %v1871_v39 = vsel %vm1870_vm1, %v2904_v60, %v1867_v4 }
0x1ade   :  { %v1876_v63 = vsel %vm1873_vm2, %v1875_v23, %v1871_v39  ;;  %v2908_v55 = vpop.eup %2907 }
0x1adf   :  { %v1879_v3 = vmul.f32 %v2908_v55, %v1862_v26  ;;  %vm1884_vm3 = vweird.f32 %v2908_v55  ;;  %v1895_v57 = vmul.f32 %v1876_v63, %v3695_v43 }
0x1ae0   :  { %vm1885_vm5 = vmor %vm1883_vm4, %vm1884_vm3 }
0x1ae1   :  { %v1880_v28 = vsub.f32 1.0, %v1879_v3 }
0x1ae3   :  { %v1881_v41 = vmul.f32 %v2908_v55, %v1880_v28 }
0x1ae5   :  { %v1882_v32 = vadd.f32 %v2908_v55, %v1881_v41 }
0x1ae7   :  { %v1886_v44 = vsel %vm1885_vm5, %v2908_v55, %v1882_v32 }
0x1ae8   :  { %v1891_v2 = vsel %vm1888_vm6, %v1890_v58, %v1886_v44 }
0x1ae9   :  { %v1896_v34 = vmul.f32 %v1891_v2, %v3690_v53 }
0x1b1d   :  { %v1900_v20 = vpop.permute.xlu2 %1899 }
0x1b1e   :  { %v1905_v50 = vmul.f32 %v1900_v20, %v1876_v63 }
0x1b20   :  { %1909 = vrot.lane.b32.xlu1 %v1905_v50, %s3065_s3 }
0x1b3d   :  { %v1902_v7 = vpop.permute.xlu0 %1901 }
0x1b3e   :  { %v1906_v51 = vmul.f32 %v1902_v7, %v1891_v2 }
0x1b40   :  { %1911 = vrot.lane.b32.xlu2 %v1906_v51, %s3065_s3 }
0x1b92   :  { %v1910_v45 = vpop.permute.xlu1 %1909 }
0x1b93   :  { %v3721_v47 = vadd.f32 %v1910_v45, %v1895_v57 }
0x1b95   :  { %2909 = vtanh.f32 %v3721_v47 }
0x1b9a   :  { %v1912_v62 = vpop.permute.xlu2 %1911 }
0x1b9b   :  { %v2910_v18 = vpop.eup %2909  ;;  %v3725_v46 = vadd.f32 %v1912_v62, %v1896_v34 }
0x1b9c   :  { %1921 = vrot.lane.b32.xlu0 %v2910_v18, %s3064_s0 }
0x1b9d   :  { %2911 = vtanh.f32 %v3725_v46 }
0x1ba3   :  { %v2912_v6 = vpop.eup %2911 }
0x1ba4   :  { %1923 = vrot.lane.b32.xlu1 %v2912_v6, %s3064_s0 }
0x1c0e   :  { %v1922_v59 = vpop.permute.xlu0 %1921 }
0x1c0f   :  { %v3730_v0 = vmul.f32 %v1922_v59, %v1876_v63 }
0x1c16   :  { %v1924_v43 = vpop.permute.xlu1 %1923 }
0x1c17   :  { %v3732_v22 = vmul.f32 %v1924_v43, %v1891_v2 }
0x1c19   :  { %v1939_v53 = vpack.c.bf16 %v3732_v22, %v3730_v0 }
0x1c1b   :  { %1941 = vrot.lane.b32.xlu2 %v1939_v53, %s3065_s3 }
0x1c75   :  { %v1942_v15 = vpop.permute.xlu2 %1941 }
0x1c76   :  { %2672 = vmatmul.msk.bf16.vlgmr.msra.gmra.mxu0 %vm223_vm9, %v1942_v15  ;;  %2673 = vmatmul.msk.bf16.vlgmr.msra.gmra.mxu1 %vm223_vm9, %v1942_v15 }
0x1cf3   :  { %v1955_v9 = vpop.f32.mrf.mxu0  ;;  %v1968_v52 = vpop.f32.mrf.mxu1 }
0x1cf4   :  { %v1973_v60 = vadd.f32 %v1955_v9, %v1414_v38 }
0x1cf6   :  { %2913 = vtanh.f32 %v1973_v60  ;;  %v2674_v24 = vmul.f32 -1.442695, %v1973_v60 }
0x1cfb   :  { %v1957_v35 = vpop.f32.mrf.mxu0  ;;  %v1969_v19 = vpop.f32.mrf.mxu1 }
0x1cfc   :  { %v2914_v42 = vpop.eup %2913  ;;  %v1975_v4 = vadd.f32 %v1969_v19, %v1413_v16 }
0x1cfd   :  { %2020 = vrot.lane.b32.xlu0 %v2914_v42, %s3064_s0 }
0x1cfe   :  { %2915 = vtanh.f32 %v1975_v4  ;;  %v2675_v37 = vmul.f32 -1.442695, %v1975_v4 }
0x1cff   :  { %2917 = vpow2.f32 %v2674_v24  ;;  %v1364_v24 = vadd.f32 %v3641_v10, %v3593_v29 }
0x1d00   :  { %2919 = vpow2.f32 %v2675_v37 }
0x1d01   :  { %v1416_v37 = vadd.f32 %v3606_v48, %v1364_v24 }
0x1d04   :  { %v2916_v27 = vpop.eup %2915 }
0x1d05   :  { %2022 = vrot.lane.b32.xlu1 %v2916_v27, %s3064_s0  ;;  %v2918_v30 = vpop.eup %2917 }
0x1d06   :  { %v1982_v39 = vadd.f32 1.0, %v2918_v30  ;;  %v2920_v23 = vpop.eup %2919 }
0x1d07   :  { %v1983_v26 = vadd.f32 1.0, %v2920_v23 }
0x1d08   :  { %2921 = vrcp.f32 %v1982_v39  ;;  %v1995_v32 = vand.u32 2147483648, %v1982_v39  ;;  %vm1989_vm8 = vweird.f32 %v1982_v39  ;;  %v1993_v33 = vand.u32 2147483647, %v1982_v39 }
0x1d09   :  { %2923 = vrcp.f32 %v1983_v26  ;;  %v2010_v45 = vand.u32 2147483648, %v1983_v26  ;;  %vm2004_vm13 = vweird.f32 %v1983_v26  ;;  %v2008_v34 = vand.u32 2147483647, %v1983_v26 }
0x1d0a   :  { %v1996_v58 = vor.u32 1.1754944e-38, %v1995_v32  ;;  %vm1994_vm11 = vcmp.eq.f32.partialorder %v1993_v33, 8.507059e+37 }
0x1d0b   :  { %v2011_v18 = vor.u32 1.1754944e-38, %v2010_v45  ;;  %vm2009_vm15 = vcmp.eq.f32.partialorder %v2008_v34, 8.507059e+37 }
0x1d0e   :  { %v2922_v25 = vpop.eup %2921 }
0x1d0f   :  { %v1985_v20 = vmul.f32 %v2922_v25, %v1982_v39  ;;  %v2924_v50 = vpop.eup %2923  ;;  %vm1990_vm7 = vweird.f32 %v2922_v25 }
0x1d10   :  { %v2000_v3 = vmul.f32 %v2924_v50, %v1983_v26  ;;  %vm1991_vm10 = vmor %vm1989_vm8, %vm1990_vm7  ;;  %vm2005_vm12 = vweird.f32 %v2924_v50  ;;  %v1411_v26 = vadd.f32 %v3614_v5, %v3583_v21 }
0x1d11   :  { %v1986_v63 = vsub.f32 1.0, %v1985_v20  ;;  %vm2006_vm14 = vmor %vm2004_vm13, %vm2005_vm12 }
0x1d12   :  { %v2001_v41 = vsub.f32 1.0, %v2000_v3 }
0x1d13   :  { %v1987_v55 = vmul.f32 %v2922_v25, %v1986_v63 }
0x1d14   :  { %v2002_v44 = vmul.f32 %v2924_v50, %v2001_v41 }
0x1d15   :  { %v1988_v28 = vadd.f32 %v2922_v25, %v1987_v55 }
0x1d16   :  { %v2003_v57 = vadd.f32 %v2924_v50, %v2002_v44 }
0x1d17   :  { %v1992_v54 = vsel %vm1991_vm10, %v2922_v25, %v1988_v28 }
0x1d18   :  { %v1997_v2 = vsel %vm1994_vm11, %v1996_v58, %v1992_v54  ;;  %v2007_v62 = vsel %vm2006_vm14, %v2924_v50, %v2003_v57 }
0x1d19   :  { %v2012_v59 = vsel %vm2009_vm15, %v2011_v18, %v2007_v62  ;;  %v2016_v53 = vmul.f32 %v1997_v2, %v3721_v47 }
0x1d1a   :  { %v2017_v52 = vmul.f32 %v2012_v59, %v3725_v46 }
0x1d6f   :  { %v2021_v7 = vpop.permute.xlu0 %2020 }
0x1d70   :  { %v2026_v51 = vmul.f32 %v2021_v7, %v1997_v2 }
0x1d72   :  { %2030 = vrot.lane.b32.xlu2 %v2026_v51, %s3065_s3 }
0x1d77   :  { %v2023_v6 = vpop.permute.xlu1 %2022 }
0x1d78   :  { %v2027_v43 = vmul.f32 %v2023_v6, %v2012_v59 }
0x1d7a   :  { %2032 = vrot.lane.b32.xlu0 %v2027_v43, %s3065_s3 }
0x1dcc   :  { %v2031_v15 = vpop.permute.xlu2 %2030 }
0x1dcd   :  { %v3748_v38 = vadd.f32 %v2031_v15, %v2016_v53 }
0x1dcf   :  { %2925 = vtanh.f32 %v3748_v38 }
0x1dd5   :  { %v2926_v9 = vpop.eup %2925 }
0x1dd6   :  { %2042 = vrot.lane.b32.xlu1 %v2926_v9, %s3064_s0 }
0x1dec   :  { %v2033_v60 = vpop.permute.xlu0 %2032 }
0x1ded   :  { %v3753_v16 = vadd.f32 %v2033_v60, %v2017_v52 }
0x1def   :  { %2927 = vtanh.f32 %v3753_v16 }
0x1df5   :  { %v2928_v35 = vpop.eup %2927 }
0x1df6   :  { %2044 = vrot.lane.b32.xlu2 %v2928_v35, %s3064_s0 }
0x1e48   :  { %v2043_v19 = vpop.permute.xlu1 %2042 }
0x1e49   :  { %v3757_v42 = vmul.f32 %v2043_v19, %v1997_v2 }
0x1e50   :  { %v2045_v47 = vpop.permute.xlu2 %2044 }
0x1e51   :  { %v3759_v4 = vmul.f32 %v2045_v47, %v2012_v59 }
0x1e53   :  { %v2060_v27 = vpack.c.bf16 %v3759_v4, %v3757_v42 }
0x1e55   :  { %2062 = vrot.lane.b32.xlu0 %v2060_v27, %s3065_s3 }
0x1ec7   :  { %v2063_v46 = vpop.permute.xlu0 %2062 }
0x1ec8   :  { %2676 = vmatmul.msk.bf16.vlgmr.msrb.gmra.mxu2 %vm223_vm9, %v2063_v46  ;;  %2677 = vmatmul.msk.bf16.vlgmr.msrb.gmra.mxu3 %vm223_vm9, %v2063_v46 }
0x1f4b   :  { %v2076_v30 = vpop.f32.mrf.mxu2  ;;  %v2089_v39 = vpop.f32.mrf.mxu3 }
0x1f4c   :  { %v2094_v23 = vadd.f32 %v2076_v30, %v1416_v37 }
0x1f4e   :  { %2929 = vtanh.f32 %v2094_v23  ;;  %v2678_v28 = vmul.f32 -1.442695, %v2094_v23 }
0x1f53   :  { %v2078_v25 = vpop.f32.mrf.mxu2  ;;  %v2090_v20 = vpop.f32.mrf.mxu3 }
0x1f54   :  { %v2930_v63 = vpop.eup %2929  ;;  %v2096_v50 = vadd.f32 %v2090_v20, %v1411_v26 }
0x1f55   :  { %2141 = vrot.lane.b32.xlu1 %v2930_v63, %s3064_s0 }
0x1f56   :  { %2931 = vtanh.f32 %v2096_v50  ;;  %v2679_v29 = vmul.f32 -1.442695, %v2096_v50 }
0x1f58   :  { %2933 = vpow2.f32 %v2679_v29 }
0x1f5c   :  { %v2932_v55 = vpop.eup %2931 }
0x1f5d   :  { %2143 = vrot.lane.b32.xlu2 %v2932_v55, %s3064_s0  ;;  %v1367_v55 = vadd.f32 %v3643_v11, %v3597_v49 }
0x1f5e   :  { %v2934_v10 = vpop.eup %2933 }
0x1f5f   :  { %v2104_v3 = vadd.f32 1.0, %v2934_v10  ;;  %v1418_v29 = vadd.f32 %v3606_v48, %v1367_v55 }
0x1f61   :  { %2935 = vrcp.f32 %v2104_v3  ;;  %v2131_v2 = vand.u32 2147483648, %v2104_v3  ;;  %vm2125_vm1 = vweird.f32 %v2104_v3  ;;  %v2129_v51 = vand.u32 2147483647, %v2104_v3 }
0x1f62   :  { %2937 = vpow2.f32 %v2678_v28 }
0x1f63   :  { %v2132_v34 = vor.u32 1.1754944e-38, %v2131_v2  ;;  %vm2130_vm3 = vcmp.eq.f32.partialorder %v2129_v51, 8.507059e+37 }
0x1f67   :  { %v2936_v41 = vpop.eup %2935 }
0x1f68   :  { %v2938_v32 = vpop.eup %2937  ;;  %v2121_v21 = vmul.f32 %v2936_v41, %v2104_v3  ;;  %vm2126_vm0 = vweird.f32 %v2936_v41 }
0x1f69   :  { %v2103_v33 = vadd.f32 1.0, %v2938_v32  ;;  %vm2127_vm2 = vmor %vm2125_vm1, %vm2126_vm0 }
0x1f6a   :  { %v2122_v54 = vsub.f32 1.0, %v2121_v21 }
0x1f6b   :  { %2939 = vrcp.f32 %v2103_v33  ;;  %v2116_v15 = vand.u32 2147483648, %v2103_v33  ;;  %vm2110_vm5 = vweird.f32 %v2103_v33  ;;  %v2114_v9 = vand.u32 2147483647, %v2103_v33 }
0x1f6c   :  { %v2123_v44 = vmul.f32 %v2936_v41, %v2122_v54 }
0x1f6d   :  { %v2117_v60 = vor.u32 1.1754944e-38, %v2116_v15  ;;  %vm2115_vm7 = vcmp.eq.f32.partialorder %v2114_v9, 8.507059e+37 }
0x1f6e   :  { %v2124_v58 = vadd.f32 %v2936_v41, %v2123_v44 }
0x1f70   :  { %v2128_v57 = vsel %vm2127_vm2, %v2936_v41, %v2124_v58  ;;  %v1409_v41 = vadd.f32 %v3614_v5, %v3577_v61 }
0x1f71   :  { %v2940_v7 = vpop.eup %2939  ;;  %v2133_v18 = vsel %vm2130_vm3, %v2132_v34, %v2128_v57 }
0x1f72   :  { %v2106_v45 = vmul.f32 %v2940_v7, %v2103_v33  ;;  %vm2111_vm4 = vweird.f32 %v2940_v7  ;;  %v2138_v27 = vmul.f32 %v2133_v18, %v3753_v16 }
0x1f73   :  { %vm2112_vm6 = vmor %vm2110_vm5, %vm2111_vm4 }
0x1f74   :  { %v2107_v59 = vsub.f32 1.0, %v2106_v45 }
0x1f76   :  { %v2108_v43 = vmul.f32 %v2940_v7, %v2107_v59 }
0x1f78   :  { %v2109_v53 = vadd.f32 %v2940_v7, %v2108_v43 }
0x1f7a   :  { %v2113_v52 = vsel %vm2112_vm6, %v2940_v7, %v2109_v53 }
0x1f7b   :  { %v2118_v19 = vsel %vm2115_vm7, %v2117_v60, %v2113_v52 }
0x1f7c   :  { %v2137_v30 = vmul.f32 %v2118_v19, %v3748_v38 }
0x1fb7   :  { %v2144_v62 = vpop.permute.xlu2 %2143 }
0x1fb8   :  { %v2148_v6 = vmul.f32 %v2144_v62, %v2133_v18 }
0x1fba   :  { %2153 = vrot.lane.b32.xlu1 %v2148_v6, %s3065_s3 }
0x1fc7   :  { %v2142_v35 = vpop.permute.xlu1 %2141 }
0x1fc8   :  { %v2147_v47 = vmul.f32 %v2142_v35, %v2118_v19 }
0x1fca   :  { %2151 = vrot.lane.b32.xlu0 %v2147_v47, %s3065_s3 }
0x202c   :  { %v2154_v46 = vpop.permute.xlu1 %2153 }
0x202d   :  { %v3776_v24 = vadd.f32 %v2154_v46, %v2138_v27 }
0x202f   :  { %2941 = vtanh.f32 %v3776_v24 }
0x2035   :  { %v2942_v37 = vpop.eup %2941 }
0x2036   :  { %2165 = vrot.lane.b32.xlu0 %v2942_v37, %s3064_s0 }
0x203c   :  { %v2152_v39 = vpop.permute.xlu0 %2151 }
0x203d   :  { %v3781_v23 = vadd.f32 %v2152_v39, %v2137_v30 }
0x203f   :  { %2943 = vtanh.f32 %v3781_v23 }
0x2045   :  { %v2944_v26 = vpop.eup %2943 }
0x2046   :  { %2163 = vrot.lane.b32.xlu2 %v2944_v26, %s3064_s0 }
0x20a0   :  { %v2164_v25 = vpop.permute.xlu2 %2163 }
0x20a1   :  { %v3785_v20 = vmul.f32 %v2164_v25, %v2118_v19 }
0x20a8   :  { %v2166_v16 = vpop.permute.xlu0 %2165 }
0x20a9   :  { %v3787_v63 = vmul.f32 %v2166_v16, %v2133_v18 }
0x20ab   :  { %v2181_v50 = vpack.c.bf16 %v3787_v63, %v3785_v20 }
0x20ad   :  { %2183 = vrot.lane.b32.xlu1 %v2181_v50, %s3065_s3 }
0x211f   :  { %v2184_v38 = vpop.permute.xlu1 %2183 }
0x2120   :  { %2680 = vmatmul.msk.bf16.vlgmr.msrb.gmra.mxu0 %vm223_vm9, %v2184_v38  ;;  %2681 = vmatmul.msk.bf16.vlgmr.msrb.gmra.mxu1 %vm223_vm9, %v2184_v38 }
0x219d   :  { %v2197_v10 = vpop.f32.mrf.mxu0  ;;  %v2210_v3 = vpop.f32.mrf.mxu1 }
0x219e   :  { %v2215_v28 = vadd.f32 %v2197_v10, %v1418_v29 }
0x21a0   :  { %2945 = vtanh.f32 %v2215_v28  ;;  %v2682_v49 = vmul.f32 -1.442695, %v2215_v28 }
0x21a5   :  { %v2199_v32 = vpop.f32.mrf.mxu0  ;;  %v2211_v21 = vpop.f32.mrf.mxu1 }
0x21a6   :  { %v2946_v33 = vpop.eup %2945  ;;  %v2217_v54 = vadd.f32 %v2211_v21, %v1409_v41 }
0x21a7   :  { %2262 = vrot.lane.b32.xlu2 %v2946_v33, %s3064_s0 }
0x21a8   :  { %2947 = vtanh.f32 %v2217_v54  ;;  %v2683_v57 = vmul.f32 -1.442695, %v2217_v54  ;;  %v1369_v54 = vadd.f32 %v3645_v13, %v3601_v40  ;;  %v2432_v40 = vld [vmem:[%s3910_s7 + $0x38] sm:$0xff] }
0x21a9   :  { %2949 = vpow2.f32 %v2682_v49  ;;  %2448 = vmatpush.msra.mxu0 %v2432_v40 }
0x21ae   :  { %v2948_v44 = vpop.eup %2947 }
0x21af   :  { %2264 = vrot.lane.b32.xlu0 %v2948_v44, %s3064_s0  ;;  %v2950_v11 = vpop.eup %2949  ;;  %v1420_v44 = vadd.f32 %v3606_v48, %v1369_v54  ;;  %v2431_v48 = vld [vmem:[%s3910_s7 + $0x30] sm:$0xff] }
0x21b0   :  { %v2224_v58 = vadd.f32 1.0, %v2950_v11  ;;  %2449 = vmatpush.msra.mxu0 %v2431_v48 }
0x21b2   :  { %2951 = vrcp.f32 %v2224_v58  ;;  %v2237_v34 = vand.u32 2147483648, %v2224_v58  ;;  %vm2231_vm10 = vweird.f32 %v2224_v58  ;;  %v2235_v62 = vand.u32 2147483647, %v2224_v58 }
0x21b3   :  { %2953 = vpow2.f32 %v2683_v57 }
0x21b4   :  { %v2238_v59 = vor.u32 1.1754944e-38, %v2237_v34  ;;  %vm2236_vm12 = vcmp.eq.f32.partialorder %v2235_v62, 8.507059e+37  ;;  %v2429_v34 = vld [vmem:[%s3910_s7 + $0x20] sm:$0xff] }
0x21b8   :  { %v2952_v7 = vpop.eup %2951 }
0x21b9   :  { %v2227_v2 = vmul.f32 %v2952_v7, %v2224_v58  ;;  %vm2232_vm8 = vweird.f32 %v2952_v7  ;;  %v2954_v18 = vpop.eup %2953 }
0x21ba   :  { %vm2233_vm11 = vmor %vm2231_vm10, %vm2232_vm8  ;;  %v2225_v43 = vadd.f32 1.0, %v2954_v18 }
0x21bb   :  { %v2228_v51 = vsub.f32 1.0, %v2227_v2 }
0x21bc   :  { %2955 = vrcp.f32 %v2225_v43  ;;  %v2252_v27 = vand.u32 2147483648, %v2225_v43  ;;  %vm2246_vm14 = vweird.f32 %v2225_v43  ;;  %v2250_v46 = vand.u32 2147483647, %v2225_v43 }
0x21bd   :  { %v2229_v61 = vmul.f32 %v2952_v7, %v2228_v51 }
0x21be   :  { %v2253_v30 = vor.u32 1.1754944e-38, %v2252_v27  ;;  %vm2251_vm0 = vcmp.eq.f32.partialorder %v2250_v46, 8.507059e+37  ;;  %v1381_v46 = vadd.f32 %v3569_v12, %v3571_v17  ;;  %v2428_v12 = vld [vmem:[%s3910_s7 + $0x18] sm:$0xff]  ;;  %v2427_v17 = vld [vmem:[%s3910_s7 + $0x10] sm:$0xff] }
0x21bf   :  { %v2230_v45 = vadd.f32 %v2952_v7, %v2229_v61  ;;  %2471 = vmatpush.msra.mxu1 %v2428_v12 }
0x21c1   :  { %v2234_v6 = vsel %vm2233_vm11, %v2952_v7, %v2230_v45  ;;  %v2430_v45 = vld [vmem:[%s3910_s7 + $0x28] sm:$0xff]  ;;  %2472 = vmatpush.msra.mxu1 %v2427_v17 }
0x21c2   :  { %v2239_v15 = vsel %vm2236_vm12, %v2238_v59, %v2234_v6  ;;  %v2956_v52 = vpop.eup %2955  ;;  %2450 = vmatpush.msra.mxu0 %v2430_v45 }
0x21c3   :  { %v2242_v60 = vmul.f32 %v2956_v52, %v2225_v43  ;;  %vm2247_vm13 = vweird.f32 %v2956_v52  ;;  %v2258_v16 = vmul.f32 %v2239_v15, %v3781_v23 }
0x21c4   :  { %vm2248_vm15 = vmor %vm2246_vm14, %vm2247_vm13  ;;  %2451 = vmatpush.msra.mxu0 %v2429_v34 }
0x21c5   :  { %v2243_v35 = vsub.f32 1.0, %v2242_v60 }
0x21c7   :  { %v2244_v19 = vmul.f32 %v2956_v52, %v2243_v35 }
0x21c9   :  { %v2245_v47 = vadd.f32 %v2956_v52, %v2244_v19 }
0x21cb   :  { %v2249_v37 = vsel %vm2248_vm15, %v2956_v52, %v2245_v47 }
0x21cc   :  { %v2254_v26 = vsel %vm2251_vm0, %v2253_v30, %v2249_v37 }
0x21cd   :  { %v2259_v55 = vmul.f32 %v2254_v26, %v3776_v24 }
0x2201   :  { %v2263_v53 = vpop.permute.xlu2 %2262 }
0x2202   :  { %v2268_v9 = vmul.f32 %v2263_v53, %v2239_v15 }
0x2204   :  { %2272 = vrot.lane.b32.xlu1 %v2268_v9, %s3065_s3 }
0x2221   :  { %v2265_v39 = vpop.permute.xlu0 %2264 }
0x2222   :  { %v2269_v25 = vmul.f32 %v2265_v39, %v2254_v26  ;;  %v1407_v39 = vadd.f32 %v3614_v5, %v1381_v46 }
0x2224   :  { %2274 = vrot.lane.b32.xlu2 %v2269_v25, %s3065_s3 }
0x2276   :  { %v2273_v50 = vpop.permute.xlu1 %2272 }
0x2277   :  { %v3804_v38 = vadd.f32 %v2273_v50, %v2258_v16 }
0x2279   :  { %2957 = vtanh.f32 %v3804_v38 }
0x227e   :  { %v2275_v29 = vpop.permute.xlu2 %2274 }
0x227f   :  { %v2958_v10 = vpop.eup %2957  ;;  %v3808_v3 = vadd.f32 %v2275_v29, %v2259_v55 }
0x2280   :  { %2284 = vrot.lane.b32.xlu0 %v2958_v10, %s3064_s0 }
0x2281   :  { %2959 = vtanh.f32 %v3808_v3 }
0x2287   :  { %v2960_v28 = vpop.eup %2959 }
0x2288   :  { %2286 = vrot.lane.b32.xlu1 %v2960_v28, %s3064_s0 }
0x22f2   :  { %v2285_v41 = vpop.permute.xlu0 %2284 }
0x22f3   :  { %v3813_v32 = vmul.f32 %v2285_v41, %v2239_v15 }
0x22fa   :  { %v2287_v23 = vpop.permute.xlu1 %2286 }
0x22fb   :  { %v3815_v21 = vmul.f32 %v2287_v23, %v2254_v26 }
0x22fd   :  { %v2302_v24 = vpack.c.bf16 %v3815_v21, %v3813_v32 }
0x22ff   :  { %2304 = vrot.lane.b32.xlu2 %v2302_v24, %s3065_s3 }
0x2359   :  { %v2305_v33 = vpop.permute.xlu2 %2304 }
0x235a   :  { %2684 = vmatmul.msk.bf16.vlgmr.msra.gmra.mxu2 %vm223_vm9, %v2305_v33  ;;  %2685 = vmatmul.msk.bf16.vlgmr.msra.gmra.mxu3 %vm223_vm9, %v2305_v33 }
0x23dd   :  { %v2318_v49 = vpop.f32.mrf.mxu2  ;;  %v2331_v11 = vpop.f32.mrf.mxu3 }
0x23de   :  { %v2336_v58 = vadd.f32 %v2318_v49, %v1420_v44 }
0x23e0   :  { %2961 = vtanh.f32 %v2336_v58  ;;  %v2686_v51 = vmul.f32 -1.442695, %v2336_v58 }
0x23e2   :  { %2963 = vpow2.f32 %v2686_v51  ;;  %v2425_v51 = vld [vmem:[%s3910_s7] sm:$0xff] }
0x23e5   :  { %v2320_v7 = vpop.f32.mrf.mxu2  ;;  %v2332_v30 = vpop.f32.mrf.mxu3 }
0x23e6   :  { %v2962_v2 = vpop.eup %2961  ;;  %v2338_v26 = vadd.f32 %v2332_v30, %v1407_v39 }
0x23e7   :  { %2383 = vrot.lane.b32.xlu0 %v2962_v2, %s3064_s0  ;;  %v2426_v2 = vld [vmem:[%s3910_s7 + $0x8] sm:$0xff] }
0x23e8   :  { %v2964_v57 = vpop.eup %2963  ;;  %v2687_v50 = vmul.f32 -1.442695, %v2338_v26  ;;  %2473 = vmatpush.msra.mxu1 %v2426_v2 }
0x23e9   :  { %v2345_v61 = vadd.f32 1.0, %v2964_v57 }
0x23ea   :  { %2474 = vmatpush.msra.mxu1 %v2425_v51 }
0x23eb   :  { %2965 = vrcp.f32 %v2345_v61  ;;  %v2358_v59 = vand.u32 2147483648, %v2345_v61  ;;  %vm2352_vm2 = vweird.f32 %v2345_v61  ;;  %v2356_v43 = vand.u32 2147483647, %v2345_v61 }
0x23ed   :  { %v2359_v15 = vor.u32 1.1754944e-38, %v2358_v59  ;;  %vm2357_vm4 = vcmp.eq.f32.partialorder %v2356_v43, 8.507059e+37 }
0x23ef   :  { %1572 = vrot.lane.b32.xlu0 %v3630_v8, %s3065_s3 }
0x23f1   :  { %v2966_v13 = vpop.eup %2965 }
0x23f2   :  { %v2348_v8 = vmul.f32 %v2966_v13, %v2345_v61  ;;  %vm2353_vm1 = vweird.f32 %v2966_v13 }
0x23f3   :  { %vm2354_vm3 = vmor %vm2352_vm2, %vm2353_vm1 }
0x23f4   :  { %v2349_v62 = vsub.f32 1.0, %v2348_v8 }
0x23f6   :  { %v2350_v18 = vmul.f32 %v2966_v13, %v2349_v62 }
0x23f8   :  { %v2351_v6 = vadd.f32 %v2966_v13, %v2350_v18 }
0x23fa   :  { %v2355_v53 = vsel %vm2354_vm3, %v2966_v13, %v2351_v6 }
0x23fb   :  { %v2360_v52 = vsel %vm2357_vm4, %v2359_v15, %v2355_v53 }
0x23fc   :  { %v2379_v47 = vmul.f32 %v2360_v52, %v3804_v38 }
0x2459   :  { %v2384_v9 = vpop.permute.xlu0 %2383 }
0x245a   :  { %v2389_v60 = vmul.f32 %v2384_v9, %v2360_v52 }
0x245c   :  { %2393 = vrot.lane.b32.xlu1 %v2389_v60, %s3065_s3 }
0x2461   :  { %v1573_v35 = vpop.permute.xlu0 %1572 }
0x2462   :  { %1575 = vst.msk [vmem:[#allocation6 + $0x38] sm:$0xff] %vm223_vm9, %v1573_v35 }
0x2469   :  { %v2424_v19 = vld [vmem:[#allocation6 + $0x38] sm:$0xff] }
0x246a   :  { %2688 = vmatmul.msk.f32.vlgmr.msra.gmra.mxu0 %vm223_vm9, %v2424_v19 }
0x24ce   :  { %v2394_v27 = vpop.permute.xlu1 %2393 }
0x24cf   :  { %v2399_v37 = vadd.f32 %v2394_v27, %v2379_v47 }
0x24d1   :  { %2967 = vtanh.f32 %v2399_v37 }
0x24d2   :  { %2969 = vtanh.f32 %v2338_v26 }
0x24d3   :  { %2971 = vpow2.f32 %v2687_v50 }
0x24d7   :  { %v2968_v25 = vpop.eup %2967 }
0x24d8   :  { %2405 = vrot.lane.b32.xlu2 %v2968_v25, %s3064_s0  ;;  %v2970_v16 = vpop.eup %2969 }
0x24d9   :  { %v2972_v38 = vpop.eup %2971 }
0x24da   :  { %v2346_v55 = vadd.f32 1.0, %v2972_v38 }
0x24dc   :  { %2973 = vrcp.f32 %v2346_v55  ;;  %v2373_v33 = vand.u32 2147483648, %v2346_v55  ;;  %vm2367_vm6 = vweird.f32 %v2346_v55  ;;  %v2371_v54 = vand.u32 2147483647, %v2346_v55 }
0x24de   :  { %v2374_v49 = vor.u32 1.1754944e-38, %v2373_v33  ;;  %vm2372_vm8 = vcmp.eq.f32.partialorder %v2371_v54, 8.507059e+37 }
0x24e0   :  { %2385 = vrot.lane.b32.xlu2 %v2970_v16, %s3064_s0 }
0x24e2   :  { %v2974_v29 = vpop.eup %2973 }
0x24e3   :  { %v2363_v5 = vmul.f32 %v2974_v29, %v2346_v55  ;;  %vm2368_vm5 = vweird.f32 %v2974_v29 }
0x24e4   :  { %vm2369_vm7 = vmor %vm2367_vm6, %vm2368_vm5 }
0x24e5   :  { %v2364_v10 = vsub.f32 1.0, %v2363_v5 }
0x24e7   :  { %v2365_v28 = vmul.f32 %v2974_v29, %v2364_v10 }
0x24e9   :  { %v2366_v24 = vadd.f32 %v2974_v29, %v2365_v28 }
0x24eb   :  { %v2370_v44 = vsel %vm2369_vm7, %v2974_v29, %v2366_v24 }
0x24ec   :  { %v2375_v11 = vsel %vm2372_vm8, %v2374_v49, %v2370_v44 }
0x24ed   :  { %v2380_v61 = vmul.f32 %v2375_v11, %v3808_v3 }
0x2532   :  { %v2406_v41 = vpop.permute.xlu2 %2405 }
0x2533   :  { %v2411_v23 = vmul.f32 %v2406_v41, %v2360_v52 }
0x2535   :  { %2414 = vrot.lane.b32.xlu1 %v2411_v23, %s3065_s3 }
0x253a   :  { %v2386_v58 = vpop.permute.xlu2 %2385 }
0x253b   :  { %v2390_v7 = vmul.f32 %v2386_v58, %v2375_v11 }
0x253d   :  { %2395 = vrot.lane.b32.xlu0 %v2390_v7, %s3065_s3 }
0x2545   :  { %2051 = vrot.lane.b32.xlu0 %v3757_v42, %s3065_s3 }
0x25a7   :  { %v2415_v57 = vpop.permute.xlu1 %2414 }
0x25a8   :  { %2417 = vst.msk [vmem:[#allocation5 + $0x38] sm:$0xff] %vm223_vm9, %v2415_v57 }
0x25af   :  { %v2396_v40 = vpop.permute.xlu0 %2395  ;;  %v2423_v48 = vld [vmem:[#allocation5 + $0x38] sm:$0xff] }
0x25b0   :  { %v2400_v13 = vadd.f32 %v2396_v40, %v2380_v61  ;;  %2689 = vmatmul.msk.f32.vlgmr.msra.gmra.mxu1 %vm223_vm9, %v2423_v48  ;;  %vm2484_vm9 = vcmask 39936  }
0x25b2   :  { %2975 = vtanh.f32 %v2400_v13 }
0x25b7   :  { %v2052_v42 = vpop.permute.xlu0 %2051 }
0x25b8   :  { %v2976_v45 = vpop.eup %2975 }
0x25b9   :  { %2407 = vrot.lane.b32.xlu2 %v2976_v45, %s3064_s0 }
0x25c1   :  { %1567 = vrot.lane.b32.xlu2 %v3628_v14, %s3065_s3 }
0x25c9   :  { %1688 = vrot.lane.b32.xlu2 %v3667_v36, %s3065_s3 }
0x25d1   :  { %1693 = vrot.lane.b32.xlu2 %v3669_v56, %s3065_s3 }
0x25d9   :  { %1809 = vrot.lane.b32.xlu2 %v3699_v31, %s3065_s3  ;;  %v2720_v31 = vld [vmem:[%s3911_s8] ss:$0 sm:$0xff]  ;;  %s3066_s8 = smov [#allocation12]  }
0x25da   :  { %s2503_s5 = sshll.u32 %s3066_s8, 4  ;;  %s2504_s5 = int_to_ptr.vmem [resolvable:$true] %s2503_s5 }
0x25e1   :  { %1814 = vrot.lane.b32.xlu2 %v3701_v1, %s3065_s3  ;;  %v2453_v1 = vpop.f32.mrf.mxu0 }
0x25e9   :  { %1935 = vrot.lane.b32.xlu2 %v3732_v22, %s3065_s3 }
0x25f1   :  { %2056 = vrot.lane.b32.xlu2 %v3759_v4, %s3065_s3 }
0x25f9   :  { %2172 = vrot.lane.b32.xlu2 %v3785_v20, %s3065_s3 }
0x2601   :  { %2298 = vrot.lane.b32.xlu2 %v3815_v21, %s3065_s3 }
0x2613   :  { %v2408_v14 = vpop.permute.xlu2 %2407 }
0x2614   :  { %v2412_v59 = vmul.f32 %v2408_v14, %v2375_v11 }
0x261b   :  { %v1568_v36 = vpop.permute.xlu2 %1567 }
0x2623   :  { %v1689_v56 = vpop.permute.xlu2 %1688 }
0x262b   :  { %v1694_v3 = vpop.permute.xlu2 %1693 }
0x262d   :  { %v2476_v8 = vpop.f32.mrf.mxu1 }
0x262e   :  { %v2477_v22 = vadd.f32 %v2476_v8, %v2453_v1 }
0x2630   :  { %v2483_v34 = vadd.f32 %v2720_v31, %v2477_v22 }
0x2632   :  { %v2485_v4 = vsel %vm2484_vm9, %v2483_v34, -inf }
0x2633   :  { %2486 = vmax.xlane.f32.xlu1 %v2485_v4  ;;  %v1810_v20 = vpop.permute.xlu2 %1809 }
0x263b   :  { %v1815_v62 = vpop.permute.xlu2 %1814 }
0x2643   :  { %v1936_v18 = vpop.permute.xlu2 %1935 }
0x264b   :  { %v2057_v21 = vpop.permute.xlu2 %2056 }
0x264c   :  { %1930 = vrot.lane.b32.xlu1 %v3730_v0, %s3065_s3 }
0x2653   :  { %v2173_v6 = vpop.permute.xlu2 %2172 }
0x2654   :  { %2177 = vrot.lane.b32.xlu1 %v3787_v63, %s3065_s3 }
0x265b   :  { %v2299_v43 = vpop.permute.xlu2 %2298 }
0x265c   :  { %2419 = vrot.lane.b32.xlu1 %v2412_v59, %s3065_s3 }
0x26a6   :  { %v2487_v53 = vpop.xlane.xlu1 %2486 }
0x26a7   :  { %v2488_v15 = vsub.f32 %v2483_v34, %v2487_v53 }
0x26a9   :  { %v2489_v9 = vmul.f32 1.442695, %v2488_v15 }
0x26ab   :  { %2977 = vpow2.f32 %v2489_v9 }
0x26b1   :  { %v2978_v52 = vpop.eup %2977 }
0x26b2   :  { %v2491_v60 = vsel %vm2484_vm9, %v2978_v52, 0.0 }
0x26b3   :  { %2492 = vadd.xlane.f32.xlu0 %v2491_v60 }
0x26be   :  { %v1931_v35 = vpop.permute.xlu1 %1930 }
0x26c6   :  { %v2178_v19 = vpop.permute.xlu1 %2177 }
0x26c7   :  { %2293 = vrot.lane.b32.xlu0 %v3813_v32, %s3065_s3 }
0x26ce   :  { %v2420_v0 = vpop.permute.xlu1 %2419 }
0x2726   :  { %v2493_v47 = vpop.xlane.xlu0 %2492 }
0x2727   :  { %2979 = vlog2.f32 %v2493_v47 }
0x272d   :  { %v2980_v63 = vpop.eup %2979 }
0x272e   :  { %v2495_v27 = vmul.f32 0.6931472, %v2980_v63 }
0x2730   :  { %v2496_v46 = vsub.f32 %v2488_v15, %v2495_v27 }
0x2732   :  { %2497 = vst.msk [vmem:[#allocation12] sm:$0xff] %vm2484_vm9, %v2496_v46 }
0x2733   :  { %2508 = dma.vmem_to_hbm [thread:$0]  %s2504_s5, 128, %s2506_s24, [#allocation9]  }
0x2739   :  { %v2294_v37 = vpop.permute.xlu0 %2293 }
0x273a   :  { %3057 = dma.done.wait [#allocation9], 128  }
0x273b   :  { %3058 = vsyncadd [#allocation9], 4294967168 }
0x273c   :  { %2513 = vsyncpa [#allocation8], 1 }
0x273d   :  { %2514 = vsyncpa [#allocation11], 1 }
0x273e   :  { %2515 = vsyncpa [#allocation9], 1 }

</bundles_post_ra>
